<compile_context>
chip_gen: v5e
topology: v5e:2x2
jax: 0.10.0
libtpu: 0.0.40
codegen_flags: <defaults>
</compile_context>

<pallas_src>
import functools

import numpy as np
import jax
import jax.numpy as jnp
from jax.experimental import pallas as pl
from jax.experimental.pallas import tpu as pltpu


def _round_up(a: int, b: int) -> int:
    return (a + b - 1) // b * b


# ------------------------------- kernel ------------------------------------ #

def _conv2d_kernel(x_ref, w_ref, o_ref, lhs_ref, col_ref, *,
                   K, C, stride, th, Wo, n_row_tiles, precision):
    """One (batch, oc-tile, row-tile) grid step of the fused-im2col conv.

    x_ref:   (1, Hp, Wp, C)     zero-padded NHWC image (resident across oc/ho)
    w_ref:   (K*K*C, tile_o)    im2col-ordered weight slab for this oc tile
    o_ref:   (1, th*Wo, tile_o) lane-dense output block
    lhs_ref: (th*Wo, K*K*C)     VMEM im2col staging buffer
    col_ref: (1, span, Wo, C)   VMEM slab for hoisted column decimation (stride>1)
    """
    if n_row_tiles == 1:
        row0 = 0
    else:
        # th is a multiple of 8, so the row offset is 8-aligned.
        row0 = pl.multiple_of(pl.program_id(2) * (th * stride), 8)
    span = (th - 1) * stride + K

    # Build the (th*Wo, K*K*C) im2col LHS in VMEM.  Column ordering matches the
    # wrapper's weight reshape: column (ki*K + kj)*C + c  <->  w[o, c, ki, kj].
    for kj in range(K):
        if stride == 1:
            for ki in range(K):
                tap = ki * K + kj
                patch = x_ref[:, pl.ds(row0 + ki, th), kj:kj + Wo, :]
                lhs_ref[:, tap * C:(tap + 1) * C] = patch.reshape(th * Wo, C)
        else:
            # Hoist the strided column gather out of the ki loop: one strided
            # read of the W axis per kj, then cheap row-strided reads from the
            # small VMEM slab.
            col_ref[...] = x_ref[:, pl.ds(row0, span), pl.ds(kj, Wo, stride), :]
            for ki in range(K):
                tap = ki * K + kj
                patch = col_ref[:, pl.ds(ki, th, stride), :, :]
                lhs_ref[:, tap * C:(tap + 1) * C] = patch.reshape(th * Wo, C)

    # Single fused MXU matmul: (th*Wo, K*K*C) @ (K*K*C, tile_o) -> f32 acc.
    acc = jnp.dot(lhs_ref[...], w_ref[...],
                  preferred_element_type=jnp.float32, precision=precision)
    o_ref[...] = acc.astype(o_ref.dtype).reshape(o_ref.shape)


# ------------------------------- wrapper ------------------------------------ #

def conv2d(x, weight, stride: int = 1, padding: int = 0,
           compute_dtype=jnp.float32, precision=None, tile_o: int = 128):
    """Equivalent of torch.nn.functional.conv2d(x, weight, bias=None,
    stride=stride, padding=padding).  x: (N, C, H, W), weight: (O, C, K, K).

    compute_dtype: dtype the kernel loads/stores (f32 or bf16; accumulation is
    always f32).  precision: matmul precision for the f32 path (None = DEFAULT
    single MXU pass; jax.lax.Precision.HIGHEST for near-exact f32 numerics).
    """
    N, C, H, W = x.shape
    O, C2, K, K2 = weight.shape
    assert C2 == C and K2 == K, "weight shape mismatch"

    Ho = (H + 2 * padding - K) // stride + 1
    Wo = (W + 2 * padding - K) // stride + 1
    assert Ho > 0 and Wo > 0
    KKC = K * K * C
    cdt = jnp.dtype(compute_dtype)

    # Lane-dense output channels: pad O to a multiple of 128 and tile it.
    LANES = 128
    O_pad = _round_up(O, LANES)
    tile_o = max(LANES, _round_up(min(tile_o, O_pad), LANES))
    if O_pad % tile_o:
        tile_o = LANES

    # Output-row tile: a multiple of 8, sized so th*Wo ~ 1024 MXU LHS rows.
    # Ho is padded up to n_row_tiles*th; the extra rows are sliced off later.
    target_rows = 1024
    cap = max(8, (target_rows // max(Wo, 1)) // 8 * 8)
    th = min(_round_up(Ho, 8), cap)
    n_row_tiles = -(-Ho // th)
    # Make sure dual-TensorCore chips (v7x) see at least 2 grid steps.
    if (N * (O_pad // tile_o) * n_row_tiles < 2
            and th >= 16 and (th // 2) % 8 == 0):
        th //= 2
        n_row_tiles = -(-Ho // th)
    Ho_pad = n_row_tiles * th

    # Channels-last + spatial zero pad once at the API boundary (plus extra
    # bottom rows so padded output rows read in-bounds zeros).
    x_nhwc = jnp.transpose(x, (0, 2, 3, 1)).astype(cdt)
    Wp = W + 2 * padding
    Hp = max(H + 2 * padding, (Ho_pad - 1) * stride + K)
    x_nhwc = jnp.pad(x_nhwc, ((0, 0), (padding, Hp - H - padding),
                              (padding, padding), (0, 0)))

    # Weights -> (K*K*C, O_pad), row ordering (ki, kj, c) to match the kernel's
    # im2col column ordering.
    w_mat = jnp.transpose(weight, (2, 3, 1, 0)).reshape(KKC, O).astype(cdt)
    if O_pad != O:
        w_mat = jnp.pad(w_mat, ((0, 0), (0, O_pad - O)))

    span = (th - 1) * stride + K
    grid = (N, O_pad // tile_o, n_row_tiles)

    kernel = functools.partial(
        _conv2d_kernel, K=K, C=C, stride=stride, th=th, Wo=Wo,
        n_row_tiles=n_row_tiles, precision=precision)

    # Raise the scoped-VMEM limit only when the double-buffered blocks exceed
    # the smallest default budget (v5e: 16 MiB of 128 MiB physical).
    isz = cdt.itemsize
    vmem_need = (2 * (Hp * Wp * C + KKC * tile_o + th * Wo * tile_o) * isz
                 + (th * Wo * KKC + span * Wo * C) * isz)
    cp = dict(dimension_semantics=("parallel", "parallel", "parallel"))
    if vmem_need + (vmem_need // 4) > (16 << 20):
        cp["vmem_limit_bytes"] = int(min(2 * vmem_need, 64 << 20))

    out = pl.pallas_call(
        kernel,
        out_shape=jax.ShapeDtypeStruct((N, Ho_pad * Wo, O_pad), cdt),
        grid=grid,
        in_specs=[
            # Full padded image per batch element: block index constant across
            # the oc / row-tile axes, so it is DMA'd to VMEM once per image.
            pl.BlockSpec((1, Hp, Wp, C), lambda n, oc, ho: (n, 0, 0, 0)),
            # im2col weight slab for this output-channel tile.
            pl.BlockSpec((KKC, tile_o), lambda n, oc, ho: (0, oc)),
        ],
        out_specs=pl.BlockSpec((1, th * Wo, tile_o),
                               lambda n, oc, ho: (n, ho, oc)),
        scratch_shapes=[
            pltpu.VMEM((th * Wo, KKC), cdt),     # im2col staging buffer
            pltpu.VMEM((1, span, Wo, C), cdt),   # hoisted column slab (stride>1)
        ],
        compiler_params=pltpu.CompilerParams(**cp),
    )(x_nhwc, w_mat)

    out = out.reshape(N, Ho_pad, Wo, O_pad)[:, :Ho, :, :O]
    return jnp.transpose(out, (0, 3, 1, 2))        # back to NCHW at the boundary


# --------------------------------- main ------------------------------------- #

if __name__ == "__main__":
    key = jax.random.PRNGKey(0)

    def make_weight(k, out_c, in_c, ksize):
        # Same init distribution as the PyTorch module: U(-sf, sf).
        sf = 1.0 / np.sqrt(in_c * ksize * ksize)
        return jax.random.uniform(k, (out_c, in_c, ksize, ksize),
                                  jnp.float32, -sf, sf)

    def reference(x, w, stride, padding):
        return jax.lax.conv_general_dilated(
            x, w, window_strides=(stride, stride),
            padding=[(padding, padding), (padding, padding)],
            dimension_numbers=("NCHW", "OIHW", "NCHW"),
            precision=jax.lax.Precision.HIGHEST)

    HIGHEST = jax.lax.Precision.HIGHEST
    configs = [
        # (N, C, H, W, O, K, stride, pad, compute_dtype, precision, tol)
        (2, 4, 16, 16, 32, 3, 1, 1, jnp.float32, HIGHEST, 2e-3),  # exact-ish f32
        (2, 4, 16, 16, 32, 3, 1, 1, jnp.float32, None, 6e-2),     # default MXU path
        (2, 4, 16, 16, 16, 3, 2, 1, jnp.float32, None, 6e-2),     # stride 2
        (2, 3, 32, 32, 64, 7, 2, 3, jnp.float32, None, 6e-2),     # big K, stride 2
        (2, 4, 16, 16, 32, 5, 1, 0, jnp.float32, None, 6e-2),     # Ho not mult of 8
        (2, 4, 64, 64, 32, 3, 1, 1, jnp.float32, None, 6e-2),     # multiple row tiles
        (1, 3, 16, 16, 192, 3, 1, 1, jnp.float32, None, 6e-2),    # multiple oc tiles
        (2, 4, 16, 16, 32, 3, 1, 1, jnp.bfloat16, None, 8e-2),    # bf16 store path
    ]

    for (n, c, h, w, o, k, s, p, dt, prec, tol) in configs:
        key, kx, kw = jax.random.split(key, 3)
        x = jax.random.normal(kx, (n, c, h, w), dtype=jnp.float32)
        wgt = make_weight(kw, o, c, k)

        f = jax.jit(functools.partial(conv2d, stride=s, padding=p,
                                      compute_dtype=dt, precision=prec))
        out = jax.block_until_ready(f(x, wgt))
        ref = jax.block_until_ready(reference(x, wgt, s, p))

        assert out.shape == ref.shape, (out.shape, ref.shape)
        out_f32 = out.astype(jnp.float32)
        assert bool(jnp.all(jnp.isfinite(out_f32)))
        err = float(jnp.max(jnp.abs(out_f32 - ref)))
        assert err < tol, f"max abs err {err} (cfg={(n, c, h, w, o, k, s, p, dt)})"

    print("KERNEL_OK")
</pallas_src>

<mosaic_0001>
module attributes {stable_mosaic.version = 11 : i64} {
  func.func @_conv2d_kernel(%arg0: i32, %arg1: i32, %arg2: i32, %arg3: memref<1x18x18x4xf32, #tpu.memory_space<vmem>>, %arg4: memref<36x128xf32, #tpu.memory_space<vmem>>, %arg5: memref<1x256x128xf32, #tpu.memory_space<vmem>>, %arg6: memref<256x36xf32, #tpu.memory_space<vmem>>, %arg7: memref<1x18x16x4xf32, #tpu.memory_space<vmem>>) attributes {dimension_semantics = [#tpu.dimension_semantics<parallel>, #tpu.dimension_semantics<parallel>, #tpu.dimension_semantics<parallel>], iteration_bounds = array<i64: 2, 1, 1>, scalar_prefetch = 0 : i64, scratch_operands = 2 : i64, tpu.core_type = #tpu.core_type<tc>, window_params = [{transform_indices = @transform_0, window_bounds = array<i64: 1, 18, 18, 4>}, {transform_indices = @transform_1, window_bounds = array<i64: 36, 128>}, {transform_indices = @transform_2, window_bounds = array<i64: 1, 256, 128>}]} {
    %c0 = arith.constant 0 : index
    %c0_0 = arith.constant 0 : index
    %c0_1 = arith.constant 0 : index
    %c0_2 = arith.constant 0 : index
    %0 = vector.load %arg3[%c0, %c0_0, %c0_1, %c0_2] : memref<1x18x18x4xf32, #tpu.memory_space<vmem>>, vector<1x16x16x4xf32>
    %1 = vector.shape_cast %0 : vector<1x16x16x4xf32> to vector<256x4xf32>
    %c0_3 = arith.constant 0 : index
    %c0_4 = arith.constant 0 : index
    %2 = vector.load %arg6[%c0_3, %c0_4] : memref<256x36xf32, #tpu.memory_space<vmem>>, vector<256x4xf32>
    tpu.vector_store %arg6[%c0_3, %c0_4], %1 {strides = array<i32>} : memref<256x36xf32, #tpu.memory_space<vmem>>, vector<256x4xf32>,
    %c0_5 = arith.constant 0 : index
    %c1 = arith.constant 1 : index
    %c0_6 = arith.constant 0 : index
    %c0_7 = arith.constant 0 : index
    %3 = vector.load %arg3[%c0_5, %c1, %c0_6, %c0_7] : memref<1x18x18x4xf32, #tpu.memory_space<vmem>>, vector<1x16x16x4xf32>
    %4 = vector.shape_cast %3 : vector<1x16x16x4xf32> to vector<256x4xf32>
    %c0_8 = arith.constant 0 : index
    %c12 = arith.constant 12 : index
    %5 = vector.load %arg6[%c0_8, %c12] : memref<256x36xf32, #tpu.memory_space<vmem>>, vector<256x4xf32>
    tpu.vector_store %arg6[%c0_8, %c12], %4 {strides = array<i32>} : memref<256x36xf32, #tpu.memory_space<vmem>>, vector<256x4xf32>,
    %c0_9 = arith.constant 0 : index
    %c2 = arith.constant 2 : index
    %c0_10 = arith.constant 0 : index
    %c0_11 = arith.constant 0 : index
    %6 = vector.load %arg3[%c0_9, %c2, %c0_10, %c0_11] : memref<1x18x18x4xf32, #tpu.memory_space<vmem>>, vector<1x16x16x4xf32>
    %7 = vector.shape_cast %6 : vector<1x16x16x4xf32> to vector<256x4xf32>
    %c0_12 = arith.constant 0 : index
    %c24 = arith.constant 24 : index
    %8 = vector.load %arg6[%c0_12, %c24] : memref<256x36xf32, #tpu.memory_space<vmem>>, vector<256x4xf32>
    tpu.vector_store %arg6[%c0_12, %c24], %7 {strides = array<i32>} : memref<256x36xf32, #tpu.memory_space<vmem>>, vector<256x4xf32>,
    %c0_13 = arith.constant 0 : index
    %c0_14 = arith.constant 0 : index
    %c1_15 = arith.constant 1 : index
    %c0_16 = arith.constant 0 : index
    %9 = vector.load %arg3[%c0_13, %c0_14, %c1_15, %c0_16] : memref<1x18x18x4xf32, #tpu.memory_space<vmem>>, vector<1x16x16x4xf32>
    %10 = vector.shape_cast %9 : vector<1x16x16x4xf32> to vector<256x4xf32>
    %c0_17 = arith.constant 0 : index
    %c4 = arith.constant 4 : index
    %11 = vector.load %arg6[%c0_17, %c4] : memref<256x36xf32, #tpu.memory_space<vmem>>, vector<256x4xf32>
    tpu.vector_store %arg6[%c0_17, %c4], %10 {strides = array<i32>} : memref<256x36xf32, #tpu.memory_space<vmem>>, vector<256x4xf32>,
    %c0_18 = arith.constant 0 : index
    %c1_19 = arith.constant 1 : index
    %c1_20 = arith.constant 1 : index
    %c0_21 = arith.constant 0 : index
    %12 = vector.load %arg3[%c0_18, %c1_19, %c1_20, %c0_21] : memref<1x18x18x4xf32, #tpu.memory_space<vmem>>, vector<1x16x16x4xf32>
    %13 = vector.shape_cast %12 : vector<1x16x16x4xf32> to vector<256x4xf32>
    %c0_22 = arith.constant 0 : index
    %c16 = arith.constant 16 : index
    %14 = vector.load %arg6[%c0_22, %c16] : memref<256x36xf32, #tpu.memory_space<vmem>>, vector<256x4xf32>
    tpu.vector_store %arg6[%c0_22, %c16], %13 {strides = array<i32>} : memref<256x36xf32, #tpu.memory_space<vmem>>, vector<256x4xf32>,
    %c0_23 = arith.constant 0 : index
    %c2_24 = arith.constant 2 : index
    %c1_25 = arith.constant 1 : index
    %c0_26 = arith.constant 0 : index
    %15 = vector.load %arg3[%c0_23, %c2_24, %c1_25, %c0_26] : memref<1x18x18x4xf32, #tpu.memory_space<vmem>>, vector<1x16x16x4xf32>
    %16 = vector.shape_cast %15 : vector<1x16x16x4xf32> to vector<256x4xf32>
    %c0_27 = arith.constant 0 : index
    %c28 = arith.constant 28 : index
    %17 = vector.load %arg6[%c0_27, %c28] : memref<256x36xf32, #tpu.memory_space<vmem>>, vector<256x4xf32>
    tpu.vector_store %arg6[%c0_27, %c28], %16 {strides = array<i32>} : memref<256x36xf32, #tpu.memory_space<vmem>>, vector<256x4xf32>,
    %c0_28 = arith.constant 0 : index
    %c0_29 = arith.constant 0 : index
    %c2_30 = arith.constant 2 : index
    %c0_31 = arith.constant 0 : index
    %18 = vector.load %arg3[%c0_28, %c0_29, %c2_30, %c0_31] : memref<1x18x18x4xf32, #tpu.memory_space<vmem>>, vector<1x16x16x4xf32>
    %19 = vector.shape_cast %18 : vector<1x16x16x4xf32> to vector<256x4xf32>
    %c0_32 = arith.constant 0 : index
    %c8 = arith.constant 8 : index
    %20 = vector.load %arg6[%c0_32, %c8] : memref<256x36xf32, #tpu.memory_space<vmem>>, vector<256x4xf32>
    tpu.vector_store %arg6[%c0_32, %c8], %19 {strides = array<i32>} : memref<256x36xf32, #tpu.memory_space<vmem>>, vector<256x4xf32>,
    %c0_33 = arith.constant 0 : index
    %c1_34 = arith.constant 1 : index
    %c2_35 = arith.constant 2 : index
    %c0_36 = arith.constant 0 : index
    %21 = vector.load %arg3[%c0_33, %c1_34, %c2_35, %c0_36] : memref<1x18x18x4xf32, #tpu.memory_space<vmem>>, vector<1x16x16x4xf32>
    %22 = vector.shape_cast %21 : vector<1x16x16x4xf32> to vector<256x4xf32>
    %c0_37 = arith.constant 0 : index
    %c20 = arith.constant 20 : index
    %23 = vector.load %arg6[%c0_37, %c20] : memref<256x36xf32, #tpu.memory_space<vmem>>, vector<256x4xf32>
    tpu.vector_store %arg6[%c0_37, %c20], %22 {strides = array<i32>} : memref<256x36xf32, #tpu.memory_space<vmem>>, vector<256x4xf32>,
    %c0_38 = arith.constant 0 : index
    %c2_39 = arith.constant 2 : index
    %c2_40 = arith.constant 2 : index
    %c0_41 = arith.constant 0 : index
    %24 = vector.load %arg3[%c0_38, %c2_39, %c2_40, %c0_41] : memref<1x18x18x4xf32, #tpu.memory_space<vmem>>, vector<1x16x16x4xf32>
    %25 = vector.shape_cast %24 : vector<1x16x16x4xf32> to vector<256x4xf32>
    %c0_42 = arith.constant 0 : index
    %c32 = arith.constant 32 : index
    %26 = vector.load %arg6[%c0_42, %c32] : memref<256x36xf32, #tpu.memory_space<vmem>>, vector<256x4xf32>
    tpu.vector_store %arg6[%c0_42, %c32], %25 {strides = array<i32>} : memref<256x36xf32, #tpu.memory_space<vmem>>, vector<256x4xf32>,
    %c0_43 = arith.constant 0 : index
    %c0_44 = arith.constant 0 : index
    %27 = vector.load %arg6[%c0_43, %c0_44] : memref<256x36xf32, #tpu.memory_space<vmem>>, vector<256x36xf32>
    %c0_45 = arith.constant 0 : index
    %c0_46 = arith.constant 0 : index
    %28 = vector.load %arg4[%c0_45, %c0_46] : memref<36x128xf32, #tpu.memory_space<vmem>>, vector<36x128xf32>
    %cst = arith.constant dense<0.000000e+00> : vector<256x128xf32>
    %29 = tpu.matmul %27, %28, %cst {dimension_numbers = #tpu.dot_dimension_numbers<[1], [0], [0], [1], [0, 0, 1, 1], [], []>, precision = #tpu.contract_precision<fp32>} : vector<256x36xf32>, vector<36x128xf32>, vector<256x128xf32> -> vector<256x128xf32>
    %30 = vector.shape_cast %29 : vector<256x128xf32> to vector<1x256x128xf32>
    %c0_47 = arith.constant 0 : index
    %c0_48 = arith.constant 0 : index
    %c0_49 = arith.constant 0 : index
    %31 = vector.load %arg5[%c0_47, %c0_48, %c0_49] : memref<1x256x128xf32, #tpu.memory_space<vmem>>, vector<1x256x128xf32>
    tpu.vector_store %arg5[%c0_47, %c0_48, %c0_49], %30 {strides = array<i32>} : memref<1x256x128xf32, #tpu.memory_space<vmem>>, vector<1x256x128xf32>,
    return
  }
  func.func @transform_0(%arg0: i32, %arg1: i32, %arg2: i32) -> (i32, i32, i32, i32) {
    %c0_i32 = arith.constant 0 : i32
    %c0_i32_0 = arith.constant 0 : i32
    %c0_i32_1 = arith.constant 0 : i32
    %c0_i32_2 = arith.constant 0 : i32
    return %arg0, %c0_i32, %c0_i32_0, %c0_i32_1 : i32, i32, i32, i32
  }
  func.func @transform_1(%arg0: i32, %arg1: i32, %arg2: i32) -> (i32, i32) {
    %c0_i32 = arith.constant 0 : i32
    %c0_i32_0 = arith.constant 0 : i32
    return %c0_i32, %arg1 : i32, i32
  }
  func.func @transform_2(%arg0: i32, %arg1: i32, %arg2: i32) -> (i32, i32, i32) {
    %c0_i32 = arith.constant 0 : i32
    return %arg0, %arg2, %arg1 : i32, i32, i32
  }
}

</mosaic_0001>

<bundles_post_ra>
// kernel: conv2d.1
= control target key start
LH: loop header
LB: loop body
LE: loop exit
PB: predicated region body
PF: predicated region fallthrough
CT: control target
= control target key end

     0   :  { %s3542_s9 = smov 0   ;;  %s3544_s10 = smov 0   ;;  %s5502_s0 = inlined_call_operand.vmem [shape: f32[2,18,18,4], index: 0, kind: input, shape index: {}]   ;;  %s5503_s1 = inlined_call_operand.vmem [shape: f32[36,128], index: 1, kind: input, shape index: {}]   ;;  %s5504_s2 = inlined_call_operand.vmem [shape: f32[2,256,128], index: 2, kind: output, shape index: {}]  }
   0x1   :  { %s3546_s11 = smov 0  }
   0x2 LB: > { %s31_s12 = sadd.s32 1, %s3513_s10  ;;  %p3253_p0 = scmp.ge.s32.totalorder %s3517_s11, 1  ;;  %s3517_s11 = sphi %s3546_s11, %s12_s11   ;;  %s3513_s10 = sphi %s3544_s10, %s5676_s10   ;;  %s3509_s9 = sphi %s3542_s9, %s5675_s9  }
   0x3   : > { %p33_p1 = scmp.ge.s32.totalorder %s31_s12, 2  ;;  %p144_p2 = scmp.lt.s32.totalorder %s3517_s11, 3 }
   0x5   : > { %s5678_s12 = smov (%p33_p1, %s31_s12), 0  ;;  %p145_p3 = pnand %p3253_p0, %p144_p2 }
   0x7   : > { %148 = sbr.rel (%p145_p3) target bundleno = 1221 (0x4c5), region = 28 }
   0xc   : > { %p177_p4 = scmp.lt.s32.totalorder %s3509_s9, 1  ;;  %s3519_s17 = smov 12   ;;  %vm231_vm0 = vcmask 31744   ;;  %vm425_vm1 = vcmask 130144   ;;  %vm619_vm2 = vcmask 228544   ;;  %vm1944_vm3 = vcmask 1043456  }
   0xd   : > { %s3520_s18 = smov 24   ;;  %s3521_s19 = smov 16   ;;  %vm812_vm4 = vcmask 64544   ;;  %vm1005_vm5 = vcmask 162944   ;;  %vm1198_vm6 = vcmask 261344   ;;  %vm1391_vm7 = vcmask 97344  }
   0xe   : > { %s5680_s9 = smov (!%p177_p4, %s3509_s9), 1  ;;  %s3522_s20 = smov 4   ;;  %vm1584_vm8 = vcmask 195744   ;;  %vm1777_vm9 = vcmask 294144   ;;  %vm1847_vm10 = vcmask 293888  }
   0xf   : > { %s3462_s13 = smul.u32 432, %s5680_s9  ;;  %s3523_s21 = smov 28  }
  0x10   : > { %s3524_s22 = smov 20   ;;  %s3525_s23 = smov 8  }
  0x11   : > { %s3566_s16 = scalar_lea.vmem %s5502_s0, %s3462_s13  ;;  %s3526_s24 = smov 32  }
  0x12   : > { %v3569_v0 = vld [vmem:[%s3566_s16 + $0x30] sm:$0xff]  ;;  %v3572_v1 = vld [vmem:[%s3566_s16 + $0x18] sm:$0xff]  ;;  %v3579_v2 = vld [vmem:[%s3566_s16 + $0x48] sm:$0xff]  ;;  %s3451_s7 = sshll.u32 %s5680_s9, 8 }
  0x13   : > { %333 = vrot.lane.b32.xlu1 %v3569_v0, %s3519_s17  ;;  %329 = vrot.lane.b32.xlu0 %v3572_v1, %s3519_s17  ;;  %v3584_v3 = vld [vmem:[%s3566_s16 + $0x38] sm:$0xff]  ;;  %v3587_v4 = vld [vmem:[%s3566_s16 + $0x20] sm:$0xff]  ;;  %234 = vst.msk [vmem:[#allocation2 + $0x10] sm:$0xff] %vm231_vm0, %v3572_v1  ;;  %s5332_s14 = scalar_lea.vmem %s5504_s2, %s3451_s7 }
  0x14   : > { %337 = vrot.lane.b32.xlu2 %v3579_v2, %s3519_s17  ;;  %v3594_v5 = vld [vmem:[%s3566_s16 + $0x50] sm:$0xff]  ;;  %v3599_v6 = vld [vmem:[%s3566_s16 + $0x68] sm:$0xff]  ;;  %v3602_v7 = vld [vmem:[%s3566_s16 + $0x60] sm:$0xff]  ;;  %236 = vst.msk [vmem:[#allocation2 + $0x20] sm:$0xff] %vm231_vm0, %v3569_v0 }
  0x15   : > { %v3609_v8 = vld [vmem:[%s3566_s16 + $0x78] sm:$0xff]  ;;  %v3614_v9 = vld [vmem:[%s3566_s16 + $0x90] sm:$0xff]  ;;  %v3617_v10 = vld [vmem:[%s3566_s16 + $0x80] sm:$0xff]  ;;  %235 = vst.msk [vmem:[#allocation2 + $0x18] sm:$0xff] %vm231_vm0, %v3587_v4 }
  0x16   : > { %v3624_v11 = vld [vmem:[%s3566_s16 + $0x98] sm:$0xff]  ;;  %v3629_v12 = vld [vmem:[%s3566_s16 + $0xb0] sm:$0xff]  ;;  %v3632_v13 = vld [vmem:[%s3566_s16 + $0xa8] sm:$0xff]  ;;  %237 = vst.msk [vmem:[#allocation2 + $0x28] sm:$0xff] %vm231_vm0, %v3584_v3 }
  0x17   : > { %v3639_v14 = vld [vmem:[%s3566_s16 + $0xc0] sm:$0xff]  ;;  %v3644_v15 = vld [vmem:[%s3566_s16 + $0xd8] sm:$0xff]  ;;  %v3647_v16 = vld [vmem:[%s3566_s16 + $0xc8] sm:$0xff]  ;;  %239 = vst.msk [vmem:[#allocation2 + $0x38] sm:$0xff] %vm231_vm0, %v3594_v5 }
  0x18   : > { %v3654_v17 = vld [vmem:[%s3566_s16 + $0xe0] sm:$0xff]  ;;  %v3659_v18 = vld [vmem:[%s3566_s16 + $0xf8] sm:$0xff]  ;;  %v3662_v19 = vld [vmem:[%s3566_s16 + $0xf0] sm:$0xff]  ;;  %238 = vst.msk [vmem:[#allocation2 + $0x30] sm:$0xff] %vm231_vm0, %v3579_v2 }
  0x19   : > { %v3669_v20 = vld [vmem:[%s3566_s16 + $0x108] sm:$0xff]  ;;  %v3674_v21 = vld [vmem:[%s3566_s16 + $0x120] sm:$0xff]  ;;  %v3677_v22 = vld [vmem:[%s3566_s16 + $0x110] sm:$0xff]  ;;  %240 = vst.msk [vmem:[#allocation2 + $0x40] sm:$0xff] %vm231_vm0, %v3602_v7 }
  0x1a   : > { %v3684_v23 = vld [vmem:[%s3566_s16 + $0x128] sm:$0xff]  ;;  %v3689_v24 = vld [vmem:[%s3566_s16 + $0x140] sm:$0xff]  ;;  %v3692_v25 = vld [vmem:[%s3566_s16 + $0x138] sm:$0xff]  ;;  %242 = vst.msk [vmem:[#allocation2 + $0x50] sm:$0xff] %vm231_vm0, %v3609_v8 }
  0x1b   : > { %335 = vrot.lane.b32.xlu1 %v3584_v3, %s3519_s17  ;;  %331 = vrot.lane.b32.xlu0 %v3587_v4, %s3519_s17  ;;  %v3699_v26 = vld [vmem:[%s3566_s16 + $0x150] sm:$0xff]  ;;  %v3704_v27 = vld [vmem:[%s3566_s16 + $0x168] sm:$0xff]  ;;  %241 = vst.msk [vmem:[#allocation2 + $0x48] sm:$0xff] %vm231_vm0, %v3599_v6 }
  0x1c   : > { %339 = vrot.lane.b32.xlu2 %v3594_v5, %s3519_s17  ;;  %v3707_v28 = vld [vmem:[%s3566_s16 + $0x158] sm:$0xff]  ;;  %v3714_v29 = vld [vmem:[%s3566_s16 + $0x170] sm:$0xff]  ;;  %v3719_v30 = vld [vmem:[%s3566_s16 + $0x188] sm:$0xff]  ;;  %243 = vst.msk [vmem:[#allocation2 + $0x58] sm:$0xff] %vm231_vm0, %v3617_v10 }
  0x1d   : > { %v3722_v31 = vld [vmem:[%s3566_s16 + $0x180] sm:$0xff]  ;;  %v200_v33 = vld [vmem:[%s3566_s16 + $0x8] sm:$0xff]  ;;  %245 = vst.msk [vmem:[#allocation2 + $0x68] sm:$0xff] %vm231_vm0, %v3624_v11  ;;  %v3319_v55 = vld [vmem:[%s3566_s16 + $0x198] sm:$0xff] }
  0x1e   : > { %v199_v32 = vld [vmem:[%s3566_s16] sm:$0xff]  ;;  %233 = vst.msk [vmem:[#allocation2 + $0x8] sm:$0xff] %vm231_vm0, %v200_v33  ;;  %v3886_v61 = vld [vmem:[%s3566_s16 + $0xf1] sm:$0xff] }
  0x1f   : > { %232 = vst.msk [vmem:[#allocation2] sm:$0xff] %vm231_vm0, %v199_v32  ;;  %v3878_v58 = vld [vmem:[%s3566_s16 + $0xd9] sm:$0xff]  ;;  %v668_v59 = vld [vmem:[%s3566_s16 + $0xc1] sm:$0xff] }
  0x20   : > { %244 = vst.msk [vmem:[#allocation2 + $0x60] sm:$0xff] %vm231_vm0, %v3614_v9  ;;  %v1247_v1 = vld [vmem:[%s3566_s16 + $0xc2] sm:$0xff] }
  0x21   : > { %246 = vst.msk [vmem:[#allocation2 + $0x70] sm:$0xff] %vm231_vm0, %v3632_v13 }
  0x22   : > { %248 = vst.msk [vmem:[#allocation2 + $0x80] sm:$0xff] %vm231_vm0, %v3639_v14 }
  0x23   : > { %343 = vrot.lane.b32.xlu1 %v3599_v6, %s3519_s17  ;;  %341 = vrot.lane.b32.xlu0 %v3602_v7, %s3519_s17  ;;  %247 = vst.msk [vmem:[#allocation2 + $0x78] sm:$0xff] %vm231_vm0, %v3629_v12 }
  0x24   : > { %345 = vrot.lane.b32.xlu2 %v3609_v8, %s3519_s17  ;;  %249 = vst.msk [vmem:[#allocation2 + $0x88] sm:$0xff] %vm231_vm0, %v3647_v16 }
  0x25   : > { %251 = vst.msk [vmem:[#allocation2 + $0x98] sm:$0xff] %vm231_vm0, %v3654_v17 }
  0x26   : > { %250 = vst.msk [vmem:[#allocation2 + $0x90] sm:$0xff] %vm231_vm0, %v3644_v15 }
  0x27   : > { %252 = vst.msk [vmem:[#allocation2 + $0xa0] sm:$0xff] %vm231_vm0, %v3662_v19 }
  0x28   : > { %254 = vst.msk [vmem:[#allocation2 + $0xb0] sm:$0xff] %vm231_vm0, %v3669_v20 }
  0x29   : > { %253 = vst.msk [vmem:[#allocation2 + $0xa8] sm:$0xff] %vm231_vm0, %v3659_v18 }
  0x2a   : > { %255 = vst.msk [vmem:[#allocation2 + $0xb8] sm:$0xff] %vm231_vm0, %v3677_v22 }
  0x2b   : > { %349 = vrot.lane.b32.xlu1 %v3614_v9, %s3519_s17  ;;  %347 = vrot.lane.b32.xlu0 %v3617_v10, %s3519_s17  ;;  %257 = vst.msk [vmem:[#allocation2 + $0xc8] sm:$0xff] %vm231_vm0, %v3684_v23 }
  0x2c   : > { %351 = vrot.lane.b32.xlu2 %v3624_v11, %s3519_s17  ;;  %256 = vst.msk [vmem:[#allocation2 + $0xc0] sm:$0xff] %vm231_vm0, %v3674_v21 }
  0x2d   : > { %258 = vst.msk [vmem:[#allocation2 + $0xd0] sm:$0xff] %vm231_vm0, %v3692_v25 }
  0x2e   : > { %260 = vst.msk [vmem:[#allocation2 + $0xe0] sm:$0xff] %vm231_vm0, %v3699_v26 }
  0x2f   : > { %259 = vst.msk [vmem:[#allocation2 + $0xd8] sm:$0xff] %vm231_vm0, %v3689_v24 }
  0x30   : > { %261 = vst.msk [vmem:[#allocation2 + $0xe8] sm:$0xff] %vm231_vm0, %v3707_v28 }
  0x31   : > { %263 = vst.msk [vmem:[#allocation2 + $0xf8] sm:$0xff] %vm231_vm0, %v3714_v29 }
  0x32   : > { %262 = vst.msk [vmem:[#allocation2 + $0xf0] sm:$0xff] %vm231_vm0, %v3704_v27 }
  0x33   : > { %355 = vrot.lane.b32.xlu1 %v3629_v12, %s3519_s17  ;;  %353 = vrot.lane.b32.xlu0 %v3632_v13, %s3519_s17 }
  0x34   : > { %357 = vrot.lane.b32.xlu2 %v3639_v14, %s3519_s17 }
  0x3b   : > { %361 = vrot.lane.b32.xlu1 %v3644_v15, %s3519_s17  ;;  %359 = vrot.lane.b32.xlu0 %v3647_v16, %s3519_s17 }
  0x3c   : > { %363 = vrot.lane.b32.xlu2 %v3654_v17, %s3519_s17 }
  0x43   : > { %367 = vrot.lane.b32.xlu1 %v3659_v18, %s3519_s17  ;;  %365 = vrot.lane.b32.xlu0 %v3662_v19, %s3519_s17 }
  0x44   : > { %369 = vrot.lane.b32.xlu2 %v3669_v20, %s3519_s17 }
  0x4b   : > { %373 = vrot.lane.b32.xlu1 %v3674_v21, %s3519_s17  ;;  %371 = vrot.lane.b32.xlu0 %v3677_v22, %s3519_s17 }
  0x4c   : > { %375 = vrot.lane.b32.xlu2 %v3684_v23, %s3519_s17 }
  0x53   : > { %379 = vrot.lane.b32.xlu1 %v3689_v24, %s3519_s17  ;;  %377 = vrot.lane.b32.xlu0 %v3692_v25, %s3519_s17 }
  0x54   : > { %381 = vrot.lane.b32.xlu2 %v3699_v26, %s3519_s17 }
  0x5b   : > { %385 = vrot.lane.b32.xlu1 %v3704_v27, %s3519_s17  ;;  %383 = vrot.lane.b32.xlu0 %v3707_v28, %s3519_s17 }
  0x5c   : > { %387 = vrot.lane.b32.xlu2 %v3714_v29, %s3519_s17 }
  0x63   : > { %391 = vrot.lane.b32.xlu1 %v3719_v30, %s3519_s17  ;;  %389 = vrot.lane.b32.xlu0 %v3722_v31, %s3519_s17 }
  0x64   : > { %523 = vrot.lane.b32.xlu2 %v3569_v0, %s3520_s18  ;;  %v3893_v0 = vld [vmem:[%s3566_s16 + $0xda] sm:$0xff] }
  0x6b   : > { %527 = vrot.lane.b32.xlu1 %v3579_v2, %s3520_s18  ;;  %525 = vrot.lane.b32.xlu0 %v3584_v3, %s3520_s18  ;;  %v3901_v3 = vld [vmem:[%s3566_s16 + $0xf2] sm:$0xff] }
  0x6c   : > { %529 = vrot.lane.b32.xlu2 %v3594_v5, %s3520_s18 }
  0x6e   : > { %v338_v34 = vpop.permute.xlu2 %337 }
  0x6f   : > { %430 = vst.msk [vmem:[#allocation2 + $0x20] sm:$0xff] %vm425_vm1, %v338_v34  ;;  %v3977_v34 = vld [vmem:[%s3566_s16 + $0x21] sm:$0xff] }
  0x73   : > { %533 = vrot.lane.b32.xlu1 %v3599_v6, %s3520_s18  ;;  %531 = vrot.lane.b32.xlu0 %v3602_v7, %s3520_s18  ;;  %v3908_v6 = vld [vmem:[%s3566_s16 + $0xe1] sm:$0xff]  ;;  %v669_v7 = vld [vmem:[%s3566_s16 + $0xc9] sm:$0xff] }
  0x74   : > { %535 = vrot.lane.b32.xlu2 %v3609_v8, %s3520_s18 }
  0x76   : > { %v340_v35 = vpop.permute.xlu2 %339 }
  0x77   : > { %431 = vst.msk [vmem:[#allocation2 + $0x28] sm:$0xff] %vm425_vm1, %v340_v35  ;;  %v3980_v35 = vld [vmem:[%s3566_s16 + $0x109] sm:$0xff] }
  0x7b   : > { %539 = vrot.lane.b32.xlu1 %v3614_v9, %s3520_s18  ;;  %537 = vrot.lane.b32.xlu0 %v3617_v10, %s3520_s18  ;;  %v652_v9 = vld [vmem:[%s3566_s16 + $0x1] sm:$0xff] }
  0x7c   : > { %541 = vrot.lane.b32.xlu2 %v3624_v11, %s3520_s18 }
  0x7e   : > { %v346_v36 = vpop.permute.xlu2 %345 }
  0x7f   : > { %434 = vst.msk [vmem:[#allocation2 + $0x40] sm:$0xff] %vm425_vm1, %v346_v36 }
  0x83   : > { %545 = vrot.lane.b32.xlu1 %v3629_v12, %s3520_s18  ;;  %543 = vrot.lane.b32.xlu0 %v3632_v13, %s3520_s18  ;;  %v3920_v12 = vld [vmem:[%s3566_s16 + $0x19] sm:$0xff] }
  0x84   : > { %547 = vrot.lane.b32.xlu2 %v3639_v14, %s3520_s18  ;;  %v3923_v13 = vld [vmem:[%s3566_s16 + $0xf9] sm:$0xff] }
  0x85   : > { %v334_v37 = vpop.permute.xlu1 %333  ;;  %v330_v38 = vpop.permute.xlu0 %329 }
  0x86   : > { %428 = vst.msk [vmem:[#allocation2 + $0x10] sm:$0xff] %vm425_vm1, %v334_v37  ;;  %v352_v39 = vpop.permute.xlu2 %351 }
  0x87   : > { %426 = vst.msk [vmem:[#allocation2] sm:$0xff] %vm425_vm1, %v330_v38 }
  0x88   : > { %437 = vst.msk [vmem:[#allocation2 + $0x58] sm:$0xff] %vm425_vm1, %v352_v39  ;;  %v3992_v39 = vld [vmem:[%s3566_s16 + $0x39] sm:$0xff] }
  0x8b   : > { %551 = vrot.lane.b32.xlu1 %v3644_v15, %s3520_s18  ;;  %549 = vrot.lane.b32.xlu0 %v3647_v16, %s3520_s18  ;;  %v1248_v15 = vld [vmem:[%s3566_s16 + $0xca] sm:$0xff] }
  0x8c   : > { %553 = vrot.lane.b32.xlu2 %v3654_v17, %s3520_s18 }
  0x8d   : > { %v336_v40 = vpop.permute.xlu1 %335  ;;  %v332_v41 = vpop.permute.xlu0 %331 }
  0x8e   : > { %429 = vst.msk [vmem:[#allocation2 + $0x18] sm:$0xff] %vm425_vm1, %v336_v40  ;;  %v358_v42 = vpop.permute.xlu2 %357 }
  0x8f   : > { %427 = vst.msk [vmem:[#allocation2 + $0x8] sm:$0xff] %vm425_vm1, %v332_v41  ;;  %v1232_v41 = vld [vmem:[%s3566_s16 + $0xa] sm:$0xff] }
  0x90   : > { %440 = vst.msk [vmem:[#allocation2 + $0x70] sm:$0xff] %vm425_vm1, %v358_v42 }
  0x93   : > { %557 = vrot.lane.b32.xlu1 %v3659_v18, %s3520_s18  ;;  %555 = vrot.lane.b32.xlu0 %v3662_v19, %s3520_s18  ;;  %v3935_v18 = vld [vmem:[%s3566_s16 + $0xe2] sm:$0xff]  ;;  %v3938_v19 = vld [vmem:[%s3566_s16 + $0x31] sm:$0xff] }
  0x94   : > { %559 = vrot.lane.b32.xlu2 %v3669_v20, %s3520_s18 }
  0x95   : > { %v344_v43 = vpop.permute.xlu1 %343  ;;  %v342_v44 = vpop.permute.xlu0 %341 }
  0x96   : > { %433 = vst.msk [vmem:[#allocation2 + $0x38] sm:$0xff] %vm425_vm1, %v344_v43  ;;  %v364_v45 = vpop.permute.xlu2 %363 }
  0x97   : > { %432 = vst.msk [vmem:[#allocation2 + $0x30] sm:$0xff] %vm425_vm1, %v342_v44  ;;  %v4004_v44 = vld [vmem:[%s3566_s16 + $0x22] sm:$0xff] }
  0x98   : > { %443 = vst.msk [vmem:[#allocation2 + $0x88] sm:$0xff] %vm425_vm1, %v364_v45  ;;  %v4007_v45 = vld [vmem:[%s3566_s16 + $0x10a] sm:$0xff] }
  0x9b   : > { %563 = vrot.lane.b32.xlu1 %v3674_v21, %s3520_s18  ;;  %561 = vrot.lane.b32.xlu0 %v3677_v22, %s3520_s18  ;;  %v1231_v21 = vld [vmem:[%s3566_s16 + $0x2] sm:$0xff] }
  0x9c   : > { %565 = vrot.lane.b32.xlu2 %v3684_v23, %s3520_s18 }
  0x9d   : > { %v350_v46 = vpop.permute.xlu1 %349  ;;  %v348_v47 = vpop.permute.xlu0 %347 }
  0x9e   : > { %436 = vst.msk [vmem:[#allocation2 + $0x50] sm:$0xff] %vm425_vm1, %v350_v46  ;;  %v370_v48 = vpop.permute.xlu2 %369 }
  0x9f   : > { %435 = vst.msk [vmem:[#allocation2 + $0x48] sm:$0xff] %vm425_vm1, %v348_v47  ;;  %v4015_v47 = vld [vmem:[%s3566_s16 + $0x3a] sm:$0xff] }
  0xa0   : > { %446 = vst.msk [vmem:[#allocation2 + $0xa0] sm:$0xff] %vm425_vm1, %v370_v48 }
  0xa3   : > { %569 = vrot.lane.b32.xlu1 %v3689_v24, %s3520_s18  ;;  %567 = vrot.lane.b32.xlu0 %v3692_v25, %s3520_s18  ;;  %v3950_v24 = vld [vmem:[%s3566_s16 + $0x1a] sm:$0xff] }
  0xa4   : > { %571 = vrot.lane.b32.xlu2 %v3699_v26, %s3520_s18  ;;  %v3953_v25 = vld [vmem:[%s3566_s16 + $0xfa] sm:$0xff] }
  0xa5   : > { %v356_v49 = vpop.permute.xlu1 %355  ;;  %v354_v50 = vpop.permute.xlu0 %353 }
  0xa6   : > { %439 = vst.msk [vmem:[#allocation2 + $0x68] sm:$0xff] %vm425_vm1, %v356_v49  ;;  %v376_v51 = vpop.permute.xlu2 %375 }
  0xa7   : > { %438 = vst.msk [vmem:[#allocation2 + $0x60] sm:$0xff] %vm425_vm1, %v354_v50 }
  0xa8   : > { %449 = vst.msk [vmem:[#allocation2 + $0xb8] sm:$0xff] %vm425_vm1, %v376_v51 }
  0xab   : > { %575 = vrot.lane.b32.xlu1 %v3704_v27, %s3520_s18  ;;  %573 = vrot.lane.b32.xlu0 %v3707_v28, %s3520_s18  ;;  %v3961_v27 = vld [vmem:[%s3566_s16 + $0x32] sm:$0xff] }
  0xac   : > { %577 = vrot.lane.b32.xlu2 %v3714_v29, %s3520_s18 }
  0xad   : > { %v362_v52 = vpop.permute.xlu1 %361  ;;  %v360_v53 = vpop.permute.xlu0 %359 }
  0xae   : > { %442 = vst.msk [vmem:[#allocation2 + $0x80] sm:$0xff] %vm425_vm1, %v362_v52  ;;  %v382_v54 = vpop.permute.xlu2 %381 }
  0xaf   : > { %441 = vst.msk [vmem:[#allocation2 + $0x78] sm:$0xff] %vm425_vm1, %v360_v53  ;;  %v4031_v53 = vld [vmem:[%s3566_s16 + $0x111] sm:$0xff] }
  0xb0   : > { %452 = vst.msk [vmem:[#allocation2 + $0xd0] sm:$0xff] %vm425_vm1, %v382_v54 }
  0xb3   : > { %581 = vrot.lane.b32.xlu1 %v3719_v30, %s3520_s18  ;;  %579 = vrot.lane.b32.xlu0 %v3722_v31, %s3520_s18  ;;  %v653_v31 = vld [vmem:[%s3566_s16 + $0x9] sm:$0xff] }
  0xb4   : > { %583 = vrot.lane.b32.xlu2 %v3319_v55, %s3520_s18  ;;  %v1846_v55 = vld [vmem:[%s5503_s1 + $0x20] sm:$0xf] }
  0xb5   : > { %v368_v56 = vpop.permute.xlu1 %367  ;;  %v366_v57 = vpop.permute.xlu0 %365 }
  0xb6   : > { %445 = vst.msk [vmem:[#allocation2 + $0x98] sm:$0xff] %vm425_vm1, %v368_v56  ;;  %v388_v60 = vpop.permute.xlu2 %387 }
  0xb7   : > { %444 = vst.msk [vmem:[#allocation2 + $0x90] sm:$0xff] %vm425_vm1, %v366_v57 }
  0xb8   : > { %455 = vst.msk [vmem:[#allocation2 + $0xe8] sm:$0xff] %vm425_vm1, %v388_v60  ;;  %v1845_v60 = vld [vmem:[%s5503_s1 + $0x18] sm:$0xff] }
  0xbb   : > { %941 = vrot.lane.b32.xlu1 %v3878_v58, %s3521_s19  ;;  %748 = vrot.lane.b32.xlu0 %v668_v59, %s3522_s20 }
  0xbc   : > { %1134 = vrot.lane.b32.xlu2 %v3886_v61, %s3523_s21 }
  0xbd   : > { %v374_v62 = vpop.permute.xlu1 %373  ;;  %v372_v63 = vpop.permute.xlu0 %371 }
  0xbe   : > { %448 = vst.msk [vmem:[#allocation2 + $0xb0] sm:$0xff] %vm425_vm1, %v374_v62  ;;  %v524_v2 = vpop.permute.xlu2 %523  ;;  %v4051_v62 = vld [vmem:[%s3566_s16 + $0x49] sm:$0xff] }
  0xbf   : > { %447 = vst.msk [vmem:[#allocation2 + $0xa8] sm:$0xff] %vm425_vm1, %v372_v63 }
  0xc0   : > { %620 = vst.msk [vmem:[#allocation2] sm:$0xff] %vm619_vm2, %v524_v2  ;;  %v1844_v2 = vld [vmem:[%s5503_s1 + $0x10] sm:$0xff] }
  0xc3   : > { %1520 = vrot.lane.b32.xlu1 %v3893_v0, %s3524_s22  ;;  %1327 = vrot.lane.b32.xlu0 %v1247_v1, %s3525_s23  ;;  %v4056_v1 = vand.u32 4294901760, %v1845_v60 }
  0xc4   : > { %1713 = vrot.lane.b32.xlu2 %v3901_v3, %s3526_s24 }
  0xc5   : > { %v380_v4 = vpop.permute.xlu1 %379  ;;  %v378_v5 = vpop.permute.xlu0 %377 }
  0xc6   : > { %451 = vst.msk [vmem:[#allocation2 + $0xc8] sm:$0xff] %vm425_vm1, %v380_v4  ;;  %v530_v8 = vpop.permute.xlu2 %529 }
  0xc7   : > { %450 = vst.msk [vmem:[#allocation2 + $0xc0] sm:$0xff] %vm425_vm1, %v378_v5  ;;  %v2244_v5 = vsub.f32 %v1845_v60, %v4056_v1 }
  0xc8   : > { %623 = vst.msk [vmem:[#allocation2 + $0x18] sm:$0xff] %vm619_vm2, %v530_v8 }
  0xc9   : > { %v2245_v8 = vand.u32 4294901760, %v2244_v5 }
  0xcb   : > { %943 = vrot.lane.b32.xlu1 %v3908_v6, %s3521_s19  ;;  %750 = vrot.lane.b32.xlu0 %v669_v7, %s3522_s20 }
  0xcc   : > { %716 = vrot.lane.b32.xlu2 %v652_v9, %s3522_s20 }
  0xcd   : > { %v386_v10 = vpop.permute.xlu1 %385  ;;  %v384_v11 = vpop.permute.xlu0 %383 }
  0xce   : > { %454 = vst.msk [vmem:[#allocation2 + $0xe0] sm:$0xff] %vm425_vm1, %v386_v10  ;;  %v536_v14 = vpop.permute.xlu2 %535  ;;  %v1843_v10 = vld [vmem:[%s5503_s1 + $0x8] sm:$0xff] }
  0xcf   : > { %453 = vst.msk [vmem:[#allocation2 + $0xd8] sm:$0xff] %vm425_vm1, %v384_v11 }
  0xd0   : > { %626 = vst.msk [vmem:[#allocation2 + $0x30] sm:$0xff] %vm619_vm2, %v536_v14  ;;  %v4080_v14 = vand.u32 4294901760, %v1843_v10 }
  0xd3   : > { %909 = vrot.lane.b32.xlu1 %v3920_v12, %s3521_s19  ;;  %1136 = vrot.lane.b32.xlu0 %v3923_v13, %s3523_s21 }
  0xd4   : > { %1329 = vrot.lane.b32.xlu2 %v1248_v15, %s3525_s23  ;;  %v1842_v15 = vld [vmem:[%s5503_s1] sm:$0xff] }
  0xd5   : > { %v392_v16 = vpop.permute.xlu1 %391  ;;  %v390_v17 = vpop.permute.xlu0 %389 }
  0xd6   : > { %457 = vst.msk [vmem:[#allocation2 + $0xf8] sm:$0xff] %vm425_vm1, %v392_v16  ;;  %v542_v20 = vpop.permute.xlu2 %541 }
  0xd7   : > { %456 = vst.msk [vmem:[#allocation2 + $0xf0] sm:$0xff] %vm425_vm1, %v390_v17  ;;  %v2246_v17 = vsub.f32 %v2244_v5, %v2245_v8 }
  0xd8   : > { %629 = vst.msk [vmem:[#allocation2 + $0x48] sm:$0xff] %vm619_vm2, %v542_v20  ;;  %v4089_v20 = vand.u32 4294901760, %v1842_v15 }
  0xdb   : > { %1522 = vrot.lane.b32.xlu1 %v3935_v18, %s3524_s22  ;;  %1102 = vrot.lane.b32.xlu0 %v3938_v19, %s3523_s21 }
  0xdc   : > { %1295 = vrot.lane.b32.xlu2 %v1231_v21, %s3525_s23  ;;  %v4093_v21 = vsub.f32 %v1843_v10, %v4080_v14 }
  0xdd   : > { %v528_v22 = vpop.permute.xlu1 %527  ;;  %v526_v23 = vpop.permute.xlu0 %525 }
  0xde   : > { %622 = vst.msk [vmem:[#allocation2 + $0x10] sm:$0xff] %vm619_vm2, %v528_v22  ;;  %v548_v26 = vpop.permute.xlu2 %547  ;;  %v4098_v22 = vld [vmem:[%s3566_s16 + $0x112] sm:$0xff] }
  0xdf   : > { %621 = vst.msk [vmem:[#allocation2 + $0x8] sm:$0xff] %vm619_vm2, %v526_v23 }
  0xe0   : > { %632 = vst.msk [vmem:[#allocation2 + $0x60] sm:$0xff] %vm619_vm2, %v548_v26 }
  0xe3   : > { %1488 = vrot.lane.b32.xlu1 %v3950_v24, %s3524_s22  ;;  %1715 = vrot.lane.b32.xlu0 %v3953_v25, %s3526_s24 }
  0xe4   : > { %1681 = vrot.lane.b32.xlu2 %v3961_v27, %s3526_s24 }
  0xe5   : > { %v534_v28 = vpop.permute.xlu1 %533  ;;  %v532_v29 = vpop.permute.xlu0 %531 }
  0xe6   : > { %625 = vst.msk [vmem:[#allocation2 + $0x28] sm:$0xff] %vm619_vm2, %v534_v28  ;;  %v554_v30 = vpop.permute.xlu2 %553  ;;  %v2262_v28 = vsub.f32 %v1842_v15, %v4089_v20 }
  0xe7   : > { %624 = vst.msk [vmem:[#allocation2 + $0x20] sm:$0xff] %vm619_vm2, %v532_v29  ;;  %v2257_v29 = vand.u32 4294901760, %v4093_v21 }
  0xe8   : > { %635 = vst.msk [vmem:[#allocation2 + $0x78] sm:$0xff] %vm619_vm2, %v554_v30 }
  0xeb   : > { %945 = vrot.lane.b32.xlu1 %v3886_v61, %s3521_s19  ;;  %752 = vrot.lane.b32.xlu0 %v3878_v58, %s3522_s20  ;;  %v1946_v58 = vsel %vm1944_vm3, %v1846_v55, 0  ;;  %v4167_v55 = vld [vmem:[%s3566_s16 + $0x122] sm:$0xff] }
  0xec   : > { %718 = vrot.lane.b32.xlu2 %v653_v31, %s3522_s20  ;;  %v4044_v59 = vand.u32 4294901760, %v1946_v58  ;;  %v2263_v31 = vand.u32 4294901760, %v2262_v28 }
  0xed   : > { %v540_v32 = vpop.permute.xlu1 %539  ;;  %v538_v33 = vpop.permute.xlu0 %537 }
  0xee   : > { %628 = vst.msk [vmem:[#allocation2 + $0x40] sm:$0xff] %vm619_vm2, %v540_v32  ;;  %v560_v36 = vpop.permute.xlu2 %559  ;;  %3452 = vmatpush.msra.mxu2 %v4044_v59  ;;  %1960 = vmatpush.msra.mxu0 %v4044_v59  ;;  %v4112_v32 = vld [vmem:[%s3566_s16 + $0x4a] sm:$0xff] }
  0xef   : > { %627 = vst.msk [vmem:[#allocation2 + $0x38] sm:$0xff] %vm619_vm2, %v538_v33  ;;  %v2258_v33 = vsub.f32 %v4093_v21, %v2257_v29 }
  0xf0   : > { %638 = vst.msk [vmem:[#allocation2 + $0x90] sm:$0xff] %vm619_vm2, %v560_v36  ;;  %3453 = vmatpush.msra.mxu2 %v4056_v1  ;;  %1962 = vmatpush.msra.mxu0 %v4056_v1  ;;  %v2264_v36 = vsub.f32 %v2262_v28, %v2263_v31 }
  0xf3   : > { %911 = vrot.lane.b32.xlu1 %v3977_v34, %s3521_s19  ;;  %1138 = vrot.lane.b32.xlu0 %v3980_v35, %s3523_s21 }
  0xf4   : > { %1331 = vrot.lane.b32.xlu2 %v3893_v0, %s3525_s23  ;;  %v2238_v0 = vsub.f32 %v1946_v58, %v4044_v59 }
  0xf5   : > { %v546_v37 = vpop.permute.xlu1 %545  ;;  %v544_v38 = vpop.permute.xlu0 %543 }
  0xf6   : > { %631 = vst.msk [vmem:[#allocation2 + $0x58] sm:$0xff] %vm619_vm2, %v546_v37  ;;  %v566_v40 = vpop.permute.xlu2 %565  ;;  %v2239_v4 = vand.u32 4294901760, %v2238_v0 }
  0xf7   : > { %630 = vst.msk [vmem:[#allocation2 + $0x50] sm:$0xff] %vm619_vm2, %v544_v38 }
  0xf8   : > { %641 = vst.msk [vmem:[#allocation2 + $0xa8] sm:$0xff] %vm619_vm2, %v566_v40  ;;  %v2240_v7 = vsub.f32 %v2238_v0, %v2239_v4  ;;  %v2259_v40 = vand.u32 4294901760, %v2258_v33 }
  0xfa   : > { %v2241_v16 = vand.u32 4294901760, %v2240_v7  ;;  %v4203_v7 = vld [vmem:[%s3566_s16 + $0x129] sm:$0xff] }
  0xfb   : > { %1524 = vrot.lane.b32.xlu1 %v3901_v3, %s3524_s22  ;;  %1104 = vrot.lane.b32.xlu0 %v3992_v39, %s3523_s21 }
  0xfc   : > { %1297 = vrot.lane.b32.xlu2 %v1232_v41, %s3525_s23  ;;  %3457 = vmatpush.msra.mxu3 %v2241_v16  ;;  %v2265_v41 = vand.u32 4294901760, %v2264_v36 }
  0xfd   : > { %v552_v42 = vpop.permute.xlu1 %551  ;;  %v550_v43 = vpop.permute.xlu0 %549  ;;  %2242 = vmatpush.msra.mxu1 %v2241_v16 }
  0xfe   : > { %634 = vst.msk [vmem:[#allocation2 + $0x70] sm:$0xff] %vm619_vm2, %v552_v42  ;;  %v572_v46 = vpop.permute.xlu2 %571 }
  0xff   : > { %633 = vst.msk [vmem:[#allocation2 + $0x68] sm:$0xff] %vm619_vm2, %v550_v43 }
 0x100   : > { %644 = vst.msk [vmem:[#allocation2 + $0xc0] sm:$0xff] %vm619_vm2, %v572_v46 }
 0x103   : > { %1490 = vrot.lane.b32.xlu1 %v4004_v44, %s3524_s22  ;;  %1717 = vrot.lane.b32.xlu0 %v4007_v45, %s3526_s24 }
 0x104   : > { %1683 = vrot.lane.b32.xlu2 %v4015_v47, %s3526_s24 }
 0x105   : > { %v558_v48 = vpop.permute.xlu1 %557  ;;  %v556_v49 = vpop.permute.xlu0 %555 }
 0x106   : > { %637 = vst.msk [vmem:[#allocation2 + $0x88] sm:$0xff] %vm619_vm2, %v558_v48  ;;  %v578_v50 = vpop.permute.xlu2 %577 }
 0x107   : > { %636 = vst.msk [vmem:[#allocation2 + $0x80] sm:$0xff] %vm619_vm2, %v556_v49 }
 0x108   : > { %647 = vst.msk [vmem:[#allocation2 + $0xd8] sm:$0xff] %vm619_vm2, %v578_v50  ;;  %v4156_v50 = vld [vmem:[%s3566_s16 + $0x51] sm:$0xff] }
 0x10b   : > { %947 = vrot.lane.b32.xlu1 %v3923_v13, %s3521_s19  ;;  %754 = vrot.lane.b32.xlu0 %v3908_v6, %s3522_s20  ;;  %v4064_v6 = vand.u32 4294901760, %v1844_v2 }
 0x10c   : > { %720 = vrot.lane.b32.xlu2 %v3920_v12, %s3522_s20 }
 0x10d   : > { %v564_v51 = vpop.permute.xlu1 %563  ;;  %v562_v52 = vpop.permute.xlu0 %561  ;;  %v4073_v9 = vsub.f32 %v1844_v2, %v4064_v6  ;;  %3454 = vmatpush.msra.mxu2 %v4064_v6  ;;  %1964 = vmatpush.msra.mxu0 %v4064_v6 }
 0x10e   : > { %640 = vst.msk [vmem:[#allocation2 + $0xa0] sm:$0xff] %vm619_vm2, %v564_v51  ;;  %v584_v54 = vpop.permute.xlu2 %583 }
 0x10f   : > { %639 = vst.msk [vmem:[#allocation2 + $0x98] sm:$0xff] %vm619_vm2, %v562_v52  ;;  %3455 = vmatpush.msra.mxu2 %v4080_v14  ;;  %1966 = vmatpush.msra.mxu0 %v4080_v14 }
 0x110   : > { %650 = vst.msk [vmem:[#allocation2 + $0xf0] sm:$0xff] %vm619_vm2, %v584_v54 }
 0x111   : > { %3456 = vmatpush.msra.mxu2 %v4089_v20  ;;  %1968 = vmatpush.msra.mxu0 %v4089_v20 }
 0x113   : > { %913 = vrot.lane.b32.xlu1 %v3938_v19, %s3521_s19  ;;  %1140 = vrot.lane.b32.xlu0 %v4031_v53, %s3523_s21 }
 0x114   : > { %1333 = vrot.lane.b32.xlu2 %v3935_v18, %s3525_s23  ;;  %v2251_v18 = vand.u32 4294901760, %v4073_v9  ;;  %2409 = vmatpush.msrb.mxu2 %v2238_v0 }
 0x115   : > { %v570_v56 = vpop.permute.xlu1 %569  ;;  %v568_v57 = vpop.permute.xlu0 %567  ;;  %2811 = vmatpush.msrb.mxu0 %v2239_v4 }
 0x116   : > { %643 = vst.msk [vmem:[#allocation2 + $0xb8] sm:$0xff] %vm619_vm2, %v570_v56  ;;  %v4053_v63 = vpop.permute.xlu2 %1134  ;;  %v2252_v26 = vsub.f32 %v4073_v9, %v2251_v18  ;;  %2412 = vmatpush.msrb.mxu2 %v2244_v5 }
 0x117   : > { %642 = vst.msk [vmem:[#allocation2 + $0xb0] sm:$0xff] %vm619_vm2, %v568_v57  ;;  %2815 = vmatpush.msrb.mxu0 %v2245_v8 }
 0x118   : > { %v2253_v30 = vand.u32 4294901760, %v2252_v26  ;;  %2415 = vmatpush.msrb.mxu2 %v4073_v9 }
 0x119   : > { %2819 = vmatpush.msrb.mxu0 %v2251_v18 }
 0x11a   : > { %2418 = vmatpush.msrb.mxu2 %v4093_v21 }
 0x11b   : > { %1526 = vrot.lane.b32.xlu1 %v3953_v25, %s3524_s22  ;;  %1106 = vrot.lane.b32.xlu0 %v4051_v62, %s3523_s21 }
 0x11c   : > { %1299 = vrot.lane.b32.xlu2 %v3950_v24, %s3525_s23  ;;  %v2247_v24 = vand.u32 4294901760, %v2246_v17  ;;  %2823 = vmatpush.msrb.mxu0 %v2257_v29  ;;  %v4229_v17 = vld [vmem:[%s3566_s16 + $0x12a] sm:$0xff] }
 0x11d   : > { %v576_v11 = vpop.permute.xlu1 %575  ;;  %v574_v12 = vpop.permute.xlu0 %573  ;;  %2421 = vmatpush.msrb.mxu2 %v2262_v28 }
 0x11e   : > { %646 = vst.msk [vmem:[#allocation2 + $0xd0] sm:$0xff] %vm619_vm2, %v576_v11  ;;  %v4100_v23 = vpop.permute.xlu2 %1713  ;;  %3458 = vmatpush.msra.mxu3 %v2247_v24  ;;  %2248 = vmatpush.msra.mxu1 %v2247_v24  ;;  %v4246_v24 = vld [vmem:[%s3566_s16 + $0x62] sm:$0xff] }
 0x11f   : > { %645 = vst.msk [vmem:[#allocation2 + $0xc8] sm:$0xff] %vm619_vm2, %v574_v12  ;;  %2827 = vmatpush.msrb.mxu0 %v2263_v31 }
 0x120   : > { %3459 = vmatpush.msra.mxu3 %v2253_v30  ;;  %2254 = vmatpush.msra.mxu1 %v2253_v30 }
 0x122   : > { %3460 = vmatpush.msra.mxu3 %v2259_v40  ;;  %2260 = vmatpush.msra.mxu1 %v2259_v40 }
 0x123   : > { %1492 = vrot.lane.b32.xlu1 %v3961_v27, %s3524_s22  ;;  %1719 = vrot.lane.b32.xlu0 %v4098_v22, %s3526_s24 }
 0x124   : > { %1685 = vrot.lane.b32.xlu2 %v4112_v32, %s3526_s24  ;;  %3461 = vmatpush.msra.mxu3 %v2265_v41 }
 0x125   : > { %v582_v37 = vpop.permute.xlu1 %581  ;;  %v580_v38 = vpop.permute.xlu0 %579  ;;  %2266 = vmatpush.msra.mxu1 %v2265_v41 }
 0x126   : > { %649 = vst.msk [vmem:[#allocation2 + $0xe8] sm:$0xff] %vm619_vm2, %v582_v37  ;;  %v717_v42 = vpop.permute.xlu2 %716  ;;  %2595 = vmatpush.msrb.mxu3 %v4044_v59 }
 0x127   : > { %648 = vst.msk [vmem:[#allocation2 + $0xe0] sm:$0xff] %vm619_vm2, %v580_v38  ;;  %2969 = vmatpush.msrb.mxu1 %v4044_v59 }
 0x128   : > { %813 = vst.msk [vmem:[#allocation2] sm:$0xff] %vm812_vm4, %v717_v42  ;;  %2597 = vmatpush.msrb.mxu3 %v4056_v1 }
 0x129   : > { %2971 = vmatpush.msrb.mxu1 %v4056_v1 }
 0x12a   : > { %2599 = vmatpush.msrb.mxu3 %v4064_v6 }
 0x12b   : > { %949 = vrot.lane.b32.xlu1 %v3980_v35, %s3521_s19  ;;  %756 = vrot.lane.b32.xlu0 %v3886_v61, %s3522_s20  ;;  %v4139_v61 = vld [vmem:[%s3566_s16 + $0x121] sm:$0xff] }
 0x12c   : > { %722 = vrot.lane.b32.xlu2 %v3977_v34, %s3522_s20  ;;  %2973 = vmatpush.msrb.mxu1 %v4064_v6 }
 0x12d   : > { %v942_v43 = vpop.permute.xlu1 %941  ;;  %v749_v46 = vpop.permute.xlu0 %748  ;;  %2601 = vmatpush.msrb.mxu3 %v4080_v14 }
 0x12e   : > { %829 = vst.msk [vmem:[#allocation2 + $0x80] sm:$0xff] %vm812_vm4, %v749_v46  ;;  %v1330_v48 = vpop.permute.xlu2 %1329  ;;  %2975 = vmatpush.msrb.mxu1 %v4080_v14 }
 0x12f   : > { %1022 = vst.msk [vmem:[#allocation2 + $0x80] sm:$0xff] %vm1005_vm5, %v942_v43  ;;  %2603 = vmatpush.msrb.mxu3 %v4089_v20  ;;  %v4273_v43 = vld [vmem:[%s3566_s16 + $0x139] sm:$0xff] }
 0x130   : > { %1215 = vst.msk [vmem:[#allocation2 + $0x80] sm:$0xff] %vm1198_vm6, %v4053_v63  ;;  %2977 = vmatpush.msrb.mxu1 %v4089_v20 }
 0x133   : > { %915 = vrot.lane.b32.xlu1 %v3992_v39, %s3521_s19  ;;  %1142 = vrot.lane.b32.xlu0 %v4139_v61, %s3523_s21 }
 0x134   : > { %1335 = vrot.lane.b32.xlu2 %v3901_v3, %s3525_s23 }
 0x135   : > { %v1521_v34 = vpop.permute.xlu1 %1520  ;;  %v1328_v49 = vpop.permute.xlu0 %1327 }
 0x136   : > { %1408 = vst.msk [vmem:[#allocation2 + $0x80] sm:$0xff] %vm1391_vm7, %v1328_v49  ;;  %v1296_v51 = vpop.permute.xlu2 %1295 }
 0x137   : > { %1601 = vst.msk [vmem:[#allocation2 + $0x80] sm:$0xff] %vm1584_vm8, %v1521_v34 }
 0x138   : > { %1794 = vst.msk [vmem:[#allocation2 + $0x80] sm:$0xff] %vm1777_vm9, %v4100_v23 }
 0x13b   : > { %1528 = vrot.lane.b32.xlu1 %v4007_v45, %s3524_s22  ;;  %1108 = vrot.lane.b32.xlu0 %v4156_v50, %s3523_s21 }
 0x13c   : > { %1301 = vrot.lane.b32.xlu2 %v4004_v44, %s3525_s23  ;;  %v4180_v44 = vld [vmem:[%s3566_s16 + $0x52] sm:$0xff] }
 0x13d   : > { %v944_v52 = vpop.permute.xlu1 %943  ;;  %v751_v54 = vpop.permute.xlu0 %750 }
 0x13e   : > { %830 = vst.msk [vmem:[#allocation2 + $0x88] sm:$0xff] %vm812_vm4, %v751_v54  ;;  %v1682_v57 = vpop.permute.xlu2 %1681 }
 0x13f   : > { %1023 = vst.msk [vmem:[#allocation2 + $0x88] sm:$0xff] %vm1005_vm5, %v944_v52  ;;  %v1826_v3 = vld [vmem:[#allocation2 + $0x80] sm:$0xff] }
 0x140   : > { %v1897_v56 = vsel %vm1847_vm10, %v1826_v3, 0 }
 0x141   : > { %v4170_v58 = vand.u32 4294901760, %v1897_v56 }
 0x143   : > { %1494 = vrot.lane.b32.xlu1 %v4015_v47, %s3524_s22  ;;  %1721 = vrot.lane.b32.xlu0 %v4167_v55, %s3526_s24  ;;  %v4177_v59 = vsub.f32 %v1897_v56, %v4170_v58 }
 0x144   : > { %2332 = vmatmul.f32.vlgmr.msra.gmra.mxu3 %v4170_v58  ;;  %1687 = vrot.lane.b32.xlu2 %v4180_v44, %s3526_s24 }
 0x145   : > { %v910_v60 = vpop.permute.xlu1 %909  ;;  %v1137_v63 = vpop.permute.xlu0 %1136  ;;  %v5512_v0 = vand.u32 4294901760, %v4177_v59 }
 0x146   : > { %1006 = vst.msk [vmem:[#allocation2] sm:$0xff] %vm1005_vm5, %v910_v60  ;;  %v719_v2 = vpop.permute.xlu2 %718 }
 0x147   : > { %1216 = vst.msk [vmem:[#allocation2 + $0x88] sm:$0xff] %vm1198_vm6, %v1137_v63  ;;  %v2100_v1 = vsub.f32 %v4177_v59, %v5512_v0 }
 0x148   : > { %1409 = vst.msk [vmem:[#allocation2 + $0x88] sm:$0xff] %vm1391_vm7, %v1330_v48  ;;  %v4285_v48 = vld [vmem:[%s3566_s16 + $0x69] sm:$0xff] }
 0x149   : > { %v2101_v4 = vand.u32 4294901760, %v2100_v1  ;;  %814 = vst.msk [vmem:[#allocation2 + $0x8] sm:$0xff] %vm812_vm4, %v719_v2  ;;  %v4315_v1 = vld [vmem:[%s3566_s16 + $0x6a] sm:$0xff] }
 0x14b   : > { %951 = vrot.lane.b32.xlu1 %v4031_v53, %s3521_s19  ;;  %758 = vrot.lane.b32.xlu0 %v3923_v13, %s3522_s20 }
 0x14c   : > { %2102 = vmatmul.f32.vlgmr.msra.gmra.mxu2 %v2101_v4  ;;  %724 = vrot.lane.b32.xlu2 %v3938_v19, %s3522_s20  ;;  %v4215_v19 = vld [vmem:[%s3566_s16 + $0x61] sm:$0xff] }
 0x14d   : > { %v1523_v5 = vpop.permute.xlu1 %1522  ;;  %v1103_v6 = vpop.permute.xlu0 %1102 }
 0x14e   : > { %1602 = vst.msk [vmem:[#allocation2 + $0x88] sm:$0xff] %vm1584_vm8, %v1523_v5  ;;  %v1332_v8 = vpop.permute.xlu2 %1331 }
 0x14f   : > { %1199 = vst.msk [vmem:[#allocation2] sm:$0xff] %vm1198_vm6, %v1103_v6 }
 0x150   : > { %1392 = vst.msk [vmem:[#allocation2] sm:$0xff] %vm1391_vm7, %v1296_v51 }
 0x153   : > { %917 = vrot.lane.b32.xlu1 %v4051_v62, %s3521_s19  ;;  %1144 = vrot.lane.b32.xlu0 %v4203_v7, %s3523_s21 }
 0x154   : > { %1337 = vrot.lane.b32.xlu2 %v3953_v25, %s3525_s23 }
 0x155   : > { %v1489_v13 = vpop.permute.xlu1 %1488  ;;  %v1716_v9 = vpop.permute.xlu0 %1715 }
 0x156   : > { %1585 = vst.msk [vmem:[#allocation2] sm:$0xff] %vm1584_vm8, %v1489_v13  ;;  %v1298_v10 = vpop.permute.xlu2 %1297 }
 0x157   : > { %1795 = vst.msk [vmem:[#allocation2 + $0x88] sm:$0xff] %vm1777_vm9, %v1716_v9 }
 0x158   : > { %1778 = vst.msk [vmem:[#allocation2] sm:$0xff] %vm1777_vm9, %v1682_v57  ;;  %v4300_v57 = vld [vmem:[%s3566_s16 + $0x13a] sm:$0xff] }
 0x15b   : > { %1530 = vrot.lane.b32.xlu1 %v4098_v22, %s3524_s22  ;;  %1110 = vrot.lane.b32.xlu0 %v4215_v19, %s3523_s21 }
 0x15c   : > { %1303 = vrot.lane.b32.xlu2 %v3961_v27, %s3525_s23 }
 0x15d   : > { %v946_v11 = vpop.permute.xlu1 %945  ;;  %v753_v12 = vpop.permute.xlu0 %752 }
 0x15e   : > { %831 = vst.msk [vmem:[#allocation2 + $0x90] sm:$0xff] %vm812_vm4, %v753_v12  ;;  %v1827_v25 = vld [vmem:[#allocation2 + $0x88] sm:$0xff]  ;;  %v1684_v20 = vpop.permute.xlu2 %1683 }
 0x15f   : > { %1024 = vst.msk [vmem:[#allocation2 + $0x90] sm:$0xff] %vm1005_vm5, %v946_v11  ;;  %v1900_v14 = vsel %vm1847_vm10, %v1827_v25, 0  ;;  %v1810_v15 = vld [vmem:[#allocation2] sm:$0xff] }
 0x160   : > { %v4226_v16 = vand.u32 4294901760, %v1900_v14  ;;  %v1849_v18 = vsel %vm1847_vm10, %v1810_v15, 0  ;;  %v4343_v15 = vld [vmem:[%s3566_s16 + $0x141] sm:$0xff] }
 0x161   : > { %v4232_v21 = vand.u32 4294901760, %v1849_v18 }
 0x162   : > { %2336 = vmatmul.f32.gmra.mxu3 %v4226_v16  ;;  %v4236_v23 = vsub.f32 %v1900_v14, %v4226_v16 }
 0x163   : > { %1496 = vrot.lane.b32.xlu1 %v4112_v32, %s3524_s22  ;;  %1723 = vrot.lane.b32.xlu0 %v4229_v17, %s3526_s24  ;;  %v4243_v27 = vsub.f32 %v1849_v18, %v4232_v21 }
 0x164   : > { %2268 = vmatmul.f32.vlgmr.msra.gmra.mxu1 %v4232_v21  ;;  %v5510_v26 = vand.u32 4294901760, %v4236_v23  ;;  %1689 = vrot.lane.b32.xlu2 %v4246_v24, %s3526_s24 }
 0x165   : > { %v912_v28 = vpop.permute.xlu1 %911  ;;  %v1139_v29 = vpop.permute.xlu0 %1138  ;;  %v5521_v30 = vand.u32 4294901760, %v4243_v27 }
 0x166   : > { %1007 = vst.msk [vmem:[#allocation2 + $0x8] sm:$0xff] %vm1005_vm5, %v912_v28  ;;  %v2108_v31 = vsub.f32 %v4236_v23, %v5510_v26  ;;  %v721_v37 = vpop.permute.xlu2 %720 }
 0x167   : > { %1217 = vst.msk [vmem:[#allocation2 + $0x90] sm:$0xff] %vm1198_vm6, %v1139_v29  ;;  %v1972_v33 = vsub.f32 %v4243_v27, %v5521_v30 }
 0x168   : > { %1410 = vst.msk [vmem:[#allocation2 + $0x90] sm:$0xff] %vm1391_vm7, %v1332_v8  ;;  %v2109_v36 = vand.u32 4294901760, %v2108_v31 }
 0x169   : > { %v1973_v38 = vand.u32 4294901760, %v1972_v33  ;;  %815 = vst.msk [vmem:[#allocation2 + $0x10] sm:$0xff] %vm812_vm4, %v721_v37 }
 0x16a   : > { %2110 = vmatmul.f32.gmra.mxu2 %v2109_v36 }
 0x16b   : > { %1974 = vmatmul.f32.vlgmr.msra.gmra.mxu0 %v1973_v38  ;;  %953 = vrot.lane.b32.xlu1 %v4139_v61, %s3521_s19 }
 0x16c   : > { %760 = vrot.lane.b32.xlu0 %v3980_v35, %s3522_s20  ;;  %726 = vrot.lane.b32.xlu2 %v3992_v39, %s3522_s20 }
 0x16d   : > { %v1525_v40 = vpop.permute.xlu1 %1524  ;;  %v1105_v41 = vpop.permute.xlu0 %1104 }
 0x16e   : > { %1603 = vst.msk [vmem:[#allocation2 + $0x90] sm:$0xff] %vm1584_vm8, %v1525_v40  ;;  %v1334_v42 = vpop.permute.xlu2 %1333  ;;  %v4370_v40 = vld [vmem:[%s3566_s16 + $0x142] sm:$0xff] }
 0x16f   : > { %1200 = vst.msk [vmem:[#allocation2 + $0x8] sm:$0xff] %vm1198_vm6, %v1105_v41 }
 0x170   : > { %1393 = vst.msk [vmem:[#allocation2 + $0x8] sm:$0xff] %vm1391_vm7, %v1298_v10 }
 0x173   : > { %919 = vrot.lane.b32.xlu1 %v4156_v50, %s3521_s19 }
 0x174   : > { %1146 = vrot.lane.b32.xlu0 %v4273_v43, %s3523_s21  ;;  %1339 = vrot.lane.b32.xlu2 %v4007_v45, %s3525_s23 }
 0x175   : > { %v1491_v35 = vpop.permute.xlu1 %1490  ;;  %v1718_v46 = vpop.permute.xlu0 %1717 }
 0x176   : > { %1586 = vst.msk [vmem:[#allocation2 + $0x8] sm:$0xff] %vm1584_vm8, %v1491_v35  ;;  %v1300_v39 = vpop.permute.xlu2 %1299  ;;  %v4385_v35 = vld [vmem:[%s3566_s16 + $0x7a] sm:$0xff] }
 0x177   : > { %1796 = vst.msk [vmem:[#allocation2 + $0x90] sm:$0xff] %vm1777_vm9, %v1718_v46 }
 0x178   : > { %1779 = vst.msk [vmem:[#allocation2 + $0x8] sm:$0xff] %vm1777_vm9, %v1684_v20  ;;  %v4355_v20 = vld [vmem:[%s3566_s16 + $0x79] sm:$0xff] }
 0x17b   : > { %1532 = vrot.lane.b32.xlu1 %v4167_v55, %s3524_s22 }
 0x17c   : > { %1112 = vrot.lane.b32.xlu0 %v4285_v48, %s3523_s21  ;;  %1305 = vrot.lane.b32.xlu2 %v4015_v47, %s3525_s23 }
 0x17d   : > { %v948_v34 = vpop.permute.xlu1 %947  ;;  %v755_v49 = vpop.permute.xlu0 %754 }
 0x17e   : > { %832 = vst.msk [vmem:[#allocation2 + $0x98] sm:$0xff] %vm812_vm4, %v755_v49  ;;  %v1828_v45 = vld [vmem:[#allocation2 + $0x90] sm:$0xff]  ;;  %v1686_v56 = vpop.permute.xlu2 %1685 }
 0x17f   : > { %1025 = vst.msk [vmem:[#allocation2 + $0x98] sm:$0xff] %vm1005_vm5, %v948_v34  ;;  %v1903_v51 = vsel %vm1847_vm10, %v1828_v45, 0  ;;  %v1811_v52 = vld [vmem:[#allocation2 + $0x8] sm:$0xff] }
 0x180   : > { %v4296_v54 = vand.u32 4294901760, %v1903_v51  ;;  %v1852_v3 = vsel %vm1847_vm10, %v1811_v52, 0 }
 0x181   : > { %v4302_v60 = vand.u32 4294901760, %v1852_v3 }
 0x182   : > { %2340 = vmatmul.f32.gmra.mxu3 %v4296_v54  ;;  %v4306_v63 = vsub.f32 %v1903_v51, %v4296_v54 }
 0x183   : > { %1498 = vrot.lane.b32.xlu1 %v4180_v44, %s3524_s22  ;;  %2272 = vmatmul.f32.gmra.mxu1 %v4302_v60  ;;  %v4312_v47 = vsub.f32 %v1852_v3, %v4302_v60 }
 0x184   : > { %1725 = vrot.lane.b32.xlu0 %v4300_v57, %s3526_s24  ;;  %v5509_v2 = vand.u32 4294901760, %v4306_v63  ;;  %1691 = vrot.lane.b32.xlu2 %v4315_v1, %s3526_s24 }
 0x185   : > { %v914_v4 = vpop.permute.xlu1 %913  ;;  %v1141_v5 = vpop.permute.xlu0 %1140  ;;  %v5520_v6 = vand.u32 4294901760, %v4312_v47 }
 0x186   : > { %1008 = vst.msk [vmem:[#allocation2 + $0x10] sm:$0xff] %vm1005_vm5, %v914_v4  ;;  %v2116_v8 = vsub.f32 %v4306_v63, %v5509_v2  ;;  %v723_v10 = vpop.permute.xlu2 %722 }
 0x187   : > { %1218 = vst.msk [vmem:[#allocation2 + $0x98] sm:$0xff] %vm1198_vm6, %v1141_v5  ;;  %v1980_v13 = vsub.f32 %v4312_v47, %v5520_v6 }
 0x188   : > { %1411 = vst.msk [vmem:[#allocation2 + $0x98] sm:$0xff] %vm1391_vm7, %v1334_v42  ;;  %v2117_v9 = vand.u32 4294901760, %v2116_v8 }
 0x189   : > { %v1981_v11 = vand.u32 4294901760, %v1980_v13  ;;  %816 = vst.msk [vmem:[#allocation2 + $0x18] sm:$0xff] %vm812_vm4, %v723_v10  ;;  %v4413_v13 = vld [vmem:[%s3566_s16 + $0x151] sm:$0xff]  ;;  %v4425_v10 = vld [vmem:[%s3566_s16 + $0x81] sm:$0xff] }
 0x18a   : > { %2118 = vmatmul.f32.gmra.mxu2 %v2117_v9 }
 0x18b   : > { %1982 = vmatmul.f32.gmra.mxu0 %v1981_v11  ;;  %955 = vrot.lane.b32.xlu1 %v4203_v7, %s3521_s19 }
 0x18c   : > { %762 = vrot.lane.b32.xlu0 %v4031_v53, %s3522_s20  ;;  %728 = vrot.lane.b32.xlu2 %v4051_v62, %s3522_s20 }
 0x18d   : > { %v1527_v12 = vpop.permute.xlu1 %1526  ;;  %v1107_v25 = vpop.permute.xlu0 %1106 }
 0x18e   : > { %1604 = vst.msk [vmem:[#allocation2 + $0x98] sm:$0xff] %vm1584_vm8, %v1527_v12  ;;  %v1336_v14 = vpop.permute.xlu2 %1335 }
 0x18f   : > { %1201 = vst.msk [vmem:[#allocation2 + $0x10] sm:$0xff] %vm1198_vm6, %v1107_v25 }
 0x190   : > { %1394 = vst.msk [vmem:[#allocation2 + $0x10] sm:$0xff] %vm1391_vm7, %v1300_v39 }
 0x193   : > { %921 = vrot.lane.b32.xlu1 %v4215_v19, %s3521_s19 }
 0x194   : > { %1148 = vrot.lane.b32.xlu0 %v4343_v15, %s3523_s21  ;;  %1341 = vrot.lane.b32.xlu2 %v4098_v22, %s3525_s23 }
 0x195   : > { %v1493_v53 = vpop.permute.xlu1 %1492  ;;  %v1720_v18 = vpop.permute.xlu0 %1719 }
 0x196   : > { %1587 = vst.msk [vmem:[#allocation2 + $0x10] sm:$0xff] %vm1584_vm8, %v1493_v53  ;;  %v1302_v62 = vpop.permute.xlu2 %1301 }
 0x197   : > { %1797 = vst.msk [vmem:[#allocation2 + $0x98] sm:$0xff] %vm1777_vm9, %v1720_v18 }
 0x198   : > { %1780 = vst.msk [vmem:[#allocation2 + $0x10] sm:$0xff] %vm1777_vm9, %v1686_v56 }
 0x19b   : > { %1534 = vrot.lane.b32.xlu1 %v4229_v17, %s3524_s22 }
 0x19c   : > { %1114 = vrot.lane.b32.xlu0 %v4355_v20, %s3523_s21  ;;  %1307 = vrot.lane.b32.xlu2 %v4112_v32, %s3525_s23 }
 0x19d   : > { %v950_v28 = vpop.permute.xlu1 %949  ;;  %v757_v29 = vpop.permute.xlu0 %756 }
 0x19e   : > { %833 = vst.msk [vmem:[#allocation2 + $0xa0] sm:$0xff] %vm812_vm4, %v757_v29  ;;  %v1829_v22 = vld [vmem:[#allocation2 + $0x98] sm:$0xff]  ;;  %v1688_v38 = vpop.permute.xlu2 %1687 }
 0x19f   : > { %1026 = vst.msk [vmem:[#allocation2 + $0xa0] sm:$0xff] %vm1005_vm5, %v950_v28  ;;  %v1906_v31 = vsel %vm1847_vm10, %v1829_v22, 0  ;;  %v1812_v33 = vld [vmem:[#allocation2 + $0x10] sm:$0xff] }
 0x1a0   : > { %v4366_v36 = vand.u32 4294901760, %v1906_v31  ;;  %v1855_v37 = vsel %vm1847_vm10, %v1812_v33, 0  ;;  %v4440_v28 = vld [vmem:[%s3566_s16 + $0x152] sm:$0xff] }
 0x1a1   : > { %v4372_v41 = vand.u32 4294901760, %v1855_v37 }
 0x1a2   : > { %2344 = vmatmul.f32.gmra.mxu3 %v4366_v36  ;;  %v4376_v42 = vsub.f32 %v1906_v31, %v4366_v36  ;;  %v4455_v31 = vld [vmem:[%s3566_s16 + $0x82] sm:$0xff] }
 0x1a3   : > { %1500 = vrot.lane.b32.xlu1 %v4246_v24, %s3524_s22  ;;  %2276 = vmatmul.f32.gmra.mxu1 %v4372_v41  ;;  %v4382_v32 = vsub.f32 %v1855_v37, %v4372_v41 }
 0x1a4   : > { %1727 = vrot.lane.b32.xlu0 %v4370_v40, %s3526_s24  ;;  %v5508_v46 = vand.u32 4294901760, %v4376_v42  ;;  %1693 = vrot.lane.b32.xlu2 %v4385_v35, %s3526_s24 }
 0x1a5   : > { %v916_v39 = vpop.permute.xlu1 %915  ;;  %v1143_v34 = vpop.permute.xlu0 %1142  ;;  %v5519_v49 = vand.u32 4294901760, %v4382_v32 }
 0x1a6   : > { %1009 = vst.msk [vmem:[#allocation2 + $0x18] sm:$0xff] %vm1005_vm5, %v916_v39  ;;  %v2124_v45 = vsub.f32 %v4376_v42, %v5508_v46  ;;  %v725_v3 = vpop.permute.xlu2 %724 }
 0x1a7   : > { %1219 = vst.msk [vmem:[#allocation2 + $0xa0] sm:$0xff] %vm1198_vm6, %v1143_v34  ;;  %v1988_v51 = vsub.f32 %v4382_v32, %v5519_v49 }
 0x1a8   : > { %1412 = vst.msk [vmem:[#allocation2 + $0xa0] sm:$0xff] %vm1391_vm7, %v1336_v14  ;;  %v2125_v52 = vand.u32 4294901760, %v2124_v45 }
 0x1a9   : > { %v1989_v56 = vand.u32 4294901760, %v1988_v51  ;;  %817 = vst.msk [vmem:[#allocation2 + $0x20] sm:$0xff] %vm812_vm4, %v725_v3 }
 0x1aa   : > { %2126 = vmatmul.f32.gmra.mxu2 %v2125_v52 }
 0x1ab   : > { %1990 = vmatmul.f32.gmra.mxu0 %v1989_v56  ;;  %957 = vrot.lane.b32.xlu1 %v4273_v43, %s3521_s19 }
 0x1ac   : > { %764 = vrot.lane.b32.xlu0 %v4139_v61, %s3522_s20  ;;  %730 = vrot.lane.b32.xlu2 %v4156_v50, %s3522_s20 }
 0x1ad   : > { %v1529_v4 = vpop.permute.xlu1 %1528  ;;  %v1109_v5 = vpop.permute.xlu0 %1108 }
 0x1ae   : > { %1605 = vst.msk [vmem:[#allocation2 + $0xa0] sm:$0xff] %vm1584_vm8, %v1529_v4  ;;  %v1338_v8 = vpop.permute.xlu2 %1337 }
 0x1af   : > { %1202 = vst.msk [vmem:[#allocation2 + $0x18] sm:$0xff] %vm1198_vm6, %v1109_v5 }
 0x1b0   : > { %1395 = vst.msk [vmem:[#allocation2 + $0x18] sm:$0xff] %vm1391_vm7, %v1302_v62 }
 0x1b3   : > { %923 = vrot.lane.b32.xlu1 %v4285_v48, %s3521_s19 }
 0x1b4   : > { %1150 = vrot.lane.b32.xlu0 %v4413_v13, %s3523_s21  ;;  %1343 = vrot.lane.b32.xlu2 %v4167_v55, %s3525_s23 }
 0x1b5   : > { %v1495_v61 = vpop.permute.xlu1 %1494  ;;  %v1722_v9 = vpop.permute.xlu0 %1721 }
 0x1b6   : > { %1588 = vst.msk [vmem:[#allocation2 + $0x18] sm:$0xff] %vm1584_vm8, %v1495_v61  ;;  %v1304_v50 = vpop.permute.xlu2 %1303 }
 0x1b7   : > { %1798 = vst.msk [vmem:[#allocation2 + $0xa0] sm:$0xff] %vm1777_vm9, %v1722_v9  ;;  %v4495_v9 = vld [vmem:[%s3566_s16 + $0x91] sm:$0xff] }
 0x1b8   : > { %1781 = vst.msk [vmem:[#allocation2 + $0x18] sm:$0xff] %vm1777_vm9, %v1688_v38 }
 0x1bb   : > { %1536 = vrot.lane.b32.xlu1 %v4300_v57, %s3524_s22 }
 0x1bc   : > { %1116 = vrot.lane.b32.xlu0 %v4425_v10, %s3523_s21  ;;  %1309 = vrot.lane.b32.xlu2 %v4180_v44, %s3525_s23 }
 0x1bd   : > { %v952_v11 = vpop.permute.xlu1 %951  ;;  %v759_v12 = vpop.permute.xlu0 %758 }
 0x1be   : > { %834 = vst.msk [vmem:[#allocation2 + $0xa8] sm:$0xff] %vm812_vm4, %v759_v12  ;;  %v1830_v55 = vld [vmem:[#allocation2 + $0xa0] sm:$0xff]  ;;  %v1690_v62 = vpop.permute.xlu2 %1689 }
 0x1bf   : > { %1027 = vst.msk [vmem:[#allocation2 + $0xa8] sm:$0xff] %vm1005_vm5, %v952_v11  ;;  %v1909_v25 = vsel %vm1847_vm10, %v1830_v55, 0  ;;  %v1813_v14 = vld [vmem:[#allocation2 + $0x18] sm:$0xff] }
 0x1c0   : > { %v4436_v53 = vand.u32 4294901760, %v1909_v25  ;;  %v1858_v18 = vsel %vm1847_vm10, %v1813_v14, 0 }
 0x1c1   : > { %v4442_v29 = vand.u32 4294901760, %v1858_v18 }
 0x1c2   : > { %2348 = vmatmul.f32.gmra.mxu3 %v4436_v53  ;;  %v4446_v22 = vsub.f32 %v1909_v25, %v4436_v53 }
 0x1c3   : > { %1502 = vrot.lane.b32.xlu1 %v4315_v1, %s3524_s22  ;;  %2280 = vmatmul.f32.gmra.mxu1 %v4442_v29  ;;  %v4452_v44 = vsub.f32 %v1858_v18, %v4442_v29 }
 0x1c4   : > { %1729 = vrot.lane.b32.xlu0 %v4440_v28, %s3526_s24  ;;  %v5507_v33 = vand.u32 4294901760, %v4446_v22  ;;  %1695 = vrot.lane.b32.xlu2 %v4455_v31, %s3526_s24 }
 0x1c5   : > { %v918_v37 = vpop.permute.xlu1 %917  ;;  %v1145_v38 = vpop.permute.xlu0 %1144  ;;  %v5516_v39 = vand.u32 4294901760, %v4452_v44 }
 0x1c6   : > { %1010 = vst.msk [vmem:[#allocation2 + $0x20] sm:$0xff] %vm1005_vm5, %v918_v37  ;;  %v2132_v34 = vsub.f32 %v4446_v22, %v5507_v33  ;;  %v727_v52 = vpop.permute.xlu2 %726 }
 0x1c7   : > { %1220 = vst.msk [vmem:[#allocation2 + $0xa8] sm:$0xff] %vm1198_vm6, %v1145_v38  ;;  %v1996_v45 = vsub.f32 %v4452_v44, %v5516_v39 }
 0x1c8   : > { %1413 = vst.msk [vmem:[#allocation2 + $0xa8] sm:$0xff] %vm1391_vm7, %v1338_v8  ;;  %v2133_v51 = vand.u32 4294901760, %v2132_v34  ;;  %v4483_v8 = vld [vmem:[%s3566_s16 + $0x159] sm:$0xff] }
 0x1c9   : > { %v1997_v3 = vand.u32 4294901760, %v1996_v45  ;;  %818 = vst.msk [vmem:[#allocation2 + $0x28] sm:$0xff] %vm812_vm4, %v727_v52  ;;  %v4525_v34 = vld [vmem:[%s3566_s16 + $0x92] sm:$0xff] }
 0x1ca   : > { %2134 = vmatmul.f32.gmra.mxu2 %v2133_v51 }
 0x1cb   : > { %1998 = vmatmul.f32.gmra.mxu0 %v1997_v3  ;;  %959 = vrot.lane.b32.xlu1 %v4343_v15, %s3521_s19 }
 0x1cc   : > { %766 = vrot.lane.b32.xlu0 %v4203_v7, %s3522_s20  ;;  %732 = vrot.lane.b32.xlu2 %v4215_v19, %s3522_s20 }
 0x1cd   : > { %v1531_v56 = vpop.permute.xlu1 %1530  ;;  %v1111_v4 = vpop.permute.xlu0 %1110 }
 0x1ce   : > { %1606 = vst.msk [vmem:[#allocation2 + $0xa8] sm:$0xff] %vm1584_vm8, %v1531_v56  ;;  %v1340_v5 = vpop.permute.xlu2 %1339 }
 0x1cf   : > { %1203 = vst.msk [vmem:[#allocation2 + $0x20] sm:$0xff] %vm1198_vm6, %v1111_v4 }
 0x1d0   : > { %1396 = vst.msk [vmem:[#allocation2 + $0x20] sm:$0xff] %vm1391_vm7, %v1304_v50 }
 0x1d3   : > { %925 = vrot.lane.b32.xlu1 %v4355_v20, %s3521_s19 }
 0x1d4   : > { %1152 = vrot.lane.b32.xlu0 %v4483_v8, %s3523_s21  ;;  %1345 = vrot.lane.b32.xlu2 %v4229_v17, %s3525_s23 }
 0x1d5   : > { %v1497_v7 = vpop.permute.xlu1 %1496  ;;  %v1724_v61 = vpop.permute.xlu0 %1723 }
 0x1d6   : > { %1589 = vst.msk [vmem:[#allocation2 + $0x20] sm:$0xff] %vm1584_vm8, %v1497_v7  ;;  %v1306_v19 = vpop.permute.xlu2 %1305 }
 0x1d7   : > { %1799 = vst.msk [vmem:[#allocation2 + $0xa8] sm:$0xff] %vm1777_vm9, %v1724_v61 }
 0x1d8   : > { %1782 = vst.msk [vmem:[#allocation2 + $0x20] sm:$0xff] %vm1777_vm9, %v1690_v62  ;;  %v4510_v62 = vld [vmem:[%s3566_s16 + $0x15a] sm:$0xff] }
 0x1db   : > { %1538 = vrot.lane.b32.xlu1 %v4370_v40, %s3524_s22 }
 0x1dc   : > { %1118 = vrot.lane.b32.xlu0 %v4495_v9, %s3523_s21  ;;  %1311 = vrot.lane.b32.xlu2 %v4246_v24, %s3525_s23 }
 0x1dd   : > { %v954_v50 = vpop.permute.xlu1 %953 }
 0x1de   : > { %v761_v11 = vpop.permute.xlu0 %760  ;;  %v1831_v12 = vld [vmem:[#allocation2 + $0xa8] sm:$0xff]  ;;  %v1692_v18 = vpop.permute.xlu2 %1691 }
 0x1df   : > { %835 = vst.msk [vmem:[#allocation2 + $0xb0] sm:$0xff] %vm812_vm4, %v761_v11  ;;  %v1912_v17 = vsel %vm1847_vm10, %v1831_v12, 0  ;;  %v1814_v55 = vld [vmem:[#allocation2 + $0x20] sm:$0xff] }
 0x1e0   : > { %1028 = vst.msk [vmem:[#allocation2 + $0xb0] sm:$0xff] %vm1005_vm5, %v954_v50  ;;  %v4506_v25 = vand.u32 4294901760, %v1912_v17  ;;  %v1861_v14 = vsel %vm1847_vm10, %v1814_v55, 0 }
 0x1e1   : > { %v4512_v37 = vand.u32 4294901760, %v1861_v14 }
 0x1e2   : > { %2352 = vmatmul.f32.gmra.mxu3 %v4506_v25  ;;  %v4516_v24 = vsub.f32 %v1912_v17, %v4506_v25  ;;  %v4553_v17 = vld [vmem:[%s3566_s16 + $0x169] sm:$0xff] }
 0x1e3   : > { %1504 = vrot.lane.b32.xlu1 %v4385_v35, %s3524_s22  ;;  %2284 = vmatmul.f32.gmra.mxu1 %v4512_v37  ;;  %v4522_v38 = vsub.f32 %v1861_v14, %v4512_v37 }
 0x1e4   : > { %1731 = vrot.lane.b32.xlu0 %v4510_v62, %s3526_s24  ;;  %v5506_v45 = vand.u32 4294901760, %v4516_v24  ;;  %1697 = vrot.lane.b32.xlu2 %v4525_v34, %s3526_s24 }
 0x1e5   : > { %v920_v51 = vpop.permute.xlu1 %919  ;;  %v5515_v52 = vand.u32 4294901760, %v4522_v38 }
 0x1e6   : > { %1011 = vst.msk [vmem:[#allocation2 + $0x28] sm:$0xff] %vm1005_vm5, %v920_v51  ;;  %v1147_v3 = vpop.permute.xlu0 %1146  ;;  %v2140_v56 = vsub.f32 %v4516_v24, %v5506_v45  ;;  %v729_v61 = vpop.permute.xlu2 %728 }
 0x1e7   : > { %1221 = vst.msk [vmem:[#allocation2 + $0xb0] sm:$0xff] %vm1198_vm6, %v1147_v3  ;;  %v2004_v4 = vsub.f32 %v4522_v38, %v5515_v52 }
 0x1e8   : > { %1414 = vst.msk [vmem:[#allocation2 + $0xb0] sm:$0xff] %vm1391_vm7, %v1340_v5  ;;  %v2141_v7 = vand.u32 4294901760, %v2140_v56 }
 0x1e9   : > { %v2005_v50 = vand.u32 4294901760, %v2004_v4  ;;  %819 = vst.msk [vmem:[#allocation2 + $0x30] sm:$0xff] %vm812_vm4, %v729_v61  ;;  %v4580_v61 = vld [vmem:[%s3566_s16 + $0x16a] sm:$0xff] }
 0x1ea   : > { %2142 = vmatmul.f32.gmra.mxu2 %v2141_v7 }
 0x1eb   : > { %2006 = vmatmul.f32.gmra.mxu0 %v2005_v50  ;;  %961 = vrot.lane.b32.xlu1 %v4413_v13, %s3521_s19 }
 0x1ec   : > { %768 = vrot.lane.b32.xlu0 %v4273_v43, %s3522_s20  ;;  %734 = vrot.lane.b32.xlu2 %v4285_v48, %s3522_s20 }
 0x1ed   : > { %v1533_v11 = vpop.permute.xlu1 %1532 }
 0x1ee   : > { %1607 = vst.msk [vmem:[#allocation2 + $0xb0] sm:$0xff] %vm1584_vm8, %v1533_v11  ;;  %v1113_v12 = vpop.permute.xlu0 %1112  ;;  %v1342_v5 = vpop.permute.xlu2 %1341 }
 0x1ef   : > { %1204 = vst.msk [vmem:[#allocation2 + $0x28] sm:$0xff] %vm1198_vm6, %v1113_v12  ;;  %v4595_v12 = vld [vmem:[%s3566_s16 + $0x9a] sm:$0xff] }
 0x1f0   : > { %1397 = vst.msk [vmem:[#allocation2 + $0x28] sm:$0xff] %vm1391_vm7, %v1306_v19  ;;  %v4565_v19 = vld [vmem:[%s3566_s16 + $0x99] sm:$0xff] }
 0x1f3   : > { %927 = vrot.lane.b32.xlu1 %v4425_v10, %s3521_s19 }
 0x1f4   : > { %1154 = vrot.lane.b32.xlu0 %v4553_v17, %s3523_s21  ;;  %1347 = vrot.lane.b32.xlu2 %v4300_v57, %s3525_s23 }
 0x1f5   : > { %v1499_v43 = vpop.permute.xlu1 %1498 }
 0x1f6   : > { %1590 = vst.msk [vmem:[#allocation2 + $0x28] sm:$0xff] %vm1584_vm8, %v1499_v43  ;;  %v1726_v55 = vpop.permute.xlu0 %1725  ;;  %v1308_v48 = vpop.permute.xlu2 %1307 }
 0x1f7   : > { %1800 = vst.msk [vmem:[#allocation2 + $0xb0] sm:$0xff] %vm1777_vm9, %v1726_v55 }
 0x1f8   : > { %1783 = vst.msk [vmem:[#allocation2 + $0x28] sm:$0xff] %vm1777_vm9, %v1692_v18 }
 0x1fb   : > { %1540 = vrot.lane.b32.xlu1 %v4440_v28, %s3524_s22 }
 0x1fc   : > { %1120 = vrot.lane.b32.xlu0 %v4565_v19, %s3523_s21  ;;  %1313 = vrot.lane.b32.xlu2 %v4315_v1, %s3525_s23 }
 0x1fd   : > { %v956_v14 = vpop.permute.xlu1 %955 }
 0x1fe   : > { %v763_v51 = vpop.permute.xlu0 %762  ;;  %v1832_v3 = vld [vmem:[#allocation2 + $0xb0] sm:$0xff]  ;;  %v1694_v7 = vpop.permute.xlu2 %1693 }
 0x1ff   : > { %836 = vst.msk [vmem:[#allocation2 + $0xb8] sm:$0xff] %vm812_vm4, %v763_v51  ;;  %v1915_v57 = vsel %vm1847_vm10, %v1832_v3, 0  ;;  %v1815_v18 = vld [vmem:[#allocation2 + $0x28] sm:$0xff] }
 0x200   : > { %1029 = vst.msk [vmem:[#allocation2 + $0xb8] sm:$0xff] %vm1005_vm5, %v956_v14  ;;  %v4576_v56 = vand.u32 4294901760, %v1915_v57  ;;  %v1864_v4 = vsel %vm1847_vm10, %v1815_v18, 0 }
 0x201   : > { %v4582_v50 = vand.u32 4294901760, %v1864_v4 }
 0x202   : > { %2356 = vmatmul.f32.gmra.mxu3 %v4576_v56  ;;  %v4586_v1 = vsub.f32 %v1915_v57, %v4576_v56 }
 0x203   : > { %1506 = vrot.lane.b32.xlu1 %v4455_v31, %s3524_s22  ;;  %2288 = vmatmul.f32.gmra.mxu1 %v4582_v50  ;;  %v4592_v11 = vsub.f32 %v1864_v4, %v4582_v50 }
 0x204   : > { %1733 = vrot.lane.b32.xlu0 %v4580_v61, %s3526_s24  ;;  %v5505_v43 = vand.u32 4294901760, %v4586_v1  ;;  %1699 = vrot.lane.b32.xlu2 %v4595_v12, %s3526_s24 }
 0x205   : > { %v922_v55 = vpop.permute.xlu1 %921  ;;  %v5514_v14 = vand.u32 4294901760, %v4592_v11 }
 0x206   : > { %1012 = vst.msk [vmem:[#allocation2 + $0x30] sm:$0xff] %vm1005_vm5, %v922_v55  ;;  %v1149_v51 = vpop.permute.xlu0 %1148  ;;  %v2148_v3 = vsub.f32 %v4586_v1, %v5505_v43  ;;  %v731_v4 = vpop.permute.xlu2 %730 }
 0x207   : > { %1222 = vst.msk [vmem:[#allocation2 + $0xb8] sm:$0xff] %vm1198_vm6, %v1149_v51  ;;  %v2012_v57 = vsub.f32 %v4592_v11, %v5514_v14 }
 0x208   : > { %1415 = vst.msk [vmem:[#allocation2 + $0xb8] sm:$0xff] %vm1391_vm7, %v1342_v5  ;;  %v2149_v18 = vand.u32 4294901760, %v2148_v3  ;;  %v4623_v3 = vld [vmem:[%s3566_s16 + $0x171] sm:$0xff] }
 0x209   : > { %v2013_v55 = vand.u32 4294901760, %v2012_v57  ;;  %820 = vst.msk [vmem:[#allocation2 + $0x38] sm:$0xff] %vm812_vm4, %v731_v4 }
 0x20a   : > { %2150 = vmatmul.f32.gmra.mxu2 %v2149_v18 }
 0x20b   : > { %2014 = vmatmul.f32.gmra.mxu0 %v2013_v55  ;;  %963 = vrot.lane.b32.xlu1 %v4483_v8, %s3521_s19 }
 0x20c   : > { %770 = vrot.lane.b32.xlu0 %v4343_v15, %s3522_s20  ;;  %736 = vrot.lane.b32.xlu2 %v4355_v20, %s3522_s20 }
 0x20d   : > { %v1535_v51 = vpop.permute.xlu1 %1534 }
 0x20e   : > { %1608 = vst.msk [vmem:[#allocation2 + $0xb8] sm:$0xff] %vm1584_vm8, %v1535_v51  ;;  %v1115_v43 = vpop.permute.xlu0 %1114  ;;  %v1344_v5 = vpop.permute.xlu2 %1343 }
 0x20f   : > { %1205 = vst.msk [vmem:[#allocation2 + $0x30] sm:$0xff] %vm1198_vm6, %v1115_v43 }
 0x210   : > { %1398 = vst.msk [vmem:[#allocation2 + $0x30] sm:$0xff] %vm1391_vm7, %v1308_v48  ;;  %v4635_v48 = vld [vmem:[%s3566_s16 + $0xa9] sm:$0xff] }
 0x213   : > { %929 = vrot.lane.b32.xlu1 %v4495_v9, %s3521_s19 }
 0x214   : > { %1156 = vrot.lane.b32.xlu0 %v4623_v3, %s3523_s21  ;;  %1349 = vrot.lane.b32.xlu2 %v4370_v40, %s3525_s23 }
 0x215   : > { %v1501_v15 = vpop.permute.xlu1 %1500 }
 0x216   : > { %1591 = vst.msk [vmem:[#allocation2 + $0x30] sm:$0xff] %vm1584_vm8, %v1501_v15  ;;  %v1728_v57 = vpop.permute.xlu0 %1727  ;;  %v1310_v20 = vpop.permute.xlu2 %1309 }
 0x217   : > { %1801 = vst.msk [vmem:[#allocation2 + $0xb8] sm:$0xff] %vm1777_vm9, %v1728_v57  ;;  %v4650_v57 = vld [vmem:[%s3566_s16 + $0x172] sm:$0xff] }
 0x218   : > { %1784 = vst.msk [vmem:[#allocation2 + $0x30] sm:$0xff] %vm1777_vm9, %v1694_v7 }
 0x21b   : > { %1542 = vrot.lane.b32.xlu1 %v4510_v62, %s3524_s22 }
 0x21c   : > { %1122 = vrot.lane.b32.xlu0 %v4635_v48, %s3523_s21  ;;  %1315 = vrot.lane.b32.xlu2 %v4385_v35, %s3525_s23 }
 0x21d   : > { %v958_v43 = vpop.permute.xlu1 %957 }
 0x21e   : > { %v765_v18 = vpop.permute.xlu0 %764  ;;  %v1833_v4 = vld [vmem:[#allocation2 + $0xb8] sm:$0xff]  ;;  %v1696_v15 = vpop.permute.xlu2 %1695 }
 0x21f   : > { %837 = vst.msk [vmem:[#allocation2 + $0xc0] sm:$0xff] %vm812_vm4, %v765_v18  ;;  %v1918_v40 = vsel %vm1847_vm10, %v1833_v4, 0  ;;  %v1816_v7 = vld [vmem:[#allocation2 + $0x30] sm:$0xff] }
 0x220   : > { %1030 = vst.msk [vmem:[#allocation2 + $0xc0] sm:$0xff] %vm1005_vm5, %v958_v43  ;;  %v4646_v55 = vand.u32 4294901760, %v1918_v40  ;;  %v1867_v51 = vsel %vm1847_vm10, %v1816_v7, 0  ;;  %v4665_v18 = vld [vmem:[%s3566_s16 + $0xaa] sm:$0xff] }
 0x221   : > { %v4652_v45 = vand.u32 4294901760, %v1867_v51 }
 0x222   : > { %2360 = vmatmul.f32.gmra.mxu3 %v4646_v55  ;;  %v4656_v35 = vsub.f32 %v1918_v40, %v4646_v55 }
 0x223   : > { %1508 = vrot.lane.b32.xlu1 %v4525_v34, %s3524_s22  ;;  %2292 = vmatmul.f32.gmra.mxu1 %v4652_v45  ;;  %v4662_v43 = vsub.f32 %v1867_v51, %v4652_v45 }
 0x224   : > { %1735 = vrot.lane.b32.xlu0 %v4650_v57, %s3526_s24  ;;  %v5511_v4 = vand.u32 4294901760, %v4656_v35  ;;  %1701 = vrot.lane.b32.xlu2 %v4665_v18, %s3526_s24 }
 0x225   : > { %v924_v7 = vpop.permute.xlu1 %923  ;;  %v5513_v33 = vand.u32 4294901760, %v4662_v43 }
 0x226   : > { %1013 = vst.msk [vmem:[#allocation2 + $0x38] sm:$0xff] %vm1005_vm5, %v924_v7  ;;  %v1151_v40 = vpop.permute.xlu0 %1150  ;;  %v2156_v46 = vsub.f32 %v4656_v35, %v5511_v4  ;;  %v733_v26 = vpop.permute.xlu2 %732 }
 0x227   : > { %1223 = vst.msk [vmem:[#allocation2 + $0xc0] sm:$0xff] %vm1198_vm6, %v1151_v40  ;;  %v2020_v51 = vsub.f32 %v4662_v43, %v5513_v33 }
 0x228   : > { %1416 = vst.msk [vmem:[#allocation2 + $0xc0] sm:$0xff] %vm1391_vm7, %v1344_v5  ;;  %v2157_v2 = vand.u32 4294901760, %v2156_v46  ;;  %v4705_v5 = vld [vmem:[%s3566_s16 + $0xb1] sm:$0xff] }
 0x229   : > { %v2021_v7 = vand.u32 4294901760, %v2020_v51  ;;  %821 = vst.msk [vmem:[#allocation2 + $0x40] sm:$0xff] %vm812_vm4, %v733_v26 }
 0x22a   : > { %2158 = vmatmul.f32.gmra.mxu2 %v2157_v2  ;;  %v4693_v2 = vld [vmem:[%s3566_s16 + $0x181] sm:$0xff] }
 0x22b   : > { %2022 = vmatmul.f32.gmra.mxu0 %v2021_v7  ;;  %965 = vrot.lane.b32.xlu1 %v4553_v17, %s3521_s19 }
 0x22c   : > { %772 = vrot.lane.b32.xlu0 %v4413_v13, %s3522_s20  ;;  %738 = vrot.lane.b32.xlu2 %v4425_v10, %s3522_s20 }
 0x22d   : > { %v1537_v40 = vpop.permute.xlu1 %1536 }
 0x22e   : > { %1609 = vst.msk [vmem:[#allocation2 + $0xc0] sm:$0xff] %vm1584_vm8, %v1537_v40  ;;  %v1117_v4 = vpop.permute.xlu0 %1116  ;;  %v1346_v26 = vpop.permute.xlu2 %1345 }
 0x22f   : > { %1206 = vst.msk [vmem:[#allocation2 + $0x38] sm:$0xff] %vm1198_vm6, %v1117_v4 }
 0x230   : > { %1399 = vst.msk [vmem:[#allocation2 + $0x38] sm:$0xff] %vm1391_vm7, %v1310_v20 }
 0x233   : > { %931 = vrot.lane.b32.xlu1 %v4565_v19, %s3521_s19 }
 0x234   : > { %1158 = vrot.lane.b32.xlu0 %v4693_v2, %s3523_s21  ;;  %1351 = vrot.lane.b32.xlu2 %v4440_v28, %s3525_s23 }
 0x235   : > { %v1503_v46 = vpop.permute.xlu1 %1502 }
 0x236   : > { %1592 = vst.msk [vmem:[#allocation2 + $0x38] sm:$0xff] %vm1584_vm8, %v1503_v46  ;;  %v1730_v13 = vpop.permute.xlu0 %1729  ;;  %v1312_v10 = vpop.permute.xlu2 %1311 }
 0x237   : > { %1802 = vst.msk [vmem:[#allocation2 + $0xc0] sm:$0xff] %vm1777_vm9, %v1730_v13  ;;  %v4720_v13 = vld [vmem:[%s3566_s16 + $0x182] sm:$0xff] }
 0x238   : > { %1785 = vst.msk [vmem:[#allocation2 + $0x38] sm:$0xff] %vm1777_vm9, %v1696_v15 }
 0x23b   : > { %1544 = vrot.lane.b32.xlu1 %v4580_v61, %s3524_s22 }
 0x23c   : > { %1124 = vrot.lane.b32.xlu0 %v4705_v5, %s3523_s21  ;;  %1317 = vrot.lane.b32.xlu2 %v4455_v31, %s3525_s23 }
 0x23d   : > { %v960_v20 = vpop.permute.xlu1 %959 }
 0x23e   : > { %v767_v4 = vpop.permute.xlu0 %766  ;;  %v1834_v51 = vld [vmem:[#allocation2 + $0xc0] sm:$0xff]  ;;  %v1698_v46 = vpop.permute.xlu2 %1697 }
 0x23f   : > { %838 = vst.msk [vmem:[#allocation2 + $0xc8] sm:$0xff] %vm812_vm4, %v767_v4  ;;  %v1921_v28 = vsel %vm1847_vm10, %v1834_v51, 0  ;;  %v1817_v15 = vld [vmem:[#allocation2 + $0x38] sm:$0xff] }
 0x240   : > { %1031 = vst.msk [vmem:[#allocation2 + $0xc8] sm:$0xff] %vm1005_vm5, %v960_v20  ;;  %v4716_v7 = vand.u32 4294901760, %v1921_v28  ;;  %v1870_v40 = vsel %vm1847_vm10, %v1817_v15, 0  ;;  %v4735_v4 = vld [vmem:[%s3566_s16 + $0xb2] sm:$0xff] }
 0x241   : > { %v4722_v0 = vand.u32 4294901760, %v1870_v40 }
 0x242   : > { %2364 = vmatmul.f32.gmra.mxu3 %v4716_v7  ;;  %v4726_v31 = vsub.f32 %v1921_v28, %v4716_v7 }
 0x243   : > { %1510 = vrot.lane.b32.xlu1 %v4595_v12, %s3524_s22  ;;  %2296 = vmatmul.f32.gmra.mxu1 %v4722_v0  ;;  %v4732_v20 = vsub.f32 %v1870_v40, %v4722_v0 }
 0x244   : > { %1737 = vrot.lane.b32.xlu0 %v4720_v13, %s3526_s24  ;;  %v5517_v51 = vand.u32 4294901760, %v4726_v31  ;;  %1703 = vrot.lane.b32.xlu2 %v4735_v4, %s3526_s24 }
 0x245   : > { %v926_v15 = vpop.permute.xlu1 %925  ;;  %v5518_v33 = vand.u32 4294901760, %v4732_v20 }
 0x246   : > { %1014 = vst.msk [vmem:[#allocation2 + $0x40] sm:$0xff] %vm1005_vm5, %v926_v15  ;;  %v1153_v28 = vpop.permute.xlu0 %1152  ;;  %v2164_v14 = vsub.f32 %v4726_v31, %v5517_v51  ;;  %v735_v39 = vpop.permute.xlu2 %734 }
 0x247   : > { %1224 = vst.msk [vmem:[#allocation2 + $0xc8] sm:$0xff] %vm1198_vm6, %v1153_v28  ;;  %v2028_v40 = vsub.f32 %v4732_v20, %v5518_v33 }
 0x248   : > { %1417 = vst.msk [vmem:[#allocation2 + $0xc8] sm:$0xff] %vm1391_vm7, %v1346_v26  ;;  %v2165_v52 = vand.u32 4294901760, %v2164_v14  ;;  %v4775_v26 = vld [vmem:[%s3566_s16 + $0xc1] sm:$0xff] }
 0x249   : > { %v2029_v15 = vand.u32 4294901760, %v2028_v40  ;;  %822 = vst.msk [vmem:[#allocation2 + $0x48] sm:$0xff] %vm812_vm4, %v735_v39 }
 0x24a   : > { %2166 = vmatmul.f32.gmra.mxu2 %v2165_v52  ;;  %v4763_v52 = vld [vmem:[%s3566_s16 + $0x189] sm:$0xff] }
 0x24b   : > { %2030 = vmatmul.f32.gmra.mxu0 %v2029_v15  ;;  %967 = vrot.lane.b32.xlu1 %v4623_v3, %s3521_s19 }
 0x24c   : > { %774 = vrot.lane.b32.xlu0 %v4483_v8, %s3522_s20  ;;  %740 = vrot.lane.b32.xlu2 %v4495_v9, %s3522_s20 }
 0x24d   : > { %v1539_v28 = vpop.permute.xlu1 %1538 }
 0x24e   : > { %1610 = vst.msk [vmem:[#allocation2 + $0xc8] sm:$0xff] %vm1584_vm8, %v1539_v28  ;;  %v1119_v51 = vpop.permute.xlu0 %1118  ;;  %v1348_v39 = vpop.permute.xlu2 %1347 }
 0x24f   : > { %1207 = vst.msk [vmem:[#allocation2 + $0x40] sm:$0xff] %vm1198_vm6, %v1119_v51 }
 0x250   : > { %1400 = vst.msk [vmem:[#allocation2 + $0x40] sm:$0xff] %vm1391_vm7, %v1312_v10 }
 0x253   : > { %933 = vrot.lane.b32.xlu1 %v4635_v48, %s3521_s19 }
 0x254   : > { %1160 = vrot.lane.b32.xlu0 %v4763_v52, %s3523_s21  ;;  %1353 = vrot.lane.b32.xlu2 %v4510_v62, %s3525_s23 }
 0x255   : > { %v1505_v8 = vpop.permute.xlu1 %1504 }
 0x256   : > { %1593 = vst.msk [vmem:[#allocation2 + $0x40] sm:$0xff] %vm1584_vm8, %v1505_v8  ;;  %v1732_v14 = vpop.permute.xlu0 %1731  ;;  %v1314_v9 = vpop.permute.xlu2 %1313 }
 0x257   : > { %1803 = vst.msk [vmem:[#allocation2 + $0xc8] sm:$0xff] %vm1777_vm9, %v1732_v14  ;;  %v4790_v14 = vld [vmem:[%s3566_s16 + $0x18a] sm:$0xff] }
 0x258   : > { %1786 = vst.msk [vmem:[#allocation2 + $0x40] sm:$0xff] %vm1777_vm9, %v1698_v46 }
 0x25b   : > { %1546 = vrot.lane.b32.xlu1 %v4650_v57, %s3524_s22 }
 0x25c   : > { %1126 = vrot.lane.b32.xlu0 %v4775_v26, %s3523_s21  ;;  %1319 = vrot.lane.b32.xlu2 %v4525_v34, %s3525_s23 }
 0x25d   : > { %v962_v10 = vpop.permute.xlu1 %961 }
 0x25e   : > { %v769_v51 = vpop.permute.xlu0 %768  ;;  %v1835_v40 = vld [vmem:[#allocation2 + $0xc8] sm:$0xff]  ;;  %v1700_v8 = vpop.permute.xlu2 %1699 }
 0x25f   : > { %839 = vst.msk [vmem:[#allocation2 + $0xd0] sm:$0xff] %vm812_vm4, %v769_v51  ;;  %v1924_v62 = vsel %vm1847_vm10, %v1835_v40, 0  ;;  %v1818_v46 = vld [vmem:[#allocation2 + $0x40] sm:$0xff] }
 0x260   : > { %1032 = vst.msk [vmem:[#allocation2 + $0xd0] sm:$0xff] %vm1005_vm5, %v962_v10  ;;  %v4786_v15 = vand.u32 4294901760, %v1924_v62  ;;  %v1873_v28 = vsel %vm1847_vm10, %v1818_v46, 0  ;;  %v4805_v51 = vld [vmem:[%s3566_s16 + $0xc2] sm:$0xff] }
 0x261   : > { %v4792_v33 = vand.u32 4294901760, %v1873_v28 }
 0x262   : > { %5553 = vst [vmem:[#allocation4_spill] sm:$0xff] %v4786_v15  ;;  %2368 = vmatmul.f32.gmra.mxu3 %v4786_v15  ;;  %v4796_v34 = vsub.f32 %v1924_v62, %v4786_v15 }
 0x263   : > { %1512 = vrot.lane.b32.xlu1 %v4665_v18, %s3524_s22  ;;  %2300 = vmatmul.f32.gmra.mxu1 %v4792_v33  ;;  %v4802_v10 = vsub.f32 %v1873_v28, %v4792_v33 }
 0x264   : > { %1739 = vrot.lane.b32.xlu0 %v4790_v14, %s3526_s24  ;;  %v5524_v40 = vand.u32 4294901760, %v4796_v34  ;;  %1705 = vrot.lane.b32.xlu2 %v4805_v51, %s3526_s24 }
 0x265   : > { %v928_v46 = vpop.permute.xlu1 %927  ;;  %v5525_v49 = vand.u32 4294901760, %v4802_v10 }
 0x266   : > { %1015 = vst.msk [vmem:[#allocation2 + $0x48] sm:$0xff] %vm1005_vm5, %v928_v46  ;;  %v1155_v62 = vpop.permute.xlu0 %1154  ;;  %v2172_v6 = vsub.f32 %v4796_v34, %v5524_v40  ;;  %v737_v15 = vpop.permute.xlu2 %736 }
 0x267   : > { %1225 = vst.msk [vmem:[#allocation2 + $0xd0] sm:$0xff] %vm1198_vm6, %v1155_v62  ;;  %v2036_v28 = vsub.f32 %v4802_v10, %v5525_v49 }
 0x268   : > { %1418 = vst.msk [vmem:[#allocation2 + $0xd0] sm:$0xff] %vm1391_vm7, %v1348_v39  ;;  %v2173_v30 = vand.u32 4294901760, %v2172_v6  ;;  %v3383_v6 = vld [vmem:[%s3566_s16 + $0x199] sm:$0xff]  ;;  %v4842_v39 = vld [vmem:[%s3566_s16 + $0xc9] sm:$0xff] }
 0x269   : > { %v2037_v46 = vand.u32 4294901760, %v2036_v28  ;;  %823 = vst.msk [vmem:[#allocation2 + $0x50] sm:$0xff] %vm812_vm4, %v737_v15 }
 0x26a   : > { %2174 = vmatmul.f32.gmra.mxu2 %v2173_v30 }
 0x26b   : > { %2038 = vmatmul.f32.gmra.mxu0 %v2037_v46  ;;  %969 = vrot.lane.b32.xlu1 %v4693_v2, %s3521_s19 }
 0x26c   : > { %776 = vrot.lane.b32.xlu0 %v4553_v17, %s3522_s20  ;;  %742 = vrot.lane.b32.xlu2 %v4565_v19, %s3522_s20 }
 0x26d   : > { %v1541_v62 = vpop.permute.xlu1 %1540 }
 0x26e   : > { %1611 = vst.msk [vmem:[#allocation2 + $0xd0] sm:$0xff] %vm1584_vm8, %v1541_v62  ;;  %v1121_v40 = vpop.permute.xlu0 %1120  ;;  %v1350_v30 = vpop.permute.xlu2 %1349  ;;  %v3447_v62 = vld [vmem:[%s3566_s16 + $0x19a] sm:$0xff] }
 0x26f   : > { %1208 = vst.msk [vmem:[#allocation2 + $0x48] sm:$0xff] %vm1198_vm6, %v1121_v40 }
 0x270   : > { %1401 = vst.msk [vmem:[#allocation2 + $0x48] sm:$0xff] %vm1391_vm7, %v1314_v9 }
 0x273   : > { %935 = vrot.lane.b32.xlu1 %v4705_v5, %s3521_s19 }
 0x274   : > { %1162 = vrot.lane.b32.xlu0 %v3383_v6, %s3523_s21  ;;  %1355 = vrot.lane.b32.xlu2 %v4580_v61, %s3525_s23 }
 0x275   : > { %v1507_v17 = vpop.permute.xlu1 %1506 }
 0x276   : > { %1594 = vst.msk [vmem:[#allocation2 + $0x48] sm:$0xff] %vm1584_vm8, %v1507_v17  ;;  %v1734_v2 = vpop.permute.xlu0 %1733  ;;  %v1316_v19 = vpop.permute.xlu2 %1315 }
 0x277   : > { %1804 = vst.msk [vmem:[#allocation2 + $0xd0] sm:$0xff] %vm1777_vm9, %v1734_v2  ;;  %v3320_v2 = vld [vmem:[%s3566_s16 + $0x1a0] sm:$0xff] }
 0x278   : > { %1787 = vst.msk [vmem:[#allocation2 + $0x48] sm:$0xff] %vm1777_vm9, %v1700_v8 }
 0x27b   : > { %1548 = vrot.lane.b32.xlu1 %v4720_v13, %s3524_s22 }
 0x27c   : > { %1128 = vrot.lane.b32.xlu0 %v4842_v39, %s3523_s21  ;;  %1321 = vrot.lane.b32.xlu2 %v4595_v12, %s3525_s23 }
 0x27d   : > { %v964_v9 = vpop.permute.xlu1 %963 }
 0x27e   : > { %v771_v15 = vpop.permute.xlu0 %770  ;;  %v1836_v40 = vld [vmem:[#allocation2 + $0xd0] sm:$0xff]  ;;  %v1702_v46 = vpop.permute.xlu2 %1701 }
 0x27f   : > { %840 = vst.msk [vmem:[#allocation2 + $0xd8] sm:$0xff] %vm812_vm4, %v771_v15  ;;  %v1927_v61 = vsel %vm1847_vm10, %v1836_v40, 0  ;;  %v1819_v8 = vld [vmem:[#allocation2 + $0x48] sm:$0xff] }
 0x280   : > { %1033 = vst.msk [vmem:[#allocation2 + $0xd8] sm:$0xff] %vm1005_vm5, %v964_v9  ;;  %v4853_v28 = vand.u32 4294901760, %v1927_v61  ;;  %v1876_v13 = vsel %vm1847_vm10, %v1819_v8, 0 }
 0x281   : > { %v4857_v6 = vand.u32 4294901760, %v1876_v13 }
 0x282   : > { %5554 = vst [vmem:[#allocation5_spill] sm:$0xff] %v4853_v28  ;;  %2372 = vmatmul.f32.gmra.mxu3 %v4853_v28  ;;  %v4861_v17 = vsub.f32 %v1927_v61, %v4853_v28 }
 0x283   : > { %1514 = vrot.lane.b32.xlu1 %v4735_v4, %s3524_s22  ;;  %2304 = vmatmul.f32.gmra.mxu1 %v4857_v6  ;;  %v4867_v12 = vsub.f32 %v1876_v13, %v4857_v6 }
 0x284   : > { %1741 = vrot.lane.b32.xlu0 %v3447_v62, %s3526_s24  ;;  %v5530_v9 = vand.u32 4294901760, %v4861_v17  ;;  %585 = vrot.lane.b32.xlu2 %v3320_v2, %s3520_s18 }
 0x285   : > { %v930_v15 = vpop.permute.xlu1 %929  ;;  %v5534_v40 = vand.u32 4294901760, %v4867_v12 }
 0x286   : > { %1016 = vst.msk [vmem:[#allocation2 + $0x50] sm:$0xff] %vm1005_vm5, %v930_v15  ;;  %v1157_v61 = vpop.permute.xlu0 %1156  ;;  %v2180_v8 = vsub.f32 %v4861_v17, %v5530_v9  ;;  %v739_v49 = vpop.permute.xlu2 %738  ;;  %v4884_v15 = vld [vmem:[%s3566_s16 + $0xca] sm:$0xff] }
 0x287   : > { %1226 = vst.msk [vmem:[#allocation2 + $0xd8] sm:$0xff] %vm1198_vm6, %v1157_v61  ;;  %v2044_v13 = vsub.f32 %v4867_v12, %v5534_v40 }
 0x288   : > { %1419 = vst.msk [vmem:[#allocation2 + $0xd8] sm:$0xff] %vm1391_vm7, %v1350_v30  ;;  %v2181_v62 = vand.u32 4294901760, %v2180_v8 }
 0x289   : > { %v2045_v28 = vand.u32 4294901760, %v2044_v13  ;;  %824 = vst.msk [vmem:[#allocation2 + $0x58] sm:$0xff] %vm812_vm4, %v739_v49  ;;  %v3384_v49 = vld [vmem:[%s3566_s16 + $0x1a1] sm:$0xff] }
 0x28a   : > { %2182 = vmatmul.f32.gmra.mxu2 %v2181_v62 }
 0x28b   : > { %2046 = vmatmul.f32.gmra.mxu0 %v2045_v28  ;;  %778 = vrot.lane.b32.xlu1 %v4623_v3, %s3522_s20 }
 0x28c   : > { %1707 = vrot.lane.b32.xlu0 %v4884_v15, %s3526_s24  ;;  %971 = vrot.lane.b32.xlu2 %v4763_v52, %s3521_s19  ;;  %v3367_v52 = vld [vmem:[%s3566_s16 + $0xd9] sm:$0xff] }
 0x28d   : > { %v1543_v2 = vpop.permute.xlu1 %1542 }
 0x28e   : > { %1612 = vst.msk [vmem:[#allocation2 + $0xd8] sm:$0xff] %vm1584_vm8, %v1543_v2  ;;  %v1123_v30 = vpop.permute.xlu0 %1122  ;;  %v1352_v28 = vpop.permute.xlu2 %1351  ;;  %v3448_v2 = vld [vmem:[%s3566_s16 + $0x1a2] sm:$0xff] }
 0x28f   : > { %1209 = vst.msk [vmem:[#allocation2 + $0x50] sm:$0xff] %vm1198_vm6, %v1123_v30 }
 0x290   : > { %1402 = vst.msk [vmem:[#allocation2 + $0x50] sm:$0xff] %vm1391_vm7, %v1316_v19 }
 0x293   : > { %1164 = vrot.lane.b32.xlu1 %v3384_v49, %s3523_s21 }
 0x294   : > { %744 = vrot.lane.b32.xlu0 %v4635_v48, %s3522_s20  ;;  %937 = vrot.lane.b32.xlu2 %v4775_v26, %s3521_s19 }
 0x295   : > { %v1509_v3 = vpop.permute.xlu1 %1508 }
 0x296   : > { %1595 = vst.msk [vmem:[#allocation2 + $0x50] sm:$0xff] %vm1584_vm8, %v1509_v3  ;;  %v1736_v61 = vpop.permute.xlu0 %1735  ;;  %v1318_v19 = vpop.permute.xlu2 %1317 }
 0x297   : > { %1805 = vst.msk [vmem:[#allocation2 + $0xd8] sm:$0xff] %vm1777_vm9, %v1736_v61 }
 0x298   : > { %1788 = vst.msk [vmem:[#allocation2 + $0x50] sm:$0xff] %vm1777_vm9, %v1702_v46 }
 0x29b   : > { %1130 = vrot.lane.b32.xlu1 %v3367_v52, %s3523_s21 }
 0x29c   : > { %1357 = vrot.lane.b32.xlu0 %v4650_v57, %s3525_s23  ;;  %1550 = vrot.lane.b32.xlu2 %v4790_v14, %s3524_s22 }
 0x29d   : > { %v966_v48 = vpop.permute.xlu1 %965 }
 0x29e   : > { %v773_v8 = vpop.permute.xlu0 %772  ;;  %v1837_v13 = vld [vmem:[#allocation2 + $0xd8] sm:$0xff]  ;;  %v1704_v49 = vpop.permute.xlu2 %1703 }
 0x29f   : > { %841 = vst.msk [vmem:[#allocation2 + $0xe0] sm:$0xff] %vm812_vm4, %v773_v8  ;;  %v1930_v26 = vsel %vm1847_vm10, %v1837_v13, 0  ;;  %v1820_v62 = vld [vmem:[#allocation2 + $0x50] sm:$0xff] }
 0x2a0   : > { %1034 = vst.msk [vmem:[#allocation2 + $0xe0] sm:$0xff] %vm1005_vm5, %v966_v48  ;;  %v4914_v46 = vand.u32 4294901760, %v1930_v26  ;;  %v1879_v30 = vsel %vm1847_vm10, %v1820_v62, 0 }
 0x2a1   : > { %v4918_v57 = vand.u32 4294901760, %v1879_v30 }
 0x2a2   : > { %5555 = vst [vmem:[#allocation6_spill] sm:$0xff] %v4914_v46  ;;  %2376 = vmatmul.f32.gmra.mxu3 %v4914_v46  ;;  %v4922_v3 = vsub.f32 %v1930_v26, %v4914_v46 }
 0x2a3   : > { %1743 = vrot.lane.b32.xlu1 %v3448_v2, %s3526_s24  ;;  %2308 = vmatmul.f32.gmra.mxu1 %v4918_v57  ;;  %v4927_v14 = vsub.f32 %v1879_v30, %v4918_v57  ;;  %v3431_v30 = vld [vmem:[%s3566_s16 + $0xda] sm:$0xff] }
 0x2a4   : > { %1323 = vrot.lane.b32.xlu0 %v4665_v18, %s3525_s23  ;;  %v5528_v61 = vand.u32 4294901760, %v4922_v3  ;;  %1516 = vrot.lane.b32.xlu2 %v4805_v51, %s3524_s22 }
 0x2a5   : > { %v932_v52 = vpop.permute.xlu1 %931  ;;  %v5532_v48 = vand.u32 4294901760, %v4927_v14 }
 0x2a6   : > { %1017 = vst.msk [vmem:[#allocation2 + $0x58] sm:$0xff] %vm1005_vm5, %v932_v52  ;;  %v1159_v8 = vpop.permute.xlu0 %1158  ;;  %v2188_v13 = vsub.f32 %v4922_v3, %v5528_v61  ;;  %v741_v62 = vpop.permute.xlu2 %740 }
 0x2a7   : > { %1227 = vst.msk [vmem:[#allocation2 + $0xe0] sm:$0xff] %vm1198_vm6, %v1159_v8  ;;  %v2052_v18 = vsub.f32 %v4927_v14, %v5532_v48  ;;  %v3368_v8 = vld [vmem:[%s3566_s16 + $0xe1] sm:$0xff] }
 0x2a8   : > { %1420 = vst.msk [vmem:[#allocation2 + $0xe0] sm:$0xff] %vm1391_vm7, %v1352_v28  ;;  %v2189_v26 = vand.u32 4294901760, %v2188_v13 }
 0x2a9   : > { %v2053_v2 = vand.u32 4294901760, %v2052_v18  ;;  %825 = vst.msk [vmem:[#allocation2 + $0x60] sm:$0xff] %vm812_vm4, %v741_v62 }
 0x2aa   : > { %2190 = vmatmul.f32.gmra.mxu2 %v2189_v26 }
 0x2ab   : > { %2054 = vmatmul.f32.gmra.mxu0 %v2053_v2  ;;  %746 = vrot.lane.b32.xlu1 %v4705_v5, %s3522_s20 }
 0x2ac   : > { %1709 = vrot.lane.b32.xlu0 %v3431_v30, %s3526_s24  ;;  %939 = vrot.lane.b32.xlu2 %v4842_v39, %s3521_s19 }
 0x2ad   : > { %v1545_v51 = vpop.permute.xlu1 %1544 }
 0x2ae   : > { %1613 = vst.msk [vmem:[#allocation2 + $0xe0] sm:$0xff] %vm1584_vm8, %v1545_v51  ;;  %v1125_v52 = vpop.permute.xlu0 %1124  ;;  %v1354_v28 = vpop.permute.xlu2 %1353 }
 0x2af   : > { %1210 = vst.msk [vmem:[#allocation2 + $0x58] sm:$0xff] %vm1198_vm6, %v1125_v52 }
 0x2b0   : > { %1403 = vst.msk [vmem:[#allocation2 + $0x58] sm:$0xff] %vm1391_vm7, %v1318_v19  ;;  %v3432_v19 = vld [vmem:[%s3566_s16 + $0xe2] sm:$0xff] }
 0x2b3   : > { %1325 = vrot.lane.b32.xlu1 %v4735_v4, %s3525_s23 }
 0x2b4   : > { %1132 = vrot.lane.b32.xlu0 %v3368_v8, %s3523_s21  ;;  %1518 = vrot.lane.b32.xlu2 %v4884_v15, %s3524_s22 }
 0x2b5   : > { %v1511_v5 = vpop.permute.xlu1 %1510 }
 0x2b6   : > { %1596 = vst.msk [vmem:[#allocation2 + $0x58] sm:$0xff] %vm1584_vm8, %v1511_v5  ;;  %v1738_v13 = vpop.permute.xlu0 %1737  ;;  %v1320_v39 = vpop.permute.xlu2 %1319 }
 0x2b7   : > { %1806 = vst.msk [vmem:[#allocation2 + $0xe0] sm:$0xff] %vm1777_vm9, %v1738_v13 }
 0x2b8   : > { %1789 = vst.msk [vmem:[#allocation2 + $0x58] sm:$0xff] %vm1777_vm9, %v1704_v49 }
 0x2bc   : > { %1711 = vrot.lane.b32.xlu0 %v3432_v19, %s3526_s24 }
 0x2bd   : > { %v968_v18 = vpop.permute.xlu1 %967 }
 0x2be   : > { %v775_v26 = vpop.permute.xlu0 %774  ;;  %v1838_v4 = vld [vmem:[#allocation2 + $0xe0] sm:$0xff]  ;;  %v1706_v51 = vpop.permute.xlu2 %1705 }
 0x2bf   : > { %842 = vst.msk [vmem:[#allocation2 + $0xe8] sm:$0xff] %vm812_vm4, %v775_v26  ;;  %v1933_v62 = vsel %vm1847_vm10, %v1838_v4, 0  ;;  %v1821_v2 = vld [vmem:[#allocation2 + $0x58] sm:$0xff] }
 0x2c0   : > { %1035 = vst.msk [vmem:[#allocation2 + $0xe8] sm:$0xff] %vm1005_vm5, %v968_v18  ;;  %v4968_v30 = vand.u32 4294901760, %v1933_v62  ;;  %v1882_v15 = vsel %vm1847_vm10, %v1821_v2, 0 }
 0x2c1   : > { %v4971_v49 = vand.u32 4294901760, %v1882_v15 }
 0x2c2   : > { %5556 = vst [vmem:[#allocation7_spill] sm:$0xff] %v4968_v30  ;;  %2380 = vmatmul.f32.gmra.mxu3 %v4968_v30  ;;  %v4975_v52 = vsub.f32 %v1933_v62, %v4968_v30 }
 0x2c3   : > { %2312 = vmatmul.f32.gmra.mxu1 %v4971_v49  ;;  %v4979_v8 = vsub.f32 %v1882_v15, %v4971_v49 }
 0x2c4   : > { %v5529_v5 = vand.u32 4294901760, %v4975_v52 }
 0x2c5   : > { %v934_v13 = vpop.permute.xlu1 %933  ;;  %v5531_v19 = vand.u32 4294901760, %v4979_v8 }
 0x2c6   : > { %1018 = vst.msk [vmem:[#allocation2 + $0x60] sm:$0xff] %vm1005_vm5, %v934_v13  ;;  %v1161_v18 = vpop.permute.xlu0 %1160  ;;  %v2196_v26 = vsub.f32 %v4975_v52, %v5529_v5  ;;  %v743_v2 = vpop.permute.xlu2 %742 }
 0x2c7   : > { %1228 = vst.msk [vmem:[#allocation2 + $0xe8] sm:$0xff] %vm1198_vm6, %v1161_v18  ;;  %v2060_v4 = vsub.f32 %v4979_v8, %v5531_v19 }
 0x2c8   : > { %1421 = vst.msk [vmem:[#allocation2 + $0xe8] sm:$0xff] %vm1391_vm7, %v1354_v28  ;;  %v2197_v62 = vand.u32 4294901760, %v2196_v26 }
 0x2c9   : > { %v2061_v15 = vand.u32 4294901760, %v2060_v4  ;;  %826 = vst.msk [vmem:[#allocation2 + $0x68] sm:$0xff] %vm812_vm4, %v743_v2 }
 0x2ca   : > { %2198 = vmatmul.f32.gmra.mxu2 %v2197_v62 }
 0x2cb   : > { %2062 = vmatmul.f32.gmra.mxu0 %v2061_v15 }
 0x2cd   : > { %v1547_v13 = vpop.permute.xlu1 %1546 }
 0x2ce   : > { %1614 = vst.msk [vmem:[#allocation2 + $0xe8] sm:$0xff] %vm1584_vm8, %v1547_v13  ;;  %v1127_v61 = vpop.permute.xlu0 %1126  ;;  %v1356_v18 = vpop.permute.xlu2 %1355 }
 0x2cf   : > { %1211 = vst.msk [vmem:[#allocation2 + $0x60] sm:$0xff] %vm1198_vm6, %v1127_v61 }
 0x2d0   : > { %1404 = vst.msk [vmem:[#allocation2 + $0x60] sm:$0xff] %vm1391_vm7, %v1320_v39 }
 0x2d5   : > { %v1513_v5 = vpop.permute.xlu1 %1512 }
 0x2d6   : > { %1597 = vst.msk [vmem:[#allocation2 + $0x60] sm:$0xff] %vm1584_vm8, %v1513_v5  ;;  %v1740_v28 = vpop.permute.xlu0 %1739  ;;  %v1322_v26 = vpop.permute.xlu2 %1321 }
 0x2d7   : > { %1807 = vst.msk [vmem:[#allocation2 + $0xe8] sm:$0xff] %vm1777_vm9, %v1740_v28 }
 0x2d8   : > { %1790 = vst.msk [vmem:[#allocation2 + $0x60] sm:$0xff] %vm1777_vm9, %v1706_v51 }
 0x2dd   : > { %v970_v4 = vpop.permute.xlu1 %969 }
 0x2de   : > { %v777_v62 = vpop.permute.xlu0 %776  ;;  %v1839_v2 = vld [vmem:[#allocation2 + $0xe8] sm:$0xff]  ;;  %v586_v13 = vpop.permute.xlu2 %585 }
 0x2df   : > { %843 = vst.msk [vmem:[#allocation2 + $0xf0] sm:$0xff] %vm812_vm4, %v777_v62  ;;  %v1936_v15 = vsel %vm1847_vm10, %v1839_v2, 0  ;;  %v1822_v61 = vld [vmem:[#allocation2 + $0x60] sm:$0xff] }
 0x2e0   : > { %1036 = vst.msk [vmem:[#allocation2 + $0xf0] sm:$0xff] %vm1005_vm5, %v970_v4  ;;  %v5002_v39 = vand.u32 4294901760, %v1936_v15  ;;  %v1885_v5 = vsel %vm1847_vm10, %v1822_v61, 0 }
 0x2e1   : > { %v5005_v9 = vand.u32 4294901760, %v1885_v5  ;;  %651 = vst.msk [vmem:[#allocation2 + $0xf8] sm:$0xff] %vm619_vm2, %v586_v13 }
 0x2e2   : > { %5557 = vst [vmem:[#allocation8_spill] sm:$0xff] %v5002_v39  ;;  %2384 = vmatmul.f32.gmra.mxu3 %v5002_v39  ;;  %v5010_v51 = vsub.f32 %v1936_v15, %v5002_v39 }
 0x2e3   : > { %2316 = vmatmul.f32.gmra.mxu1 %v5005_v9  ;;  %v5014_v28 = vsub.f32 %v1885_v5, %v5005_v9 }
 0x2e4   : > { %v5533_v4 = vand.u32 4294901760, %v5010_v51 }
 0x2e5   : > { %v936_v62 = vpop.permute.xlu1 %935  ;;  %v5535_v2 = vand.u32 4294901760, %v5014_v28 }
 0x2e6   : > { %1019 = vst.msk [vmem:[#allocation2 + $0x68] sm:$0xff] %vm1005_vm5, %v936_v62  ;;  %v1163_v61 = vpop.permute.xlu0 %1162  ;;  %v2204_v13 = vsub.f32 %v5010_v51, %v5533_v4  ;;  %v972_v4 = vpop.permute.xlu2 %971 }
 0x2e7   : > { %1229 = vst.msk [vmem:[#allocation2 + $0xf0] sm:$0xff] %vm1198_vm6, %v1163_v61  ;;  %v2068_v15 = vsub.f32 %v5014_v28, %v5535_v2 }
 0x2e8   : > { %v2205_v5 = vand.u32 4294901760, %v2204_v13  ;;  %1422 = vst.msk [vmem:[#allocation2 + $0xf0] sm:$0xff] %vm1391_vm7, %v1356_v18 }
 0x2e9   : > { %v2069_v19 = vand.u32 4294901760, %v2068_v15 }
 0x2ea   : > { %2206 = vmatmul.f32.gmra.mxu2 %v2205_v5 }
 0x2eb   : > { %2070 = vmatmul.f32.gmra.mxu0 %v2069_v19 }
 0x2ed   : > { %v1549_v48 = vpop.permute.xlu1 %1548 }
 0x2ee   : > { %1615 = vst.msk [vmem:[#allocation2 + $0xf0] sm:$0xff] %vm1584_vm8, %v1549_v48  ;;  %v1129_v62 = vpop.permute.xlu0 %1128  ;;  %v938_v15 = vpop.permute.xlu2 %937 }
 0x2ef   : > { %1212 = vst.msk [vmem:[#allocation2 + $0x68] sm:$0xff] %vm1198_vm6, %v1129_v62 }
 0x2f0   : > { %1405 = vst.msk [vmem:[#allocation2 + $0x68] sm:$0xff] %vm1391_vm7, %v1322_v26 }
 0x2f5   : > { %v1515_v61 = vpop.permute.xlu1 %1514 }
 0x2f6   : > { %1598 = vst.msk [vmem:[#allocation2 + $0x68] sm:$0xff] %vm1584_vm8, %v1515_v61  ;;  %v1742_v40 = vpop.permute.xlu0 %1741 }
 0x2f7   : > { %1808 = vst.msk [vmem:[#allocation2 + $0xf0] sm:$0xff] %vm1777_vm9, %v1742_v40 }
 0x2fd   : > { %v779_v13 = vpop.permute.xlu1 %778 }
 0x2fe   : > { %844 = vst.msk [vmem:[#allocation2 + $0xf8] sm:$0xff] %vm812_vm4, %v779_v13  ;;  %v1708_v18 = vpop.permute.xlu0 %1707  ;;  %v1840_v19 = vld [vmem:[#allocation2 + $0xf0] sm:$0xff] }
 0x2ff   : > { %1791 = vst.msk [vmem:[#allocation2 + $0x68] sm:$0xff] %vm1777_vm9, %v1708_v18  ;;  %v1939_v48 = vsel %vm1847_vm10, %v1840_v19, 0 }
 0x300   : > { %v5035_v5 = vand.u32 4294901760, %v1939_v48  ;;  %1037 = vst.msk [vmem:[#allocation2 + $0xf8] sm:$0xff] %vm1005_vm5, %v972_v4 }
 0x302   : > { %5558 = vst [vmem:[#allocation9_spill] sm:$0xff] %v5035_v5  ;;  %2388 = vmatmul.f32.gmra.mxu3 %v5035_v5  ;;  %v5040_v26 = vsub.f32 %v1939_v48, %v5035_v5  ;;  %v1551_v48 = vpop.permute.xlu2 %1550 }
 0x304   : > { %v5538_v40 = vand.u32 4294901760, %v5040_v26 }
 0x305   : > { %v1165_v62 = vpop.permute.xlu1 %1164 }
 0x306   : > { %1230 = vst.msk [vmem:[#allocation2 + $0xf8] sm:$0xff] %vm1198_vm6, %v1165_v62  ;;  %v745_v61 = vpop.permute.xlu0 %744  ;;  %v2212_v13 = vsub.f32 %v5040_v26, %v5538_v40  ;;  %v1823_v18 = vld [vmem:[#allocation2 + $0x68] sm:$0xff] }
 0x307   : > { %827 = vst.msk [vmem:[#allocation2 + $0x70] sm:$0xff] %vm812_vm4, %v745_v61  ;;  %v1888_v4 = vsel %vm1847_vm10, %v1823_v18, 0 }
 0x308   : > { %v2213_v19 = vand.u32 4294901760, %v2212_v13  ;;  %v5049_v2 = vand.u32 4294901760, %v1888_v4  ;;  %1020 = vst.msk [vmem:[#allocation2 + $0x70] sm:$0xff] %vm1005_vm5, %v938_v15 }
 0x30a   : > { %2214 = vmatmul.f32.gmra.mxu2 %v2213_v19  ;;  %2320 = vmatmul.f32.gmra.mxu1 %v5049_v2  ;;  %v5054_v62 = vsub.f32 %v1888_v4, %v5049_v2  ;;  %v1517_v18 = vpop.permute.xlu2 %1516 }
 0x30c   : > { %v5545_v5 = vand.u32 4294901760, %v5054_v62 }
 0x30d   : > { %v1131_v40 = vpop.permute.xlu1 %1130 }
 0x30e   : > { %1213 = vst.msk [vmem:[#allocation2 + $0x70] sm:$0xff] %vm1198_vm6, %v1131_v40  ;;  %v1358_v61 = vpop.permute.xlu0 %1357  ;;  %v2076_v13 = vsub.f32 %v5054_v62, %v5545_v5 }
 0x30f   : > { %1423 = vst.msk [vmem:[#allocation2 + $0xf8] sm:$0xff] %vm1391_vm7, %v1358_v61 }
 0x310   : > { %v2077_v15 = vand.u32 4294901760, %v2076_v13  ;;  %1616 = vst.msk [vmem:[#allocation2 + $0xf8] sm:$0xff] %vm1584_vm8, %v1551_v48 }
 0x312   : > { %2078 = vmatmul.f32.gmra.mxu0 %v2077_v15  ;;  %v940_v40 = vpop.permute.xlu2 %939 }
 0x315   : > { %v1744_v19 = vpop.permute.xlu1 %1743 }
 0x316   : > { %1809 = vst.msk [vmem:[#allocation2 + $0xf8] sm:$0xff] %vm1777_vm9, %v1744_v19  ;;  %v1324_v4 = vpop.permute.xlu0 %1323 }
 0x317   : > { %1406 = vst.msk [vmem:[#allocation2 + $0x70] sm:$0xff] %vm1391_vm7, %v1324_v4 }
 0x318   : > { %1599 = vst.msk [vmem:[#allocation2 + $0x70] sm:$0xff] %vm1584_vm8, %v1517_v18 }
 0x31a   : > { %v1519_v19 = vpop.permute.xlu2 %1518 }
 0x31d   : > { %v1841_v39 = vld [vmem:[#allocation2 + $0xf8] sm:$0xff]  ;;  %v747_v30 = vpop.permute.xlu1 %746 }
 0x31e   : > { %v1710_v46 = vpop.permute.xlu0 %1709  ;;  %v1942_v5 = vsel %vm1847_vm10, %v1841_v39, 0  ;;  %828 = vst.msk [vmem:[#allocation2 + $0x78] sm:$0xff] %vm812_vm4, %v747_v30 }
 0x31f   : > { %1792 = vst.msk [vmem:[#allocation2 + $0x70] sm:$0xff] %vm1777_vm9, %v1710_v46  ;;  %v5069_v48 = vand.u32 4294901760, %v1942_v5 }
 0x320   : > { %1021 = vst.msk [vmem:[#allocation2 + $0x78] sm:$0xff] %vm1005_vm5, %v940_v40 }
 0x321   : > { %5559 = vst [vmem:[#allocation10_spill] sm:$0xff] %v5069_v48  ;;  %2392 = vmatmul.f32.gmra.mxu3 %v5069_v48  ;;  %v5074_v61 = vsub.f32 %v1942_v5, %v5069_v48  ;;  %v5561_v5 = vand.u32 4294901760, %v4243_v27  ;;  %v5092_v48 = vpop.f32.mrf.mxu3 }
 0x322   : > { %5562 = vst [vmem:[#allocation12_spill] sm:$0xff] %v5092_v48 }
 0x323   : > { %5560 = vst [vmem:[#allocation11_spill] sm:$0xff] %v5074_v61  ;;  %v5546_v13 = vand.u32 4294901760, %v5074_v61 }
 0x325   : > { %v2220_v15 = vsub.f32 %v5074_v61, %v5546_v13  ;;  %v1326_v39 = vpop.permute.xlu1 %1325 }
 0x326   : > { %v1133_v18 = vpop.permute.xlu0 %1132  ;;  %v1824_v30 = vld [vmem:[#allocation2 + $0x70] sm:$0xff] }
 0x327   : > { %1214 = vst.msk [vmem:[#allocation2 + $0x78] sm:$0xff] %vm1198_vm6, %v1133_v18  ;;  %v2221_v46 = vand.u32 4294901760, %v2220_v15  ;;  %v1891_v4 = vsel %vm1847_vm10, %v1824_v30, 0 }
 0x328   : > { %v5082_v40 = vand.u32 4294901760, %v1891_v4  ;;  %1407 = vst.msk [vmem:[#allocation2 + $0x78] sm:$0xff] %vm1391_vm7, %v1326_v39 }
 0x329   : > { %2222 = vmatmul.f32.gmra.mxu2 %v2221_v46  ;;  %2607 = vmatmul.f32.vlgmr.msrb.gmra.mxu3 %v5561_v5  ;;  %1600 = vst.msk [vmem:[#allocation2 + $0x78] sm:$0xff] %vm1584_vm8, %v1519_v19  ;;  %v5563_v19 = vand.u32 4294901760, %v4312_v47  ;;  %v5102_v46 = vpop.f32.mrf.mxu2 }
 0x32a   : > { %2324 = vmatmul.f32.gmra.mxu1 %v5082_v40  ;;  %v5090_v13 = vsub.f32 %v1891_v4, %v5082_v40  ;;  %5564 = vst [vmem:[#allocation13_spill] sm:$0xff] %v5102_v46  ;;  %v5104_v4 = vpop.f32.mrf.mxu3  ;;  %v5612_v46 = vand.u32 4294901760, %v4236_v23 }
 0x32b   : > { %5565 = vst [vmem:[#allocation14_spill] sm:$0xff] %v5104_v4  ;;  %v5134_v4 = vpop.f32.mrf.mxu0 }
 0x32c   : > { %v5551_v15 = vand.u32 4294901760, %v5090_v13 }
 0x32e   : > { %v1712_v18 = vpop.permute.xlu0 %1711  ;;  %v2084_v39 = vsub.f32 %v5090_v13, %v5551_v15  ;;  %v5124_v15 = vpop.f32.mrf.mxu1 }
 0x32f   : > { %1793 = vst.msk [vmem:[#allocation2 + $0x78] sm:$0xff] %vm1777_vm9, %v1712_v18  ;;  %v5566_v18 = vand.u32 4294901760, %v4382_v32 }
 0x330   : > { %v2085_v30 = vand.u32 4294901760, %v2084_v39 }
 0x331   : > { %2424 = vmatmul.f32.vlgmr.msrb.gmra.mxu2 %v4243_v27  ;;  %2613 = vmatmul.f32.gmra.mxu3 %v5563_v19  ;;  %v5116_v39 = vpop.f32.mrf.mxu2 }
 0x332   : > { %2086 = vmatmul.f32.gmra.mxu0 %v2085_v30  ;;  %5567 = vst [vmem:[#allocation15_spill] sm:$0xff] %v5116_v39  ;;  %v5118_v30 = vpop.f32.mrf.mxu3 }
 0x333   : > { %5568 = vst [vmem:[#allocation16_spill] sm:$0xff] %v5118_v30 }
 0x336   : > { %v1825_v5 = vld [vmem:[#allocation2 + $0x78] sm:$0xff]  ;;  %v5136_v39 = vpop.f32.mrf.mxu1 }
 0x337   : > { %v1894_v48 = vsel %vm1847_vm10, %v1825_v5, 0 }
 0x338   : > { %v5107_v61 = vand.u32 4294901760, %v1894_v48 }
 0x339   : > { %2429 = vmatmul.f32.gmra.mxu2 %v4312_v47  ;;  %2619 = vmatmul.f32.gmra.mxu3 %v5566_v18  ;;  %v5569_v18 = vand.u32 4294901760, %v4452_v44 }
 0x33a   : > { %2328 = vmatmul.f32.gmra.mxu1 %v5107_v61  ;;  %v5114_v27 = vsub.f32 %v1894_v48, %v5107_v61  ;;  %v5130_v48 = vpop.f32.mrf.mxu2  ;;  %v5132_v30 = vpop.f32.mrf.mxu3 }
 0x33b   : > { %5570 = vst [vmem:[#allocation17_spill] sm:$0xff] %v5130_v48 }
 0x33c   : > { %v5552_v19 = vand.u32 4294901760, %v5114_v27  ;;  %5571 = vst [vmem:[#allocation18_spill] sm:$0xff] %v5132_v30  ;;  %v5575_v30 = vand.u32 4294901760, %v4592_v11 }
 0x33e   : > { %v2092_v5 = vsub.f32 %v5114_v27, %v5552_v19  ;;  %v5149_v19 = vpop.f32.mrf.mxu1 }
 0x340   : > { %v2093_v47 = vand.u32 4294901760, %v2092_v5  ;;  %v5572_v5 = vand.u32 4294901760, %v4522_v38 }
 0x341   : > { %2434 = vmatmul.f32.gmra.mxu2 %v4382_v32  ;;  %2625 = vmatmul.f32.gmra.mxu3 %v5569_v18  ;;  %v5147_v18 = vpop.f32.mrf.mxu0 }
 0x342   : > { %2094 = vmatmul.f32.gmra.mxu0 %v2093_v47  ;;  %2979 = vmatmul.f32.vlgmr.msrb.gmra.mxu1 %v4232_v21  ;;  %v5143_v32 = vpop.f32.mrf.mxu2  ;;  %v5145_v47 = vpop.f32.mrf.mxu3 }
 0x343   : > { %5573 = vst [vmem:[#allocation19_spill] sm:$0xff] %v5143_v32  ;;  %v5578_v32 = vand.u32 4294901760, %v4662_v43 }
 0x344   : > { %5574 = vst [vmem:[#allocation20_spill] sm:$0xff] %v5145_v47 }
 0x346   : > { %v5162_v47 = vpop.f32.mrf.mxu1 }
 0x349   : > { %2439 = vmatmul.f32.gmra.mxu2 %v4452_v44  ;;  %2631 = vmatmul.f32.gmra.mxu3 %v5572_v5  ;;  %v5160_v5 = vpop.f32.mrf.mxu0 }
 0x34a   : > { %2829 = vmatmul.f32.vlgmr.msrb.gmra.mxu0 %v4232_v21  ;;  %2983 = vmatmul.f32.gmra.mxu1 %v4302_v60  ;;  %v5156_v21 = vpop.f32.mrf.mxu2  ;;  %v5158_v44 = vpop.f32.mrf.mxu3 }
 0x34b   : > { %5576 = vst [vmem:[#allocation21_spill] sm:$0xff] %v5156_v21  ;;  %v5581_v21 = vand.u32 4294901760, %v4732_v20 }
 0x34c   : > { %5577 = vst [vmem:[#allocation22_spill] sm:$0xff] %v5158_v44 }
 0x34e   : > { %v5175_v44 = vpop.f32.mrf.mxu1 }
 0x351   : > { %2444 = vmatmul.f32.gmra.mxu2 %v4522_v38  ;;  %2637 = vmatmul.f32.gmra.mxu3 %v5575_v30  ;;  %v5173_v30 = vpop.f32.mrf.mxu0 }
 0x352   : > { %2833 = vmatmul.f32.gmra.mxu0 %v4302_v60  ;;  %2987 = vmatmul.f32.gmra.mxu1 %v4372_v41  ;;  %v5169_v60 = vpop.f32.mrf.mxu2  ;;  %v5171_v38 = vpop.f32.mrf.mxu3 }
 0x353   : > { %5579 = vst [vmem:[#allocation23_spill] sm:$0xff] %v5169_v60  ;;  %v5584_v60 = vand.u32 4294901760, %v4802_v10 }
 0x354   : > { %5580 = vst [vmem:[#allocation24_spill] sm:$0xff] %v5171_v38 }
 0x356   : > { %v5188_v38 = vpop.f32.mrf.mxu1 }
 0x359   : > { %2449 = vmatmul.f32.gmra.mxu2 %v4592_v11  ;;  %2643 = vmatmul.f32.gmra.mxu3 %v5578_v32  ;;  %v5186_v32 = vpop.f32.mrf.mxu0 }
 0x35a   : > { %2837 = vmatmul.f32.gmra.mxu0 %v4372_v41  ;;  %2991 = vmatmul.f32.gmra.mxu1 %v4442_v29  ;;  %v5182_v41 = vpop.f32.mrf.mxu2  ;;  %v5184_v11 = vpop.f32.mrf.mxu3 }
 0x35b   : > { %5582 = vst [vmem:[#allocation25_spill] sm:$0xff] %v5182_v41  ;;  %v5587_v41 = vand.u32 4294901760, %v4867_v12 }
 0x35c   : > { %5583 = vst [vmem:[#allocation26_spill] sm:$0xff] %v5184_v11 }
 0x35e   : > { %v5201_v11 = vpop.f32.mrf.mxu1 }
 0x361   : > { %2454 = vmatmul.f32.gmra.mxu2 %v4662_v43  ;;  %2649 = vmatmul.f32.gmra.mxu3 %v5581_v21  ;;  %v5199_v21 = vpop.f32.mrf.mxu0 }
 0x362   : > { %2841 = vmatmul.f32.gmra.mxu0 %v4442_v29  ;;  %2995 = vmatmul.f32.gmra.mxu1 %v4512_v37  ;;  %v5195_v29 = vpop.f32.mrf.mxu2  ;;  %v5197_v43 = vpop.f32.mrf.mxu3 }
 0x363   : > { %5585 = vst [vmem:[#allocation27_spill] sm:$0xff] %v5195_v29  ;;  %v5590_v29 = vand.u32 4294901760, %v4927_v14 }
 0x364   : > { %5586 = vst [vmem:[#allocation28_spill] sm:$0xff] %v5197_v43 }
 0x366   : > { %v5214_v43 = vpop.f32.mrf.mxu1 }
 0x369   : > { %2459 = vmatmul.f32.gmra.mxu2 %v4732_v20  ;;  %2655 = vmatmul.f32.gmra.mxu3 %v5584_v60  ;;  %v5212_v60 = vpop.f32.mrf.mxu0 }
 0x36a   : > { %2845 = vmatmul.f32.gmra.mxu0 %v4512_v37  ;;  %2999 = vmatmul.f32.gmra.mxu1 %v4582_v50  ;;  %v5208_v37 = vpop.f32.mrf.mxu2  ;;  %v5210_v20 = vpop.f32.mrf.mxu3 }
 0x36b   : > { %5588 = vst [vmem:[#allocation29_spill] sm:$0xff] %v5208_v37  ;;  %v5593_v37 = vand.u32 4294901760, %v4979_v8 }
 0x36c   : > { %5589 = vst [vmem:[#allocation30_spill] sm:$0xff] %v5210_v20 }
 0x36e   : > { %v5227_v20 = vpop.f32.mrf.mxu1 }
 0x371   : > { %2464 = vmatmul.f32.gmra.mxu2 %v4802_v10  ;;  %2661 = vmatmul.f32.gmra.mxu3 %v5587_v41  ;;  %v5225_v41 = vpop.f32.mrf.mxu0 }
 0x372   : > { %2849 = vmatmul.f32.gmra.mxu0 %v4582_v50  ;;  %3003 = vmatmul.f32.gmra.mxu1 %v4652_v45  ;;  %v5221_v50 = vpop.f32.mrf.mxu2  ;;  %v5223_v10 = vpop.f32.mrf.mxu3 }
 0x373   : > { %5591 = vst [vmem:[#allocation31_spill] sm:$0xff] %v5221_v50  ;;  %v5596_v50 = vand.u32 4294901760, %v5014_v28 }
 0x374   : > { %5592 = vst [vmem:[#allocation32_spill] sm:$0xff] %v5223_v10 }
 0x376   : > { %v5240_v10 = vpop.f32.mrf.mxu1 }
 0x379   : > { %2469 = vmatmul.f32.gmra.mxu2 %v4867_v12  ;;  %2667 = vmatmul.f32.gmra.mxu3 %v5590_v29  ;;  %v5238_v29 = vpop.f32.mrf.mxu0 }
 0x37a   : > { %2853 = vmatmul.f32.gmra.mxu0 %v4652_v45  ;;  %3007 = vmatmul.f32.gmra.mxu1 %v4722_v0  ;;  %v5234_v45 = vpop.f32.mrf.mxu2  ;;  %v5236_v12 = vpop.f32.mrf.mxu3 }
 0x37b   : > { %5594 = vst [vmem:[#allocation33_spill] sm:$0xff] %v5234_v45  ;;  %v5599_v45 = vand.u32 4294901760, %v5054_v62 }
 0x37c   : > { %5595 = vst [vmem:[#allocation34_spill] sm:$0xff] %v5236_v12 }
 0x37e   : > { %v5253_v12 = vpop.f32.mrf.mxu1 }
 0x381   : > { %2474 = vmatmul.f32.gmra.mxu2 %v4927_v14  ;;  %2673 = vmatmul.f32.gmra.mxu3 %v5593_v37  ;;  %v5251_v37 = vpop.f32.mrf.mxu0 }
 0x382   : > { %2857 = vmatmul.f32.gmra.mxu0 %v4722_v0  ;;  %3011 = vmatmul.f32.gmra.mxu1 %v4792_v33  ;;  %v5247_v0 = vpop.f32.mrf.mxu2  ;;  %v5249_v14 = vpop.f32.mrf.mxu3 }
 0x383   : > { %5597 = vst [vmem:[#allocation35_spill] sm:$0xff] %v5247_v0  ;;  %v5602_v0 = vand.u32 4294901760, %v5090_v13 }
 0x384   : > { %5598 = vst [vmem:[#allocation36_spill] sm:$0xff] %v5249_v14 }
 0x386   : > { %v5266_v14 = vpop.f32.mrf.mxu1 }
 0x389   : > { %2479 = vmatmul.f32.gmra.mxu2 %v4979_v8  ;;  %2679 = vmatmul.f32.gmra.mxu3 %v5596_v50  ;;  %v5264_v50 = vpop.f32.mrf.mxu0 }
 0x38a   : > { %2861 = vmatmul.f32.gmra.mxu0 %v4792_v33  ;;  %3015 = vmatmul.f32.gmra.mxu1 %v4857_v6  ;;  %v5260_v33 = vpop.f32.mrf.mxu2  ;;  %v5262_v8 = vpop.f32.mrf.mxu3 }
 0x38b   : > { %5600 = vst [vmem:[#allocation37_spill] sm:$0xff] %v5260_v33  ;;  %v5605_v33 = vand.u32 4294901760, %v5114_v27 }
 0x38c   : > { %5601 = vst [vmem:[#allocation38_spill] sm:$0xff] %v5262_v8 }
 0x38e   : > { %v5279_v8 = vpop.f32.mrf.mxu1 }
 0x391   : > { %2484 = vmatmul.f32.gmra.mxu2 %v5014_v28  ;;  %2685 = vmatmul.f32.gmra.mxu3 %v5599_v45  ;;  %v5277_v45 = vpop.f32.mrf.mxu0 }
 0x392   : > { %2865 = vmatmul.f32.gmra.mxu0 %v4857_v6  ;;  %3019 = vmatmul.f32.gmra.mxu1 %v4918_v57  ;;  %v5273_v6 = vpop.f32.mrf.mxu2  ;;  %v5275_v28 = vpop.f32.mrf.mxu3 }
 0x393   : > { %5603 = vst [vmem:[#allocation39_spill] sm:$0xff] %v5273_v6 }
 0x394   : > { %5604 = vst [vmem:[#allocation40_spill] sm:$0xff] %v5275_v28  ;;  %v5608_v28 = vand.u32 4294901760, %v4177_v59 }
 0x396   : > { %v5290_v6 = vpop.f32.mrf.mxu1 }
 0x397   : > { %5607 = vst [vmem:[#allocation42_spill] sm:$0xff] %v5290_v6 }
 0x399   : > { %2489 = vmatmul.f32.gmra.mxu2 %v5054_v62  ;;  %2691 = vmatmul.f32.gmra.mxu3 %v5602_v0  ;;  %v5288_v0 = vpop.f32.mrf.mxu0 }
 0x39a   : > { %2869 = vmatmul.f32.gmra.mxu0 %v4918_v57  ;;  %3023 = vmatmul.f32.gmra.mxu1 %v4971_v49  ;;  %v5286_v57 = vpop.f32.mrf.mxu2 }
 0x39b   : > { %5606 = vst [vmem:[#allocation41_spill] sm:$0xff] %v5286_v57 }
 0x3a1   : > { %2494 = vmatmul.f32.gmra.mxu2 %v5090_v13  ;;  %2697 = vmatmul.f32.gmra.mxu3 %v5605_v33  ;;  %v5299_v48 = vpop.f32.mrf.mxu0 }
 0x3a2   : > { %2873 = vmatmul.f32.gmra.mxu0 %v4971_v49  ;;  %3027 = vmatmul.f32.gmra.mxu1 %v5005_v9  ;;  %5610 = vst [vmem:[#allocation44_spill] sm:$0xff] %v5299_v48  ;;  %v2274_v48 = vadd.f32 %v5136_v39, %v5147_v18 }
 0x3a4   : > { %v2393_v62 = vpop.f32.mrf.mxu3 }
 0x3a7   : > { %v5301_v57 = vpop.f32.mrf.mxu1 }
 0x3a8   : > { %5611 = vst [vmem:[#allocation45_spill] sm:$0xff] %v5301_v57 }
 0x3a9   : > { %2499 = vmatmul.f32.gmra.mxu2 %v5114_v27  ;;  %2703 = vmatmul.f32.gmra.mxu3 %v5608_v28 }
 0x3aa   : > { %2877 = vmatmul.f32.gmra.mxu0 %v5005_v9  ;;  %3031 = vmatmul.f32.gmra.mxu1 %v5049_v2 }
 0x3ac   : > { %v2223_v13 = vpop.f32.mrf.mxu2  ;;  %v2608_v49 = vpop.f32.mrf.mxu3 }
 0x3ad   : > { %v5297_v33 = vadd.f32 %v2393_v62, %v2223_v13  ;;  %v5615_v62 = vand.u32 4294901760, %v4306_v63 }
 0x3af   : > { %5609 = vst [vmem:[#allocation43_spill] sm:$0xff] %v5297_v33  ;;  %v5308_v28 = vpop.f32.mrf.mxu0  ;;  %v2270_v33 = vadd.f32 %v5124_v15, %v5134_v4 }
 0x3b0   : > { %5613 = vst [vmem:[#allocation46_spill] sm:$0xff] %v5308_v28 }
 0x3b1   : > { %2504 = vmatmul.f32.gmra.mxu2 %v4177_v59  ;;  %2709 = vmatmul.f32.gmra.mxu3 %v5612_v46 }
 0x3b2   : > { %2881 = vmatmul.f32.gmra.mxu0 %v5049_v2  ;;  %3035 = vmatmul.f32.gmra.mxu1 %v5082_v40 }
 0x3b4   : > { %v2425_v9 = vpop.f32.mrf.mxu2  ;;  %v2614_v27 = vpop.f32.mrf.mxu3 }
 0x3b7   : > { %v5310_v6 = vpop.f32.mrf.mxu1 }
 0x3b8   : > { %5614 = vst [vmem:[#allocation47_spill] sm:$0xff] %v5310_v6  ;;  %v2426_v6 = vadd.f32 %v2425_v9, %v2270_v33  ;;  %v2278_v33 = vadd.f32 %v5149_v19, %v5160_v5  ;;  %v2282_v19 = vadd.f32 %v5162_v47, %v5173_v30  ;;  %v5620_v5 = vand.u32 4294901760, %v4586_v1 }
 0x3b9   : > { %2509 = vmatmul.f32.gmra.mxu2 %v4236_v23  ;;  %2715 = vmatmul.f32.gmra.mxu3 %v5615_v62  ;;  %v5617_v23 = vand.u32 4294901760, %v4376_v42  ;;  %v2286_v47 = vadd.f32 %v5175_v44, %v5186_v32  ;;  %v5621_v30 = vand.u32 4294901760, %v4656_v35  ;;  %v2290_v44 = vadd.f32 %v5188_v38, %v5199_v21 }
 0x3ba   : > { %2885 = vmatmul.f32.gmra.mxu0 %v5082_v40  ;;  %3039 = vmatmul.f32.gmra.mxu1 %v5107_v61  ;;  %v2609_v57 = vadd.f32 %v2608_v49, %v2426_v6  ;;  %v5622_v32 = vand.u32 4294901760, %v4726_v31  ;;  %v2294_v38 = vadd.f32 %v5201_v11, %v5212_v60  ;;  %v5623_v21 = vand.u32 4294901760, %v4796_v34 }
 0x3bb   : > { %v2298_v11 = vadd.f32 %v5214_v43, %v5225_v41  ;;  %v5624_v60 = vand.u32 4294901760, %v4861_v17  ;;  %v2302_v43 = vadd.f32 %v5227_v20, %v5238_v29  ;;  %v5625_v41 = vand.u32 4294901760, %v4922_v3 }
 0x3bc   : > { %v2430_v59 = vpop.f32.mrf.mxu2  ;;  %v2620_v2 = vpop.f32.mrf.mxu3  ;;  %v2306_v20 = vadd.f32 %v5240_v10, %v5251_v37  ;;  %v5626_v29 = vand.u32 4294901760, %v4975_v52  ;;  %v2310_v10 = vadd.f32 %v5253_v12, %v5264_v50  ;;  %v5628_v37 = vand.u32 4294901760, %v5010_v51 }
 0x3bd   : > { %v2314_v12 = vadd.f32 %v5266_v14, %v5277_v45  ;;  %v5630_v50 = vand.u32 4294901760, %v5040_v26  ;;  %v2318_v14 = vadd.f32 %v5279_v8, %v5288_v0  ;;  %v5632_v45 = vld [vmem:[#allocation11_spill] sm:$0xff]  ;;  %v5635_v8 = vld [vmem:[#allocation44_spill] sm:$0xff]  ;;  %v5636_v0 = vld [vmem:[#allocation42_spill] sm:$0xff] }
 0x3bf   : > { %v5317_v46 = vpop.f32.mrf.mxu0  ;;  %v2980_v13 = vpop.f32.mrf.mxu1 }
 0x3c0   : > { %5616 = vst [vmem:[#allocation48_spill] sm:$0xff] %v5317_v46 }
 0x3c1   : > { %2514 = vmatmul.f32.gmra.mxu2 %v4306_v63  ;;  %2721 = vmatmul.f32.gmra.mxu3 %v5617_v23  ;;  %v5618_v63 = vand.u32 4294901760, %v4446_v22 }
 0x3c2   : > { %2889 = vmatmul.f32.gmra.mxu0 %v5107_v61  ;;  %3043 = vmatmul.f32.gmra.mxu1 %v4170_v58  ;;  %v2431_v61 = vadd.f32 %v2430_v59, %v2274_v48  ;;  %v5619_v48 = vand.u32 4294901760, %v4516_v24 }
 0x3c4   : > { %v2435_v40 = vpop.f32.mrf.mxu2  ;;  %v2626_v62 = vpop.f32.mrf.mxu3  ;;  %v2615_v6 = vadd.f32 %v2614_v27, %v2431_v61 }
 0x3c5   : > { %v2436_v9 = vadd.f32 %v2435_v40, %v2278_v33 }
 0x3c7   : > { %v2830_v28 = vpop.f32.mrf.mxu0  ;;  %v2984_v46 = vpop.f32.mrf.mxu1  ;;  %v2621_v59 = vadd.f32 %v2620_v2, %v2436_v9 }
 0x3c8   : > { %v2831_v15 = vadd.f32 %v2830_v28, %v2609_v57 }
 0x3c9   : > { %2519 = vmatmul.f32.gmra.mxu2 %v4376_v42  ;;  %2727 = vmatmul.f32.gmra.mxu3 %v5618_v63 }
 0x3ca   : > { %v2981_v4 = vadd.f32 %v2980_v13, %v2831_v15  ;;  %2893 = vmatmul.f32.gmra.mxu0 %v4170_v58  ;;  %3047 = vmatmul.f32.gmra.mxu1 %v4226_v16 }
 0x3cc   : > { %3107 = vst [vmem:[%s5332_s14] sm:$0xff] %v2981_v4  ;;  %v2440_v39 = vpop.f32.mrf.mxu2  ;;  %v2632_v18 = vpop.f32.mrf.mxu3 }
 0x3cf   : > { %v2834_v57 = vpop.f32.mrf.mxu0  ;;  %v2988_v49 = vpop.f32.mrf.mxu1 }
 0x3d0   : > { %v2835_v42 = vadd.f32 %v2834_v57, %v2615_v6 }
 0x3d1   : > { %2524 = vmatmul.f32.gmra.mxu2 %v4446_v22  ;;  %2733 = vmatmul.f32.gmra.mxu3 %v5619_v48 }
 0x3d2   : > { %v2985_v58 = vadd.f32 %v2984_v46, %v2835_v42  ;;  %2897 = vmatmul.f32.gmra.mxu0 %v4226_v16  ;;  %3051 = vmatmul.f32.gmra.mxu1 %v4296_v54  ;;  %v2441_v46 = vadd.f32 %v2440_v39, %v2282_v19 }
 0x3d4   : > { %3108 = vst [vmem:[%s5332_s14 + $0x8] sm:$0xff] %v2985_v58  ;;  %v2445_v27 = vpop.f32.mrf.mxu2  ;;  %v2638_v28 = vpop.f32.mrf.mxu3  ;;  %v2627_v15 = vadd.f32 %v2626_v62, %v2441_v46 }
 0x3d5   : > { %v2446_v4 = vadd.f32 %v2445_v27, %v2286_v47 }
 0x3d7   : > { %v2838_v13 = vpop.f32.mrf.mxu0  ;;  %v2992_v23 = vpop.f32.mrf.mxu1  ;;  %v2633_v6 = vadd.f32 %v2632_v18, %v2446_v4 }
 0x3d8   : > { %v2839_v22 = vadd.f32 %v2838_v13, %v2621_v59 }
 0x3d9   : > { %2529 = vmatmul.f32.gmra.mxu2 %v4516_v24  ;;  %2739 = vmatmul.f32.gmra.mxu3 %v5620_v5 }
 0x3da   : > { %v2989_v16 = vadd.f32 %v2988_v49, %v2839_v22  ;;  %2901 = vmatmul.f32.gmra.mxu0 %v4296_v54  ;;  %3055 = vmatmul.f32.gmra.mxu1 %v4366_v36 }
 0x3dc   : > { %3109 = vst [vmem:[%s5332_s14 + $0x10] sm:$0xff] %v2989_v16  ;;  %v2450_v2 = vpop.f32.mrf.mxu2  ;;  %v2644_v40 = vpop.f32.mrf.mxu3 }
 0x3dd   : > { %v2451_v33 = vadd.f32 %v2450_v2, %v2290_v44 }
 0x3df   : > { %v2842_v63 = vpop.f32.mrf.mxu0  ;;  %v2996_v61 = vpop.f32.mrf.mxu1  ;;  %v2639_v48 = vadd.f32 %v2638_v28, %v2451_v33 }
 0x3e0   : > { %v2843_v24 = vadd.f32 %v2842_v63, %v2627_v15 }
 0x3e1   : > { %2534 = vmatmul.f32.gmra.mxu2 %v4586_v1  ;;  %2745 = vmatmul.f32.gmra.mxu3 %v5621_v30 }
 0x3e2   : > { %v2993_v54 = vadd.f32 %v2992_v23, %v2843_v24  ;;  %2905 = vmatmul.f32.gmra.mxu0 %v4366_v36  ;;  %3059 = vmatmul.f32.gmra.mxu1 %v4436_v53 }
 0x3e4   : > { %3110 = vst [vmem:[%s5332_s14 + $0x18] sm:$0xff] %v2993_v54  ;;  %v2455_v62 = vpop.f32.mrf.mxu2  ;;  %v2650_v39 = vpop.f32.mrf.mxu3  ;;  %v5627_v54 = vld [vmem:[#allocation4_spill] sm:$0xff] }
 0x3e5   : > { %v2456_v27 = vadd.f32 %v2455_v62, %v2294_v38 }
 0x3e7   : > { %v2846_v57 = vpop.f32.mrf.mxu0  ;;  %v3000_v49 = vpop.f32.mrf.mxu1  ;;  %v2645_v13 = vadd.f32 %v2644_v40, %v2456_v27 }
 0x3e8   : > { %v2847_v1 = vadd.f32 %v2846_v57, %v2633_v6 }
 0x3e9   : > { %2539 = vmatmul.f32.gmra.mxu2 %v4656_v35  ;;  %2751 = vmatmul.f32.gmra.mxu3 %v5622_v32 }
 0x3ea   : > { %v2997_v36 = vadd.f32 %v2996_v61, %v2847_v1  ;;  %2909 = vmatmul.f32.gmra.mxu0 %v4436_v53  ;;  %3063 = vmatmul.f32.gmra.mxu1 %v4506_v25  ;;  %v5629_v1 = vld [vmem:[#allocation5_spill] sm:$0xff] }
 0x3ec   : > { %3111 = vst [vmem:[%s5332_s14 + $0x20] sm:$0xff] %v2997_v36  ;;  %v2460_v18 = vpop.f32.mrf.mxu2  ;;  %v2656_v42 = vpop.f32.mrf.mxu3 }
 0x3ed   : > { %v2461_v22 = vadd.f32 %v2460_v18, %v2298_v11 }
 0x3ef   : > { %v2850_v9 = vpop.f32.mrf.mxu0  ;;  %v3004_v58 = vpop.f32.mrf.mxu1  ;;  %v2651_v16 = vadd.f32 %v2650_v39, %v2461_v22 }
 0x3f0   : > { %v2851_v35 = vadd.f32 %v2850_v9, %v2639_v48 }
 0x3f1   : > { %2544 = vmatmul.f32.gmra.mxu2 %v4726_v31  ;;  %2757 = vmatmul.f32.gmra.mxu3 %v5623_v21 }
 0x3f2   : > { %v3001_v53 = vadd.f32 %v3000_v49, %v2851_v35  ;;  %2913 = vmatmul.f32.gmra.mxu0 %v4506_v25  ;;  %3067 = vmatmul.f32.gmra.mxu1 %v4576_v56 }
 0x3f4   : > { %3112 = vst [vmem:[%s5332_s14 + $0x28] sm:$0xff] %v3001_v53  ;;  %v2465_v28 = vpop.f32.mrf.mxu2  ;;  %v2662_v59 = vpop.f32.mrf.mxu3 }
 0x3f5   : > { %v2466_v15 = vadd.f32 %v2465_v28, %v2302_v43  ;;  %v5633_v28 = vand.u32 4294901760, %v5632_v45 }
 0x3f7   : > { %v2854_v23 = vpop.f32.mrf.mxu0  ;;  %v3008_v19 = vpop.f32.mrf.mxu1  ;;  %v2657_v47 = vadd.f32 %v2656_v42, %v2466_v15  ;;  %v5638_v15 = vld [vmem:[#allocation46_spill] sm:$0xff] }
 0x3f8   : > { %v2855_v31 = vadd.f32 %v2854_v23, %v2645_v13  ;;  %v5634_v23 = vld [vmem:[#allocation7_spill] sm:$0xff] }
 0x3f9   : > { %2549 = vmatmul.f32.gmra.mxu2 %v4796_v34  ;;  %2763 = vmatmul.f32.gmra.mxu3 %v5624_v60 }
 0x3fa   : > { %v3005_v25 = vadd.f32 %v3004_v58, %v2855_v31  ;;  %2917 = vmatmul.f32.gmra.mxu0 %v4576_v56  ;;  %3071 = vmatmul.f32.gmra.mxu1 %v4646_v55  ;;  %v5631_v58 = vld [vmem:[#allocation6_spill] sm:$0xff] }
 0x3fc   : > { %3113 = vst [vmem:[%s5332_s14 + $0x30] sm:$0xff] %v3005_v25  ;;  %v2470_v5 = vpop.f32.mrf.mxu2  ;;  %v2668_v46 = vpop.f32.mrf.mxu3  ;;  %v2322_v25 = vadd.f32 %v5636_v0, %v5635_v8 }
 0x3fd   : > { %v2471_v4 = vadd.f32 %v2470_v5, %v2306_v20 }
 0x3ff   : > { %v2858_v2 = vpop.f32.mrf.mxu0  ;;  %v3012_v40 = vpop.f32.mrf.mxu1  ;;  %v2663_v6 = vadd.f32 %v2662_v59, %v2471_v4 }
 0x400   : > { %v2859_v34 = vadd.f32 %v2858_v2, %v2651_v16  ;;  %v5637_v16 = vld [vmem:[#allocation8_spill] sm:$0xff] }
 0x401   : > { %2554 = vmatmul.f32.gmra.mxu2 %v4861_v17  ;;  %2769 = vmatmul.f32.gmra.mxu3 %v5625_v41 }
 0x402   : > { %v3009_v56 = vadd.f32 %v3008_v19, %v2859_v34  ;;  %2921 = vmatmul.f32.gmra.mxu0 %v4646_v55  ;;  %3075 = vmatmul.f32.gmra.mxu1 %v4716_v7 }
 0x404   : > { %3114 = vst [vmem:[%s5332_s14 + $0x38] sm:$0xff] %v3009_v56  ;;  %v2475_v63 = vpop.f32.mrf.mxu2  ;;  %v2674_v61 = vpop.f32.mrf.mxu3  ;;  %v5639_v56 = vld [vmem:[#allocation45_spill] sm:$0xff] }
 0x405   : > { %v2476_v44 = vadd.f32 %v2475_v63, %v2310_v10  ;;  %v2326_v63 = vadd.f32 %v5639_v56, %v5638_v15  ;;  %v5643_v10 = vld [vmem:[#allocation10_spill] sm:$0xff] }
 0x407   : > { %v2862_v24 = vpop.f32.mrf.mxu0  ;;  %v3016_v30 = vpop.f32.mrf.mxu1  ;;  %v2669_v36 = vadd.f32 %v2668_v46, %v2476_v44 }
 0x408   : > { %v2863_v17 = vadd.f32 %v2862_v24, %v2657_v47 }
 0x409   : > { %2559 = vmatmul.f32.gmra.mxu2 %v4922_v3  ;;  %2775 = vmatmul.f32.gmra.mxu3 %v5626_v29 }
 0x40a   : > { %v3013_v55 = vadd.f32 %v3012_v40, %v2863_v17  ;;  %2925 = vmatmul.f32.gmra.mxu0 %v4716_v7  ;;  %3079 = vmatmul.f32.gmra.mxu1 %v5627_v54 }
 0x40c   : > { %3115 = vst [vmem:[%s5332_s14 + $0x40] sm:$0xff] %v3013_v55  ;;  %v2480_v62 = vpop.f32.mrf.mxu2  ;;  %v2680_v39 = vpop.f32.mrf.mxu3 }
 0x40d   : > { %v2481_v48 = vadd.f32 %v2480_v62, %v2314_v12  ;;  %v5642_v62 = vld [vmem:[#allocation47_spill] sm:$0xff] }
 0x40f   : > { %v2866_v57 = vpop.f32.mrf.mxu0  ;;  %v3020_v49 = vpop.f32.mrf.mxu1  ;;  %v2675_v21 = vadd.f32 %v2674_v61, %v2481_v48 }
 0x410   : > { %v2867_v3 = vadd.f32 %v2866_v57, %v2663_v6 }
 0x411   : > { %2564 = vmatmul.f32.gmra.mxu2 %v4975_v52  ;;  %2781 = vmatmul.f32.gmra.mxu3 %v5628_v37 }
 0x412   : > { %v3017_v7 = vadd.f32 %v3016_v30, %v2867_v3  ;;  %2929 = vmatmul.f32.gmra.mxu0 %v5627_v54  ;;  %3083 = vmatmul.f32.gmra.mxu1 %v5629_v1  ;;  %v5640_v30 = vld [vmem:[#allocation9_spill] sm:$0xff]  ;;  %v5641_v54 = vld [vmem:[#allocation48_spill] sm:$0xff] }
 0x414   : > { %3116 = vst [vmem:[%s5332_s14 + $0x48] sm:$0xff] %v3017_v7  ;;  %v2485_v32 = vpop.f32.mrf.mxu2  ;;  %v2686_v33 = vpop.f32.mrf.mxu3 }
 0x415   : > { %v2486_v59 = vadd.f32 %v2485_v32, %v2318_v14  ;;  %v5644_v32 = vld [vmem:[#allocation13_spill] sm:$0xff] }
 0x417   : > { %v2870_v18 = vpop.f32.mrf.mxu0  ;;  %v3024_v42 = vpop.f32.mrf.mxu1  ;;  %v2681_v31 = vadd.f32 %v2680_v39, %v2486_v59  ;;  %v2330_v39 = vadd.f32 %v5642_v62, %v5641_v54 }
 0x418   : > { %v2871_v52 = vadd.f32 %v2870_v18, %v2669_v36 }
 0x419   : > { %2569 = vmatmul.f32.gmra.mxu2 %v5010_v51  ;;  %2787 = vmatmul.f32.gmra.mxu3 %v5630_v50 }
 0x41a   : > { %v3021_v9 = vadd.f32 %v3020_v49, %v2871_v52  ;;  %2933 = vmatmul.f32.gmra.mxu0 %v5629_v1  ;;  %3087 = vmatmul.f32.gmra.mxu1 %v5631_v58 }
 0x41c   : > { %3117 = vst [vmem:[%s5332_s14 + $0x50] sm:$0xff] %v3021_v9  ;;  %v2490_v38 = vpop.f32.mrf.mxu2  ;;  %v2692_v35 = vpop.f32.mrf.mxu3 }
 0x41d   : > { %v2491_v5 = vadd.f32 %v2490_v38, %v2322_v25  ;;  %v5646_v38 = vld [vmem:[#allocation15_spill] sm:$0xff] }
 0x41f   : > { %v2874_v27 = vpop.f32.mrf.mxu0  ;;  %v3028_v53 = vpop.f32.mrf.mxu1  ;;  %v2687_v43 = vadd.f32 %v2686_v33, %v2491_v5  ;;  %v5645_v33 = vld [vmem:[#allocation12_spill] sm:$0xff]  ;;  %v5650_v5 = vld [vmem:[#allocation19_spill] sm:$0xff] }
 0x420   : > { %v2875_v51 = vadd.f32 %v2874_v27, %v2675_v21  ;;  %v2334_v36 = vadd.f32 %v5645_v33, %v5644_v32  ;;  %v5656_v33 = vld [vmem:[#allocation25_spill] sm:$0xff] }
 0x421   : > { %2574 = vmatmul.f32.gmra.mxu2 %v5040_v26  ;;  %2793 = vmatmul.f32.gmra.mxu3 %v5633_v28 }
 0x422   : > { %v3025_v13 = vadd.f32 %v3024_v42, %v2875_v51  ;;  %2937 = vmatmul.f32.gmra.mxu0 %v5631_v58  ;;  %3091 = vmatmul.f32.gmra.mxu1 %v5634_v23 }
 0x424   : > { %3118 = vst [vmem:[%s5332_s14 + $0x58] sm:$0xff] %v3025_v13  ;;  %v2495_v19 = vpop.f32.mrf.mxu2  ;;  %v2698_v11 = vpop.f32.mrf.mxu3 }
 0x425   : > { %v2496_v47 = vadd.f32 %v2495_v19, %v2326_v63  ;;  %v5649_v19 = vld [vmem:[#allocation16_spill] sm:$0xff] }
 0x427   : > { %v2878_v60 = vpop.f32.mrf.mxu0  ;;  %v3032_v22 = vpop.f32.mrf.mxu1  ;;  %v2693_v29 = vadd.f32 %v2692_v35, %v2496_v47  ;;  %v5647_v35 = vld [vmem:[#allocation14_spill] sm:$0xff]  ;;  %v5653_v47 = vld [vmem:[#allocation20_spill] sm:$0xff] }
 0x428   : > { %v2879_v26 = vadd.f32 %v2878_v60, %v2681_v31  ;;  %v2338_v21 = vadd.f32 %v5647_v35, %v5646_v38  ;;  %v5658_v35 = vld [vmem:[#allocation27_spill] sm:$0xff] }
 0x429   : > { %2579 = vmatmul.f32.gmra.mxu2 %v5632_v45 }
 0x42a   : > { %v3029_v46 = vadd.f32 %v3028_v53, %v2879_v26  ;;  %2941 = vmatmul.f32.gmra.mxu0 %v5634_v23  ;;  %3095 = vmatmul.f32.gmra.mxu1 %v5637_v16  ;;  %v5648_v23 = vld [vmem:[#allocation17_spill] sm:$0xff] }
 0x42c   : > { %3119 = vst [vmem:[%s5332_s14 + $0x60] sm:$0xff] %v3029_v46  ;;  %v2500_v2 = vpop.f32.mrf.mxu2  ;;  %v2704_v40 = vpop.f32.mrf.mxu3  ;;  %v5651_v46 = vld [vmem:[#allocation18_spill] sm:$0xff] }
 0x42d   : > { %v2501_v57 = vadd.f32 %v2500_v2, %v2330_v39  ;;  %v5654_v39 = vld [vmem:[#allocation23_spill] sm:$0xff] }
 0x42f   : > { %v2882_v34 = vpop.f32.mrf.mxu0  ;;  %v3036_v41 = vpop.f32.mrf.mxu1  ;;  %v2699_v44 = vadd.f32 %v2698_v11, %v2501_v57  ;;  %v2342_v11 = vadd.f32 %v5649_v19, %v5648_v23  ;;  %v5660_v23 = vld [vmem:[#allocation29_spill] sm:$0xff]  ;;  %v5661_v19 = vld [vmem:[#allocation28_spill] sm:$0xff] }
 0x430   : > { %v2883_v61 = vadd.f32 %v2882_v34, %v2687_v43 }
 0x432   : > { %v3033_v24 = vadd.f32 %v3032_v22, %v2883_v61  ;;  %2945 = vmatmul.f32.gmra.mxu0 %v5637_v16  ;;  %3099 = vmatmul.f32.gmra.mxu1 %v5640_v30  ;;  %v2346_v16 = vadd.f32 %v5651_v46, %v5650_v5  ;;  %v5652_v61 = vld [vmem:[#allocation21_spill] sm:$0xff]  ;;  %v5662_v46 = vld [vmem:[#allocation31_spill] sm:$0xff] }
 0x434   : > { %3120 = vst [vmem:[%s5332_s14 + $0x68] sm:$0xff] %v3033_v24  ;;  %v2505_v20 = vpop.f32.mrf.mxu2  ;;  %v2710_v17 = vpop.f32.mrf.mxu3  ;;  %v2350_v24 = vadd.f32 %v5653_v47, %v5652_v61  ;;  %v5664_v47 = vld [vmem:[#allocation33_spill] sm:$0xff] }
 0x435   : > { %v2506_v42 = vadd.f32 %v2505_v20, %v2334_v36  ;;  %v5657_v36 = vld [vmem:[#allocation24_spill] sm:$0xff] }
 0x437   : > { %v2886_v4 = vpop.f32.mrf.mxu0  ;;  %v3040_v55 = vpop.f32.mrf.mxu1  ;;  %v2705_v48 = vadd.f32 %v2704_v40, %v2506_v42 }
 0x438   : > { %v2887_v6 = vadd.f32 %v2886_v4, %v2693_v29 }
 0x43a   : > { %v3037_v49 = vadd.f32 %v3036_v41, %v2887_v6  ;;  %2949 = vmatmul.f32.gmra.mxu0 %v5640_v30  ;;  %3103 = vmatmul.f32.gmra.mxu1 %v5643_v10  ;;  %v5655_v6 = vld [vmem:[#allocation22_spill] sm:$0xff] }
 0x43b   : > { %v2354_v57 = vadd.f32 %v5655_v6, %v5654_v39  ;;  %v5667_v39 = vld [vmem:[#allocation34_spill] sm:$0xff] }
 0x43c   : > { %3121 = vst [vmem:[%s5332_s14 + $0x70] sm:$0xff] %v3037_v49  ;;  %v2510_v3 = vpop.f32.mrf.mxu2  ;;  %v2716_v37 = vpop.f32.mrf.mxu3 }
 0x43d   : > { %v2511_v53 = vadd.f32 %v2510_v3, %v2338_v21  ;;  %v5659_v21 = vld [vmem:[#allocation26_spill] sm:$0xff] }
 0x43f   : > { %v2890_v7 = vpop.f32.mrf.mxu0  ;;  %v3044_v1 = vpop.f32.mrf.mxu1  ;;  %v2711_v28 = vadd.f32 %v2710_v17, %v2511_v53 }
 0x440   : > { %v2891_v18 = vadd.f32 %v2890_v7, %v2699_v44 }
 0x442   : > { %v3041_v12 = vadd.f32 %v3040_v55, %v2891_v18  ;;  %2953 = vmatmul.f32.gmra.mxu0 %v5643_v10  ;;  %v2358_v18 = vadd.f32 %v5657_v36, %v5656_v33  ;;  %v5669_v33 = vld [vmem:[#allocation36_spill] sm:$0xff] }
 0x444   : > { %3122 = vst [vmem:[%s5332_s14 + $0x78] sm:$0xff] %v3041_v12  ;;  %v2515_v52 = vpop.f32.mrf.mxu2  ;;  %v2722_v50 = vpop.f32.mrf.mxu3 }
 0x445   : > { %v2516_v60 = vadd.f32 %v2515_v52, %v2342_v11  ;;  %v2366_v11 = vadd.f32 %v5661_v19, %v5660_v23  ;;  %v5673_v23 = vld [vmem:[#allocation40_spill] sm:$0xff] }
 0x447   : > { %v2894_v9 = vpop.f32.mrf.mxu0  ;;  %v3048_v58 = vpop.f32.mrf.mxu1  ;;  %v2717_v0 = vadd.f32 %v2716_v37, %v2516_v60 }
 0x448   : > { %v2895_v27 = vadd.f32 %v2894_v9, %v2705_v48 }
 0x44a   : > { %v3045_v14 = vadd.f32 %v3044_v1, %v2895_v27  ;;  %v2362_v27 = vadd.f32 %v5659_v21, %v5658_v35 }
 0x44c   : > { %3123 = vst [vmem:[%s5332_s14 + $0x80] sm:$0xff] %v3045_v14  ;;  %v2520_v51 = vpop.f32.mrf.mxu2  ;;  %v2728_v45 = vpop.f32.mrf.mxu3 }
 0x44d   : > { %v2521_v43 = vadd.f32 %v2520_v51, %v2346_v16  ;;  %v5663_v16 = vld [vmem:[#allocation30_spill] sm:$0xff] }
 0x44f   : > { %v2898_v59 = vpop.f32.mrf.mxu0  ;;  %v3052_v13 = vpop.f32.mrf.mxu1  ;;  %v2723_v15 = vadd.f32 %v2722_v50, %v2521_v43 }
 0x450   : > { %v2899_v31 = vadd.f32 %v2898_v59, %v2711_v28 }
 0x452   : > { %v3049_v22 = vadd.f32 %v3048_v58, %v2899_v31 }
 0x454   : > { %3124 = vst [vmem:[%s5332_s14 + $0x88] sm:$0xff] %v3049_v22  ;;  %v2525_v8 = vpop.f32.mrf.mxu2  ;;  %v2734_v2 = vpop.f32.mrf.mxu3 }
 0x455   : > { %v2526_v20 = vadd.f32 %v2525_v8, %v2350_v24  ;;  %v5665_v24 = vld [vmem:[#allocation32_spill] sm:$0xff] }
 0x457   : > { %v2902_v25 = vpop.f32.mrf.mxu0  ;;  %v3056_v26 = vpop.f32.mrf.mxu1  ;;  %v2729_v55 = vadd.f32 %v2728_v45, %v2526_v20 }
 0x458   : > { %v2903_v40 = vadd.f32 %v2902_v25, %v2717_v0 }
 0x45a   : > { %v3053_v34 = vadd.f32 %v3052_v13, %v2903_v40 }
 0x45c   : > { %3125 = vst [vmem:[%s5332_s14 + $0x90] sm:$0xff] %v3053_v34  ;;  %v2530_v41 = vpop.f32.mrf.mxu2  ;;  %v2740_v17 = vpop.f32.mrf.mxu3 }
 0x45d   : > { %v2531_v10 = vadd.f32 %v2530_v41, %v2354_v57 }
 0x45f   : > { %v2906_v56 = vpop.f32.mrf.mxu0  ;;  %v3060_v63 = vpop.f32.mrf.mxu1  ;;  %v2735_v7 = vadd.f32 %v2734_v2, %v2531_v10  ;;  %v2370_v2 = vadd.f32 %v5663_v16, %v5662_v46  ;;  %v5674_v46 = vld [vmem:[#allocation43_spill] sm:$0xff] }
 0x460   : > { %v2907_v30 = vadd.f32 %v2906_v56, %v2723_v15 }
 0x462   : > { %v3057_v29 = vadd.f32 %v3056_v26, %v2907_v30  ;;  %v2374_v30 = vadd.f32 %v5665_v24, %v5664_v47 }
 0x464   : > { %3126 = vst [vmem:[%s5332_s14 + $0x98] sm:$0xff] %v3057_v29  ;;  %v2535_v4 = vpop.f32.mrf.mxu2  ;;  %v2746_v37 = vpop.f32.mrf.mxu3 }
 0x465   : > { %v2536_v12 = vadd.f32 %v2535_v4, %v2358_v18 }
 0x467   : > { %v2910_v54 = vpop.f32.mrf.mxu0  ;;  %v3064_v62 = vpop.f32.mrf.mxu1  ;;  %v2741_v9 = vadd.f32 %v2740_v17, %v2536_v12 }
 0x468   : > { %v2911_v49 = vadd.f32 %v2910_v54, %v2729_v55 }
 0x46a   : > { %v3061_v3 = vadd.f32 %v3060_v63, %v2911_v49 }
 0x46c   : > { %3127 = vst [vmem:[%s5332_s14 + $0xa0] sm:$0xff] %v3061_v3  ;;  %v2540_v44 = vpop.f32.mrf.mxu2  ;;  %v2752_v48 = vpop.f32.mrf.mxu3 }
 0x46d   : > { %v2541_v14 = vadd.f32 %v2540_v44, %v2362_v27 }
 0x46f   : > { %v2914_v1 = vpop.f32.mrf.mxu0  ;;  %v3068_v32 = vpop.f32.mrf.mxu1  ;;  %v2747_v28 = vadd.f32 %v2746_v37, %v2541_v14 }
 0x470   : > { %v2915_v42 = vadd.f32 %v2914_v1, %v2735_v7 }
 0x472   : > { %v3065_v52 = vadd.f32 %v3064_v62, %v2915_v42  ;;  %v5666_v62 = vld [vmem:[#allocation35_spill] sm:$0xff] }
 0x473   : > { %v2378_v6 = vadd.f32 %v5667_v39, %v5666_v62 }
 0x474   : > { %3128 = vst [vmem:[%s5332_s14 + $0xa8] sm:$0xff] %v3065_v52  ;;  %v2545_v50 = vpop.f32.mrf.mxu2  ;;  %v2758_v60 = vpop.f32.mrf.mxu3 }
 0x475   : > { %v2546_v22 = vadd.f32 %v2545_v50, %v2366_v11 }
 0x477   : > { %v2918_v58 = vpop.f32.mrf.mxu0  ;;  %v3072_v38 = vpop.f32.mrf.mxu1  ;;  %v2753_v25 = vadd.f32 %v2752_v48, %v2546_v22 }
 0x478   : > { %v2919_v53 = vadd.f32 %v2918_v58, %v2741_v9  ;;  %v5670_v58 = vld [vmem:[#allocation39_spill] sm:$0xff] }
 0x47a   : > { %v3069_v51 = vadd.f32 %v3068_v32, %v2919_v53  ;;  %v5668_v32 = vld [vmem:[#allocation37_spill] sm:$0xff] }
 0x47b   : > { %v2382_v36 = vadd.f32 %v5669_v33, %v5668_v32 }
 0x47c   : > { %3129 = vst [vmem:[%s5332_s14 + $0xb0] sm:$0xff] %v3069_v51  ;;  %v2550_v45 = vpop.f32.mrf.mxu2  ;;  %v2764_v41 = vpop.f32.mrf.mxu3 }
 0x47d   : > { %v2551_v43 = vadd.f32 %v2550_v45, %v2370_v2 }
 0x47f   : > { %v2922_v59 = vpop.f32.mrf.mxu0  ;;  %v3076_v13 = vpop.f32.mrf.mxu1  ;;  %v2759_v56 = vadd.f32 %v2758_v60, %v2551_v43 }
 0x480   : > { %v2923_v31 = vadd.f32 %v2922_v59, %v2747_v28 }
 0x482   : > { %v3073_v8 = vadd.f32 %v3072_v38, %v2923_v31  ;;  %v5671_v38 = vld [vmem:[#allocation38_spill] sm:$0xff] }
 0x483   : > { %v2386_v35 = vadd.f32 %v5671_v38, %v5670_v58 }
 0x484   : > { %3130 = vst [vmem:[%s5332_s14 + $0xb8] sm:$0xff] %v3073_v8  ;;  %v2555_v0 = vpop.f32.mrf.mxu2  ;;  %v2770_v4 = vpop.f32.mrf.mxu3 }
 0x485   : > { %v2556_v17 = vadd.f32 %v2555_v0, %v2374_v30 }
 0x487   : > { %v2926_v26 = vpop.f32.mrf.mxu0  ;;  %v3080_v5 = vpop.f32.mrf.mxu1  ;;  %v2765_v55 = vadd.f32 %v2764_v41, %v2556_v17 }
 0x488   : > { %v2927_v40 = vadd.f32 %v2926_v26, %v2753_v25 }
 0x48a   : > { %v3077_v34 = vadd.f32 %v3076_v13, %v2927_v40  ;;  %v5672_v13 = vld [vmem:[#allocation41_spill] sm:$0xff] }
 0x48b   : > { %v2390_v19 = vadd.f32 %v5673_v23, %v5672_v13 }
 0x48c   : > { %3131 = vst [vmem:[%s5332_s14 + $0xc0] sm:$0xff] %v3077_v34  ;;  %v2560_v15 = vpop.f32.mrf.mxu2  ;;  %v2776_v7 = vpop.f32.mrf.mxu3 }
 0x48d   : > { %v2561_v3 = vadd.f32 %v2560_v15, %v2378_v6 }
 0x48f   : > { %v2930_v63 = vpop.f32.mrf.mxu0  ;;  %v3084_v61 = vpop.f32.mrf.mxu1  ;;  %v2771_v44 = vadd.f32 %v2770_v4, %v2561_v3 }
 0x490   : > { %v2931_v20 = vadd.f32 %v2930_v63, %v2759_v56 }
 0x492   : > { %v3081_v29 = vadd.f32 %v3080_v5, %v2931_v20 }
 0x494   : > { %3132 = vst [vmem:[%s5332_s14 + $0xc8] sm:$0xff] %v3081_v29  ;;  %v2565_v57 = vpop.f32.mrf.mxu2  ;;  %v2782_v27 = vpop.f32.mrf.mxu3 }
 0x495   : > { %v2566_v42 = vadd.f32 %v2565_v57, %v2382_v36 }
 0x497   : > { %v2934_v54 = vpop.f32.mrf.mxu0  ;;  %v3088_v10 = vpop.f32.mrf.mxu1  ;;  %v2777_v48 = vadd.f32 %v2776_v7, %v2566_v42 }
 0x498   : > { %v2935_v49 = vadd.f32 %v2934_v54, %v2765_v55 }
 0x49a   : > { %v3085_v37 = vadd.f32 %v3084_v61, %v2935_v49 }
 0x49c   : > { %3133 = vst [vmem:[%s5332_s14 + $0xd0] sm:$0xff] %v3085_v37  ;;  %v2570_v12 = vpop.f32.mrf.mxu2  ;;  %v2788_v22 = vpop.f32.mrf.mxu3 }
 0x49d   : > { %v2571_v53 = vadd.f32 %v2570_v12, %v2386_v35 }
 0x49f   : > { %v2938_v1 = vpop.f32.mrf.mxu0  ;;  %v3092_v50 = vpop.f32.mrf.mxu1  ;;  %v2783_v28 = vadd.f32 %v2782_v27, %v2571_v53 }
 0x4a0   : > { %v2939_v18 = vadd.f32 %v2938_v1, %v2771_v44 }
 0x4a2   : > { %v3089_v52 = vadd.f32 %v3088_v10, %v2939_v18 }
 0x4a4   : > { %3134 = vst [vmem:[%s5332_s14 + $0xd8] sm:$0xff] %v3089_v52  ;;  %v2575_v51 = vpop.f32.mrf.mxu2  ;;  %v2794_v40 = vpop.f32.mrf.mxu3 }
 0x4a5   : > { %v2576_v31 = vadd.f32 %v2575_v51, %v2390_v19 }
 0x4a7   : > { %v2942_v9 = vpop.f32.mrf.mxu0  ;;  %v3096_v45 = vpop.f32.mrf.mxu1  ;;  %v2789_v0 = vadd.f32 %v2788_v22, %v2576_v31 }
 0x4a8   : > { %v2943_v21 = vadd.f32 %v2942_v9, %v2777_v48 }
 0x4aa   : > { %v3093_v14 = vadd.f32 %v3092_v50, %v2943_v21 }
 0x4ac   : > { %3135 = vst [vmem:[%s5332_s14 + $0xe0] sm:$0xff] %v3093_v14  ;;  %v2580_v8 = vpop.f32.mrf.mxu2 }
 0x4ad   : > { %v2581_v16 = vadd.f32 %v2580_v8, %v5674_v46 }
 0x4af   : > { %v2946_v59 = vpop.f32.mrf.mxu0  ;;  %v3100_v25 = vpop.f32.mrf.mxu1  ;;  %v2795_v43 = vadd.f32 %v2794_v40, %v2581_v16 }
 0x4b0   : > { %v2947_v11 = vadd.f32 %v2946_v59, %v2783_v28 }
 0x4b2   : > { %v3097_v60 = vadd.f32 %v3096_v45, %v2947_v11 }
 0x4b4   : > { %3136 = vst [vmem:[%s5332_s14 + $0xe8] sm:$0xff] %v3097_v60 }
 0x4b7   : > { %v2950_v26 = vpop.f32.mrf.mxu0  ;;  %v3104_v15 = vpop.f32.mrf.mxu1 }
 0x4b8   : > { %v2951_v5 = vadd.f32 %v2950_v26, %v2789_v0 }
 0x4ba   : > { %v3101_v2 = vadd.f32 %v3100_v25, %v2951_v5 }
 0x4bc   : > { %3137 = vst [vmem:[%s5332_s14 + $0xf0] sm:$0xff] %v3101_v2 }
 0x4bf   : > { %v2954_v34 = vpop.f32.mrf.mxu0 }
 0x4c0   : > { %v2955_v41 = vadd.f32 %v2954_v34, %v2795_v43 }
 0x4c2   : > { %v3105_v56 = vadd.f32 %v3104_v15, %v2955_v41 }
 0x4c4   : > { %3138 = vst [vmem:[%s5332_s14 + $0xf8] sm:$0xff] %v3105_v56 }
 0x4c5 PF: > { %s12_s11 = sadd.s32 1, %s3517_s11   ;;  %s5675_s9 = smov %s3513_s10 }
 0x4c6   : > { %p9_p5 = scmp.ge.s32.totalorder %s12_s11, 4   ;;  %s5676_s10 = smov %s5678_s12 }
 0x4c8   :  { %11 = sbr.rel (!%p9_p5) target bundleno = 2 (0x2), region = 63 }

</bundles_post_ra>
